<compile_context>
chip_gen: v6e
topology: v6e:2x2x1
jax: 0.10.0
libtpu: 0.0.40
codegen_flags: <defaults>
</compile_context>

<pallas_src>
import functools

import jax
import jax.numpy as jnp
import numpy as np
from jax import lax
from jax.experimental import pallas as pl
from jax.experimental.pallas import tpu as pltpu

NEG_SLOPE = 0.01  # nn.LeakyReLU() default negative_slope


# ----------------------------- Pallas kernel ------------------------------- #

def _rrdb_kernel(x_ref, *refs, filters, H, W, res_scale):
    """Fused RRDB forward for one batch element.

    x_ref : (1, filters, H*W)   RRDB input, lane-dense (HW last)
    refs  : 15 packed weights, each (filters, 9*(i+1)*filters + 1), then o_ref
    o_ref : (1, filters, H*W)
    """
    w_refs = refs[:-1]
    o_ref = refs[-1]
    HW = H * W
    C = filters

    # Column-validity masks for the horizontal taps (shared by all 15 convs).
    col = lax.broadcasted_iota(jnp.int32, (1, HW), 1) % W
    mask_l = (col >= 1).astype(jnp.float32)        # dx = -1 invalid at w == 0
    mask_r = (col <= W - 2).astype(jnp.float32)    # dx = +1 invalid at w == W-1
    ones_row = jnp.ones((1, HW), jnp.float32)      # bias row (bias folded in K)
    zpad = jnp.zeros((C, W + 1), jnp.float32)

    def tap_block(piece):
        """(C, HW) -> (9*C, HW): the 9 shifted 3x3 taps with zero borders."""
        ext = jnp.concatenate([zpad, piece, zpad], axis=1)   # (C, HW + 2W + 2)
        taps = []
        for dy in (-1, 0, 1):
            for dx in (-1, 0, 1):
                s = dy * W + dx
                t = ext[:, W + 1 + s: W + 1 + s + HW]        # static lane slice
                if dx == -1:
                    t = t * mask_l
                elif dx == 1:
                    t = t * mask_r
                taps.append(t)
        return jnp.concatenate(taps, axis=0)

    x0 = x_ref[0].astype(jnp.float32)              # (C, HW)
    y = x0
    for blk in range(3):                           # 3 DenseResidualBlocks
        blocks = [tap_block(y)]                    # growing im2col, VMEM-resident
        feat = None
        for i in range(5):                         # 5 convs; channel growth in K
            w = w_refs[blk * 5 + i][...]           # (C, 9*(i+1)*C + 1)
            patches = jnp.concatenate(blocks + [ones_row], axis=0)
            feat = jnp.dot(w, patches, preferred_element_type=jnp.float32)
            if i < 4:
                feat = jnp.where(feat >= 0, feat, NEG_SLOPE * feat)
                blocks.append(tap_block(feat))
        y = feat * res_scale + y                   # dense-block residual
    out = y * res_scale + x0                       # final RRDB residual (fused)
    o_ref[0] = out.astype(o_ref.dtype)


# ------------------------------ Wrappers ----------------------------------- #

def pack_params(params, filters):
    """Pack each conv's (3,3,Cin,Cout) HWIO weight + bias into (Cout, 9*Cin+1).

    K ordering = (input piece j, tap t=dy*3+dx, channel-within-piece c), which
    matches how the kernel concatenates per-piece tap blocks; the bias is the
    last K column (the kernel appends a ones row to the patch matrix).
    """
    packed = []
    for block in params:
        for i, (w, b) in enumerate(block):
            cout = filters
            wr = w.reshape(3, 3, i + 1, filters, cout)     # (dy, dx, j, c, co)
            wr = jnp.transpose(wr, (4, 2, 0, 1, 3))        # (co, j, dy, dx, c)
            wr = wr.reshape(cout, (i + 1) * 9 * filters)
            packed.append(jnp.concatenate([wr, b[:, None]], axis=1))
    return packed


def rrdb_forward(x_nchw, params, res_scale=0.2):
    """ResidualInResidualDenseBlock.forward (NCHW in / NCHW out)."""
    n, c, h, w = x_nchw.shape
    hw = h * w
    x = x_nchw.reshape(n, c, hw)            # NCHW -> (N, C, HW): free reshape
    packed = pack_params(params, c)

    in_specs = [pl.BlockSpec((1, c, hw), lambda b: (b, 0, 0))]
    in_specs += [pl.BlockSpec(wp.shape, lambda b: (0, 0)) for wp in packed]

    kernel = functools.partial(_rrdb_kernel, filters=c, H=h, W=w,
                               res_scale=res_scale)
    out = pl.pallas_call(
        kernel,
        out_shape=jax.ShapeDtypeStruct((n, c, hw), x_nchw.dtype),
        grid=(n,),
        in_specs=in_specs,
        out_specs=pl.BlockSpec((1, c, hw), lambda b: (b, 0, 0)),
        compiler_params=pltpu.CompilerParams(
            dimension_semantics=("parallel",)),
    )(x, *packed)
    return out.reshape(n, c, h, w)


# --------------------------- Parameter init -------------------------------- #

def init_params(key, filters):
    """3 dense blocks x 5 convs; conv_i: Cin = (i+1)*filters, Cout = filters."""
    params = []
    for _ in range(3):
        block = []
        for i in range(5):
            cin = (i + 1) * filters
            key, kw, kb = jax.random.split(key, 3)
            w = 0.1 * jax.random.normal(kw, (3, 3, cin, filters), jnp.float32)
            b = 0.1 * jax.random.normal(kb, (filters,), jnp.float32)
            block.append((w, b))
        params.append(block)
    return params


# --------------------------- Pure-JAX reference ----------------------------- #

def _conv_ref(x, w, b, leaky):
    y = lax.conv_general_dilated(x, w, (1, 1), "SAME",
                                 dimension_numbers=("NHWC", "HWIO", "NHWC"))
    y = y + b[None, None, None, :]
    if leaky:
        y = jnp.where(y >= 0, y, NEG_SLOPE * y)
    return y


def _dense_block_ref(x, params, res_scale=0.2):
    inputs = x
    out = None
    for i, (w, b) in enumerate(params):
        out = _conv_ref(inputs, w, b, leaky=(i < 4))
        inputs = jnp.concatenate([inputs, out], axis=-1)
    return out * res_scale + x


def _rrdb_ref(x_nchw, params, res_scale=0.2):
    x = jnp.transpose(x_nchw, (0, 2, 3, 1))
    y = x
    for bp in params:
        y = _dense_block_ref(y, bp, res_scale)
    y = y * res_scale + x
    return jnp.transpose(y, (0, 3, 1, 2))


# ------------------------------------ main ---------------------------------- #

if __name__ == "__main__":
    filters = 4
    key = jax.random.PRNGKey(0)
    k_x, k_p = jax.random.split(key)

    # PyTorch-style NCHW input: (batch=2, channels=filters, 16, 16)
    x = jax.random.normal(k_x, (2, filters, 16, 16), jnp.float32)
    params = init_params(k_p, filters)

    fwd = jax.jit(functools.partial(rrdb_forward, res_scale=0.2))
    out = jax.block_until_ready(fwd(x, params))

    ref = _rrdb_ref(x, params, 0.2)
    np.testing.assert_allclose(np.asarray(out), np.asarray(ref),
                               rtol=2e-3, atol=2e-3)
    assert out.shape == x.shape and out.dtype == x.dtype
    print("KERNEL_OK")
</pallas_src>

<mosaic_0001>
module attributes {stable_mosaic.version = 11 : i64} {
  func.func @_rrdb_kernel(%arg0: i32, %arg1: memref<1x4x256xf32, #tpu.memory_space<vmem>>, %arg2: memref<4x37xf32, #tpu.memory_space<vmem>>, %arg3: memref<4x73xf32, #tpu.memory_space<vmem>>, %arg4: memref<4x109xf32, #tpu.memory_space<vmem>>, %arg5: memref<4x145xf32, #tpu.memory_space<vmem>>, %arg6: memref<4x181xf32, #tpu.memory_space<vmem>>, %arg7: memref<4x37xf32, #tpu.memory_space<vmem>>, %arg8: memref<4x73xf32, #tpu.memory_space<vmem>>, %arg9: memref<4x109xf32, #tpu.memory_space<vmem>>, %arg10: memref<4x145xf32, #tpu.memory_space<vmem>>, %arg11: memref<4x181xf32, #tpu.memory_space<vmem>>, %arg12: memref<4x37xf32, #tpu.memory_space<vmem>>, %arg13: memref<4x73xf32, #tpu.memory_space<vmem>>, %arg14: memref<4x109xf32, #tpu.memory_space<vmem>>, %arg15: memref<4x145xf32, #tpu.memory_space<vmem>>, %arg16: memref<4x181xf32, #tpu.memory_space<vmem>>, %arg17: memref<1x4x256xf32, #tpu.memory_space<vmem>>) attributes {dimension_semantics = [#tpu.dimension_semantics<parallel>], iteration_bounds = array<i64: 2>, scalar_prefetch = 0 : i64, scratch_operands = 0 : i64, tpu.core_type = #tpu.core_type<tc>, window_params = [{transform_indices = @transform_0, window_bounds = array<i64: 1, 4, 256>}, {pipeline_mode = #tpu.pipeline_mode<synchronous>, transform_indices = @transform_1, window_bounds = array<i64: 4, 37>}, {pipeline_mode = #tpu.pipeline_mode<synchronous>, transform_indices = @transform_2, window_bounds = array<i64: 4, 73>}, {pipeline_mode = #tpu.pipeline_mode<synchronous>, transform_indices = @transform_3, window_bounds = array<i64: 4, 109>}, {pipeline_mode = #tpu.pipeline_mode<synchronous>, transform_indices = @transform_4, window_bounds = array<i64: 4, 145>}, {pipeline_mode = #tpu.pipeline_mode<synchronous>, transform_indices = @transform_5, window_bounds = array<i64: 4, 181>}, {pipeline_mode = #tpu.pipeline_mode<synchronous>, transform_indices = @transform_6, window_bounds = array<i64: 4, 37>}, {pipeline_mode = #tpu.pipeline_mode<synchronous>, transform_indices = @transform_7, window_bounds = array<i64: 4, 73>}, {pipeline_mode = #tpu.pipeline_mode<synchronous>, transform_indices = @transform_8, window_bounds = array<i64: 4, 109>}, {pipeline_mode = #tpu.pipeline_mode<synchronous>, transform_indices = @transform_9, window_bounds = array<i64: 4, 145>}, {pipeline_mode = #tpu.pipeline_mode<synchronous>, transform_indices = @transform_10, window_bounds = array<i64: 4, 181>}, {pipeline_mode = #tpu.pipeline_mode<synchronous>, transform_indices = @transform_11, window_bounds = array<i64: 4, 37>}, {pipeline_mode = #tpu.pipeline_mode<synchronous>, transform_indices = @transform_12, window_bounds = array<i64: 4, 73>}, {pipeline_mode = #tpu.pipeline_mode<synchronous>, transform_indices = @transform_13, window_bounds = array<i64: 4, 109>}, {pipeline_mode = #tpu.pipeline_mode<synchronous>, transform_indices = @transform_14, window_bounds = array<i64: 4, 145>}, {pipeline_mode = #tpu.pipeline_mode<synchronous>, transform_indices = @transform_15, window_bounds = array<i64: 4, 181>}, {transform_indices = @transform_16, window_bounds = array<i64: 1, 4, 256>}]} {
    %0 = tpu.iota {dimensions = array<i32: 1>} : vector<1x256xi32>
    %c16_i32 = arith.constant 16 : i32
    %c0_i32 = arith.constant 0 : i32
    %1 = arith.cmpi eq, %c16_i32, %c0_i32 : i32
    %c1_i32 = arith.constant 1 : i32
    %2 = arith.select %1, %c1_i32, %c16_i32 : i32
    %3 = vector.broadcast %2 : i32 to vector<1x256xi32>
    %4 = arith.remsi %0, %3 : vector<1x256xi32>
    %c0_i32_0 = arith.constant 0 : i32
    %5 = vector.broadcast %c0_i32_0 : i32 to vector<1x256xi32>
    %6 = arith.cmpi ne, %4, %5 : vector<1x256xi32>
    %c0_i32_1 = arith.constant 0 : i32
    %7 = vector.broadcast %c0_i32_1 : i32 to vector<1x256xi32>
    %8 = arith.cmpi slt, %4, %7 : vector<1x256xi32>
    %c0_i32_2 = arith.constant 0 : i32
    %9 = arith.cmpi slt, %2, %c0_i32_2 : i32
    %10 = vector.broadcast %9 : i1 to vector<1x256xi1>
    %11 = vector.broadcast %10 : vector<1x256xi1> to vector<1x256xi1>
    %12 = arith.xori %8, %11 : vector<1x256xi1>
    %13 = arith.andi %12, %6 : vector<1x256xi1>
    %14 = vector.broadcast %2 : i32 to vector<1x256xi32>
    %15 = arith.addi %4, %14 : vector<1x256xi32>
    %16 = arith.select %13, %15, %4 : vector<1x256xi1>, vector<1x256xi32>
    %c1_i32_3 = arith.constant 1 : i32
    %17 = vector.broadcast %c1_i32_3 : i32 to vector<1x256xi32>
    %18 = arith.cmpi sge, %16, %17 : vector<1x256xi32>
    %19 = arith.extui %18 : vector<1x256xi1> to vector<1x256xi32>
    %20 = arith.sitofp %19 : vector<1x256xi32> to vector<1x256xf32>
    %c14_i32 = arith.constant 14 : i32
    %21 = vector.broadcast %c14_i32 : i32 to vector<1x256xi32>
    %22 = arith.cmpi sle, %16, %21 : vector<1x256xi32>
    %23 = arith.extui %22 : vector<1x256xi1> to vector<1x256xi32>
    %24 = arith.sitofp %23 : vector<1x256xi32> to vector<1x256xf32>
    %cst = arith.constant 1.000000e+00 : f32
    %25 = vector.broadcast %cst : f32 to vector<1x256xf32>
    %cst_4 = arith.constant 0.000000e+00 : f32
    %26 = vector.broadcast %cst_4 : f32 to vector<4x17xf32>
    %c0 = arith.constant 0 : index
    %c0_5 = arith.constant 0 : index
    %c0_6 = arith.constant 0 : index
    %27 = vector.load %arg1[%c0, %c0_5, %c0_6] : memref<1x4x256xf32, #tpu.memory_space<vmem>>, vector<1x4x256xf32>
    %28 = vector.shape_cast %27 : vector<1x4x256xf32> to vector<4x256xf32>
    %29 = tpu.concatenate %26, %28, %26 in 1 : vector<4x17xf32>, vector<4x256xf32>, vector<4x17xf32> -> vector<4x290xf32>
    %30 = vector.extract_strided_slice %29 {offsets = [0, 0], sizes = [4, 256], strides = [1, 1]} : vector<4x290xf32> to vector<4x256xf32>
    %31 = vector.broadcast %20 : vector<1x256xf32> to vector<4x256xf32>
    %32 = arith.mulf %30, %31 : vector<4x256xf32>
    %33 = vector.extract_strided_slice %29 {offsets = [0, 1], sizes = [4, 256], strides = [1, 1]} : vector<4x290xf32> to vector<4x256xf32>
    %34 = vector.extract_strided_slice %29 {offsets = [0, 2], sizes = [4, 256], strides = [1, 1]} : vector<4x290xf32> to vector<4x256xf32>
    %35 = vector.broadcast %24 : vector<1x256xf32> to vector<4x256xf32>
    %36 = arith.mulf %34, %35 : vector<4x256xf32>
    %37 = vector.extract_strided_slice %29 {offsets = [0, 16], sizes = [4, 256], strides = [1, 1]} : vector<4x290xf32> to vector<4x256xf32>
    %38 = vector.broadcast %20 : vector<1x256xf32> to vector<4x256xf32>
    %39 = arith.mulf %37, %38 : vector<4x256xf32>
    %40 = vector.extract_strided_slice %29 {offsets = [0, 17], sizes = [4, 256], strides = [1, 1]} : vector<4x290xf32> to vector<4x256xf32>
    %41 = vector.extract_strided_slice %29 {offsets = [0, 18], sizes = [4, 256], strides = [1, 1]} : vector<4x290xf32> to vector<4x256xf32>
    %42 = vector.broadcast %24 : vector<1x256xf32> to vector<4x256xf32>
    %43 = arith.mulf %41, %42 : vector<4x256xf32>
    %44 = vector.extract_strided_slice %29 {offsets = [0, 32], sizes = [4, 256], strides = [1, 1]} : vector<4x290xf32> to vector<4x256xf32>
    %45 = vector.broadcast %20 : vector<1x256xf32> to vector<4x256xf32>
    %46 = arith.mulf %44, %45 : vector<4x256xf32>
    %47 = vector.extract_strided_slice %29 {offsets = [0, 33], sizes = [4, 256], strides = [1, 1]} : vector<4x290xf32> to vector<4x256xf32>
    %48 = vector.extract_strided_slice %29 {offsets = [0, 34], sizes = [4, 256], strides = [1, 1]} : vector<4x290xf32> to vector<4x256xf32>
    %49 = vector.broadcast %24 : vector<1x256xf32> to vector<4x256xf32>
    %50 = arith.mulf %48, %49 : vector<4x256xf32>
    %51 = tpu.concatenate %32, %33, %36, %39, %40, %43, %46, %47, %50 in 0 : vector<4x256xf32>, vector<4x256xf32>, vector<4x256xf32>, vector<4x256xf32>, vector<4x256xf32>, vector<4x256xf32>, vector<4x256xf32>, vector<4x256xf32>, vector<4x256xf32> -> vector<36x256xf32>
    %c0_7 = arith.constant 0 : index
    %c0_8 = arith.constant 0 : index
    %52 = vector.load %arg2[%c0_7, %c0_8] : memref<4x37xf32, #tpu.memory_space<vmem>>, vector<4x37xf32>
    %53 = tpu.concatenate %51, %25 in 0 : vector<36x256xf32>, vector<1x256xf32> -> vector<37x256xf32>
    %cst_9 = arith.constant dense<0.000000e+00> : vector<4x256xf32>
    %54 = tpu.matmul %52, %53, %cst_9 {dimension_numbers = #tpu.dot_dimension_numbers<[1], [0], [0], [1], [0, 0, 1, 1], [], []>} : vector<4x37xf32>, vector<37x256xf32>, vector<4x256xf32> -> vector<4x256xf32>
    %cst_10 = arith.constant 0.000000e+00 : f32
    %55 = vector.broadcast %cst_10 : f32 to vector<4x256xf32>
    %56 = arith.cmpf oge, %54, %55 : vector<4x256xf32>
    %cst_11 = arith.constant 0.00999999977 : f32
    %57 = vector.broadcast %cst_11 : f32 to vector<4x256xf32>
    %58 = arith.mulf %57, %54 : vector<4x256xf32>
    %59 = arith.select %56, %54, %58 : vector<4x256xi1>, vector<4x256xf32>
    %60 = tpu.concatenate %26, %59, %26 in 1 : vector<4x17xf32>, vector<4x256xf32>, vector<4x17xf32> -> vector<4x290xf32>
    %61 = vector.extract_strided_slice %60 {offsets = [0, 0], sizes = [4, 256], strides = [1, 1]} : vector<4x290xf32> to vector<4x256xf32>
    %62 = vector.broadcast %20 : vector<1x256xf32> to vector<4x256xf32>
    %63 = arith.mulf %61, %62 : vector<4x256xf32>
    %64 = vector.extract_strided_slice %60 {offsets = [0, 1], sizes = [4, 256], strides = [1, 1]} : vector<4x290xf32> to vector<4x256xf32>
    %65 = vector.extract_strided_slice %60 {offsets = [0, 2], sizes = [4, 256], strides = [1, 1]} : vector<4x290xf32> to vector<4x256xf32>
    %66 = vector.broadcast %24 : vector<1x256xf32> to vector<4x256xf32>
    %67 = arith.mulf %65, %66 : vector<4x256xf32>
    %68 = vector.extract_strided_slice %60 {offsets = [0, 16], sizes = [4, 256], strides = [1, 1]} : vector<4x290xf32> to vector<4x256xf32>
    %69 = vector.broadcast %20 : vector<1x256xf32> to vector<4x256xf32>
    %70 = arith.mulf %68, %69 : vector<4x256xf32>
    %71 = vector.extract_strided_slice %60 {offsets = [0, 17], sizes = [4, 256], strides = [1, 1]} : vector<4x290xf32> to vector<4x256xf32>
    %72 = vector.extract_strided_slice %60 {offsets = [0, 18], sizes = [4, 256], strides = [1, 1]} : vector<4x290xf32> to vector<4x256xf32>
    %73 = vector.broadcast %24 : vector<1x256xf32> to vector<4x256xf32>
    %74 = arith.mulf %72, %73 : vector<4x256xf32>
    %75 = vector.extract_strided_slice %60 {offsets = [0, 32], sizes = [4, 256], strides = [1, 1]} : vector<4x290xf32> to vector<4x256xf32>
    %76 = vector.broadcast %20 : vector<1x256xf32> to vector<4x256xf32>
    %77 = arith.mulf %75, %76 : vector<4x256xf32>
    %78 = vector.extract_strided_slice %60 {offsets = [0, 33], sizes = [4, 256], strides = [1, 1]} : vector<4x290xf32> to vector<4x256xf32>
    %79 = vector.extract_strided_slice %60 {offsets = [0, 34], sizes = [4, 256], strides = [1, 1]} : vector<4x290xf32> to vector<4x256xf32>
    %80 = vector.broadcast %24 : vector<1x256xf32> to vector<4x256xf32>
    %81 = arith.mulf %79, %80 : vector<4x256xf32>
    %82 = tpu.concatenate %63, %64, %67, %70, %71, %74, %77, %78, %81 in 0 : vector<4x256xf32>, vector<4x256xf32>, vector<4x256xf32>, vector<4x256xf32>, vector<4x256xf32>, vector<4x256xf32>, vector<4x256xf32>, vector<4x256xf32>, vector<4x256xf32> -> vector<36x256xf32>
    %c0_12 = arith.constant 0 : index
    %c0_13 = arith.constant 0 : index
    %83 = vector.load %arg3[%c0_12, %c0_13] : memref<4x73xf32, #tpu.memory_space<vmem>>, vector<4x73xf32>
    %84 = tpu.concatenate %51, %82, %25 in 0 : vector<36x256xf32>, vector<36x256xf32>, vector<1x256xf32> -> vector<73x256xf32>
    %cst_14 = arith.constant dense<0.000000e+00> : vector<4x256xf32>
    %85 = tpu.matmul %83, %84, %cst_14 {dimension_numbers = #tpu.dot_dimension_numbers<[1], [0], [0], [1], [0, 0, 1, 1], [], []>} : vector<4x73xf32>, vector<73x256xf32>, vector<4x256xf32> -> vector<4x256xf32>
    %cst_15 = arith.constant 0.000000e+00 : f32
    %86 = vector.broadcast %cst_15 : f32 to vector<4x256xf32>
    %87 = arith.cmpf oge, %85, %86 : vector<4x256xf32>
    %cst_16 = arith.constant 0.00999999977 : f32
    %88 = vector.broadcast %cst_16 : f32 to vector<4x256xf32>
    %89 = arith.mulf %88, %85 : vector<4x256xf32>
    %90 = arith.select %87, %85, %89 : vector<4x256xi1>, vector<4x256xf32>
    %91 = tpu.concatenate %26, %90, %26 in 1 : vector<4x17xf32>, vector<4x256xf32>, vector<4x17xf32> -> vector<4x290xf32>
    %92 = vector.extract_strided_slice %91 {offsets = [0, 0], sizes = [4, 256], strides = [1, 1]} : vector<4x290xf32> to vector<4x256xf32>
    %93 = vector.broadcast %20 : vector<1x256xf32> to vector<4x256xf32>
    %94 = arith.mulf %92, %93 : vector<4x256xf32>
    %95 = vector.extract_strided_slice %91 {offsets = [0, 1], sizes = [4, 256], strides = [1, 1]} : vector<4x290xf32> to vector<4x256xf32>
    %96 = vector.extract_strided_slice %91 {offsets = [0, 2], sizes = [4, 256], strides = [1, 1]} : vector<4x290xf32> to vector<4x256xf32>
    %97 = vector.broadcast %24 : vector<1x256xf32> to vector<4x256xf32>
    %98 = arith.mulf %96, %97 : vector<4x256xf32>
    %99 = vector.extract_strided_slice %91 {offsets = [0, 16], sizes = [4, 256], strides = [1, 1]} : vector<4x290xf32> to vector<4x256xf32>
    %100 = vector.broadcast %20 : vector<1x256xf32> to vector<4x256xf32>
    %101 = arith.mulf %99, %100 : vector<4x256xf32>
    %102 = vector.extract_strided_slice %91 {offsets = [0, 17], sizes = [4, 256], strides = [1, 1]} : vector<4x290xf32> to vector<4x256xf32>
    %103 = vector.extract_strided_slice %91 {offsets = [0, 18], sizes = [4, 256], strides = [1, 1]} : vector<4x290xf32> to vector<4x256xf32>
    %104 = vector.broadcast %24 : vector<1x256xf32> to vector<4x256xf32>
    %105 = arith.mulf %103, %104 : vector<4x256xf32>
    %106 = vector.extract_strided_slice %91 {offsets = [0, 32], sizes = [4, 256], strides = [1, 1]} : vector<4x290xf32> to vector<4x256xf32>
    %107 = vector.broadcast %20 : vector<1x256xf32> to vector<4x256xf32>
    %108 = arith.mulf %106, %107 : vector<4x256xf32>
    %109 = vector.extract_strided_slice %91 {offsets = [0, 33], sizes = [4, 256], strides = [1, 1]} : vector<4x290xf32> to vector<4x256xf32>
    %110 = vector.extract_strided_slice %91 {offsets = [0, 34], sizes = [4, 256], strides = [1, 1]} : vector<4x290xf32> to vector<4x256xf32>
    %111 = vector.broadcast %24 : vector<1x256xf32> to vector<4x256xf32>
    %112 = arith.mulf %110, %111 : vector<4x256xf32>
    %113 = tpu.concatenate %94, %95, %98, %101, %102, %105, %108, %109, %112 in 0 : vector<4x256xf32>, vector<4x256xf32>, vector<4x256xf32>, vector<4x256xf32>, vector<4x256xf32>, vector<4x256xf32>, vector<4x256xf32>, vector<4x256xf32>, vector<4x256xf32> -> vector<36x256xf32>
    %c0_17 = arith.constant 0 : index
    %c0_18 = arith.constant 0 : index
    %114 = vector.load %arg4[%c0_17, %c0_18] : memref<4x109xf32, #tpu.memory_space<vmem>>, vector<4x109xf32>
    %115 = tpu.concatenate %51, %82, %113, %25 in 0 : vector<36x256xf32>, vector<36x256xf32>, vector<36x256xf32>, vector<1x256xf32> -> vector<109x256xf32>
    %cst_19 = arith.constant dense<0.000000e+00> : vector<4x256xf32>
    %116 = tpu.matmul %114, %115, %cst_19 {dimension_numbers = #tpu.dot_dimension_numbers<[1], [0], [0], [1], [0, 0, 1, 1], [], []>} : vector<4x109xf32>, vector<109x256xf32>, vector<4x256xf32> -> vector<4x256xf32>
    %cst_20 = arith.constant 0.000000e+00 : f32
    %117 = vector.broadcast %cst_20 : f32 to vector<4x256xf32>
    %118 = arith.cmpf oge, %116, %117 : vector<4x256xf32>
    %cst_21 = arith.constant 0.00999999977 : f32
    %119 = vector.broadcast %cst_21 : f32 to vector<4x256xf32>
    %120 = arith.mulf %119, %116 : vector<4x256xf32>
    %121 = arith.select %118, %116, %120 : vector<4x256xi1>, vector<4x256xf32>
    %122 = tpu.concatenate %26, %121, %26 in 1 : vector<4x17xf32>, vector<4x256xf32>, vector<4x17xf32> -> vector<4x290xf32>
    %123 = vector.extract_strided_slice %122 {offsets = [0, 0], sizes = [4, 256], strides = [1, 1]} : vector<4x290xf32> to vector<4x256xf32>
    %124 = vector.broadcast %20 : vector<1x256xf32> to vector<4x256xf32>
    %125 = arith.mulf %123, %124 : vector<4x256xf32>
    %126 = vector.extract_strided_slice %122 {offsets = [0, 1], sizes = [4, 256], strides = [1, 1]} : vector<4x290xf32> to vector<4x256xf32>
    %127 = vector.extract_strided_slice %122 {offsets = [0, 2], sizes = [4, 256], strides = [1, 1]} : vector<4x290xf32> to vector<4x256xf32>
    %128 = vector.broadcast %24 : vector<1x256xf32> to vector<4x256xf32>
    %129 = arith.mulf %127, %128 : vector<4x256xf32>
    %130 = vector.extract_strided_slice %122 {offsets = [0, 16], sizes = [4, 256], strides = [1, 1]} : vector<4x290xf32> to vector<4x256xf32>
    %131 = vector.broadcast %20 : vector<1x256xf32> to vector<4x256xf32>
    %132 = arith.mulf %130, %131 : vector<4x256xf32>
    %133 = vector.extract_strided_slice %122 {offsets = [0, 17], sizes = [4, 256], strides = [1, 1]} : vector<4x290xf32> to vector<4x256xf32>
    %134 = vector.extract_strided_slice %122 {offsets = [0, 18], sizes = [4, 256], strides = [1, 1]} : vector<4x290xf32> to vector<4x256xf32>
    %135 = vector.broadcast %24 : vector<1x256xf32> to vector<4x256xf32>
    %136 = arith.mulf %134, %135 : vector<4x256xf32>
    %137 = vector.extract_strided_slice %122 {offsets = [0, 32], sizes = [4, 256], strides = [1, 1]} : vector<4x290xf32> to vector<4x256xf32>
    %138 = vector.broadcast %20 : vector<1x256xf32> to vector<4x256xf32>
    %139 = arith.mulf %137, %138 : vector<4x256xf32>
    %140 = vector.extract_strided_slice %122 {offsets = [0, 33], sizes = [4, 256], strides = [1, 1]} : vector<4x290xf32> to vector<4x256xf32>
    %141 = vector.extract_strided_slice %122 {offsets = [0, 34], sizes = [4, 256], strides = [1, 1]} : vector<4x290xf32> to vector<4x256xf32>
    %142 = vector.broadcast %24 : vector<1x256xf32> to vector<4x256xf32>
    %143 = arith.mulf %141, %142 : vector<4x256xf32>
    %144 = tpu.concatenate %125, %126, %129, %132, %133, %136, %139, %140, %143 in 0 : vector<4x256xf32>, vector<4x256xf32>, vector<4x256xf32>, vector<4x256xf32>, vector<4x256xf32>, vector<4x256xf32>, vector<4x256xf32>, vector<4x256xf32>, vector<4x256xf32> -> vector<36x256xf32>
    %c0_22 = arith.constant 0 : index
    %c0_23 = arith.constant 0 : index
    %145 = vector.load %arg5[%c0_22, %c0_23] : memref<4x145xf32, #tpu.memory_space<vmem>>, vector<4x145xf32>
    %146 = tpu.concatenate %51, %82, %113, %144, %25 in 0 : vector<36x256xf32>, vector<36x256xf32>, vector<36x256xf32>, vector<36x256xf32>, vector<1x256xf32> -> vector<145x256xf32>
    %cst_24 = arith.constant dense<0.000000e+00> : vector<4x256xf32>
    %147 = tpu.matmul %145, %146, %cst_24 {dimension_numbers = #tpu.dot_dimension_numbers<[1], [0], [0], [1], [0, 0, 1, 1], [], []>} : vector<4x145xf32>, vector<145x256xf32>, vector<4x256xf32> -> vector<4x256xf32>
    %cst_25 = arith.constant 0.000000e+00 : f32
    %148 = vector.broadcast %cst_25 : f32 to vector<4x256xf32>
    %149 = arith.cmpf oge, %147, %148 : vector<4x256xf32>
    %cst_26 = arith.constant 0.00999999977 : f32
    %150 = vector.broadcast %cst_26 : f32 to vector<4x256xf32>
    %151 = arith.mulf %150, %147 : vector<4x256xf32>
    %152 = arith.select %149, %147, %151 : vector<4x256xi1>, vector<4x256xf32>
    %153 = tpu.concatenate %26, %152, %26 in 1 : vector<4x17xf32>, vector<4x256xf32>, vector<4x17xf32> -> vector<4x290xf32>
    %154 = vector.extract_strided_slice %153 {offsets = [0, 0], sizes = [4, 256], strides = [1, 1]} : vector<4x290xf32> to vector<4x256xf32>
    %155 = vector.broadcast %20 : vector<1x256xf32> to vector<4x256xf32>
    %156 = arith.mulf %154, %155 : vector<4x256xf32>
    %157 = vector.extract_strided_slice %153 {offsets = [0, 1], sizes = [4, 256], strides = [1, 1]} : vector<4x290xf32> to vector<4x256xf32>
    %158 = vector.extract_strided_slice %153 {offsets = [0, 2], sizes = [4, 256], strides = [1, 1]} : vector<4x290xf32> to vector<4x256xf32>
    %159 = vector.broadcast %24 : vector<1x256xf32> to vector<4x256xf32>
    %160 = arith.mulf %158, %159 : vector<4x256xf32>
    %161 = vector.extract_strided_slice %153 {offsets = [0, 16], sizes = [4, 256], strides = [1, 1]} : vector<4x290xf32> to vector<4x256xf32>
    %162 = vector.broadcast %20 : vector<1x256xf32> to vector<4x256xf32>
    %163 = arith.mulf %161, %162 : vector<4x256xf32>
    %164 = vector.extract_strided_slice %153 {offsets = [0, 17], sizes = [4, 256], strides = [1, 1]} : vector<4x290xf32> to vector<4x256xf32>
    %165 = vector.extract_strided_slice %153 {offsets = [0, 18], sizes = [4, 256], strides = [1, 1]} : vector<4x290xf32> to vector<4x256xf32>
    %166 = vector.broadcast %24 : vector<1x256xf32> to vector<4x256xf32>
    %167 = arith.mulf %165, %166 : vector<4x256xf32>
    %168 = vector.extract_strided_slice %153 {offsets = [0, 32], sizes = [4, 256], strides = [1, 1]} : vector<4x290xf32> to vector<4x256xf32>
    %169 = vector.broadcast %20 : vector<1x256xf32> to vector<4x256xf32>
    %170 = arith.mulf %168, %169 : vector<4x256xf32>
    %171 = vector.extract_strided_slice %153 {offsets = [0, 33], sizes = [4, 256], strides = [1, 1]} : vector<4x290xf32> to vector<4x256xf32>
    %172 = vector.extract_strided_slice %153 {offsets = [0, 34], sizes = [4, 256], strides = [1, 1]} : vector<4x290xf32> to vector<4x256xf32>
    %173 = vector.broadcast %24 : vector<1x256xf32> to vector<4x256xf32>
    %174 = arith.mulf %172, %173 : vector<4x256xf32>
    %175 = tpu.concatenate %156, %157, %160, %163, %164, %167, %170, %171, %174 in 0 : vector<4x256xf32>, vector<4x256xf32>, vector<4x256xf32>, vector<4x256xf32>, vector<4x256xf32>, vector<4x256xf32>, vector<4x256xf32>, vector<4x256xf32>, vector<4x256xf32> -> vector<36x256xf32>
    %c0_27 = arith.constant 0 : index
    %c0_28 = arith.constant 0 : index
    %176 = vector.load %arg6[%c0_27, %c0_28] : memref<4x181xf32, #tpu.memory_space<vmem>>, vector<4x181xf32>
    %177 = tpu.concatenate %51, %82, %113, %144, %175, %25 in 0 : vector<36x256xf32>, vector<36x256xf32>, vector<36x256xf32>, vector<36x256xf32>, vector<36x256xf32>, vector<1x256xf32> -> vector<181x256xf32>
    %cst_29 = arith.constant dense<0.000000e+00> : vector<4x256xf32>
    %178 = tpu.matmul %176, %177, %cst_29 {dimension_numbers = #tpu.dot_dimension_numbers<[1], [0], [0], [1], [0, 0, 1, 1], [], []>} : vector<4x181xf32>, vector<181x256xf32>, vector<4x256xf32> -> vector<4x256xf32>
    %cst_30 = arith.constant 2.000000e-01 : f32
    %179 = vector.broadcast %cst_30 : f32 to vector<4x256xf32>
    %180 = arith.mulf %178, %179 : vector<4x256xf32>
    %181 = arith.addf %180, %28 : vector<4x256xf32>
    %182 = tpu.concatenate %26, %181, %26 in 1 : vector<4x17xf32>, vector<4x256xf32>, vector<4x17xf32> -> vector<4x290xf32>
    %183 = vector.extract_strided_slice %182 {offsets = [0, 0], sizes = [4, 256], strides = [1, 1]} : vector<4x290xf32> to vector<4x256xf32>
    %184 = vector.broadcast %20 : vector<1x256xf32> to vector<4x256xf32>
    %185 = arith.mulf %183, %184 : vector<4x256xf32>
    %186 = vector.extract_strided_slice %182 {offsets = [0, 1], sizes = [4, 256], strides = [1, 1]} : vector<4x290xf32> to vector<4x256xf32>
    %187 = vector.extract_strided_slice %182 {offsets = [0, 2], sizes = [4, 256], strides = [1, 1]} : vector<4x290xf32> to vector<4x256xf32>
    %188 = vector.broadcast %24 : vector<1x256xf32> to vector<4x256xf32>
    %189 = arith.mulf %187, %188 : vector<4x256xf32>
    %190 = vector.extract_strided_slice %182 {offsets = [0, 16], sizes = [4, 256], strides = [1, 1]} : vector<4x290xf32> to vector<4x256xf32>
    %191 = vector.broadcast %20 : vector<1x256xf32> to vector<4x256xf32>
    %192 = arith.mulf %190, %191 : vector<4x256xf32>
    %193 = vector.extract_strided_slice %182 {offsets = [0, 17], sizes = [4, 256], strides = [1, 1]} : vector<4x290xf32> to vector<4x256xf32>
    %194 = vector.extract_strided_slice %182 {offsets = [0, 18], sizes = [4, 256], strides = [1, 1]} : vector<4x290xf32> to vector<4x256xf32>
    %195 = vector.broadcast %24 : vector<1x256xf32> to vector<4x256xf32>
    %196 = arith.mulf %194, %195 : vector<4x256xf32>
    %197 = vector.extract_strided_slice %182 {offsets = [0, 32], sizes = [4, 256], strides = [1, 1]} : vector<4x290xf32> to vector<4x256xf32>
    %198 = vector.broadcast %20 : vector<1x256xf32> to vector<4x256xf32>
    %199 = arith.mulf %197, %198 : vector<4x256xf32>
    %200 = vector.extract_strided_slice %182 {offsets = [0, 33], sizes = [4, 256], strides = [1, 1]} : vector<4x290xf32> to vector<4x256xf32>
    %201 = vector.extract_strided_slice %182 {offsets = [0, 34], sizes = [4, 256], strides = [1, 1]} : vector<4x290xf32> to vector<4x256xf32>
    %202 = vector.broadcast %24 : vector<1x256xf32> to vector<4x256xf32>
    %203 = arith.mulf %201, %202 : vector<4x256xf32>
    %204 = tpu.concatenate %185, %186, %189, %192, %193, %196, %199, %200, %203 in 0 : vector<4x256xf32>, vector<4x256xf32>, vector<4x256xf32>, vector<4x256xf32>, vector<4x256xf32>, vector<4x256xf32>, vector<4x256xf32>, vector<4x256xf32>, vector<4x256xf32> -> vector<36x256xf32>
    %c0_31 = arith.constant 0 : index
    %c0_32 = arith.constant 0 : index
    %205 = vector.load %arg7[%c0_31, %c0_32] : memref<4x37xf32, #tpu.memory_space<vmem>>, vector<4x37xf32>
    %206 = tpu.concatenate %204, %25 in 0 : vector<36x256xf32>, vector<1x256xf32> -> vector<37x256xf32>
    %cst_33 = arith.constant dense<0.000000e+00> : vector<4x256xf32>
    %207 = tpu.matmul %205, %206, %cst_33 {dimension_numbers = #tpu.dot_dimension_numbers<[1], [0], [0], [1], [0, 0, 1, 1], [], []>} : vector<4x37xf32>, vector<37x256xf32>, vector<4x256xf32> -> vector<4x256xf32>
    %cst_34 = arith.constant 0.000000e+00 : f32
    %208 = vector.broadcast %cst_34 : f32 to vector<4x256xf32>
    %209 = arith.cmpf oge, %207, %208 : vector<4x256xf32>
    %cst_35 = arith.constant 0.00999999977 : f32
    %210 = vector.broadcast %cst_35 : f32 to vector<4x256xf32>
    %211 = arith.mulf %210, %207 : vector<4x256xf32>
    %212 = arith.select %209, %207, %211 : vector<4x256xi1>, vector<4x256xf32>
    %213 = tpu.concatenate %26, %212, %26 in 1 : vector<4x17xf32>, vector<4x256xf32>, vector<4x17xf32> -> vector<4x290xf32>
    %214 = vector.extract_strided_slice %213 {offsets = [0, 0], sizes = [4, 256], strides = [1, 1]} : vector<4x290xf32> to vector<4x256xf32>
    %215 = vector.broadcast %20 : vector<1x256xf32> to vector<4x256xf32>
    %216 = arith.mulf %214, %215 : vector<4x256xf32>
    %217 = vector.extract_strided_slice %213 {offsets = [0, 1], sizes = [4, 256], strides = [1, 1]} : vector<4x290xf32> to vector<4x256xf32>
    %218 = vector.extract_strided_slice %213 {offsets = [0, 2], sizes = [4, 256], strides = [1, 1]} : vector<4x290xf32> to vector<4x256xf32>
    %219 = vector.broadcast %24 : vector<1x256xf32> to vector<4x256xf32>
    %220 = arith.mulf %218, %219 : vector<4x256xf32>
    %221 = vector.extract_strided_slice %213 {offsets = [0, 16], sizes = [4, 256], strides = [1, 1]} : vector<4x290xf32> to vector<4x256xf32>
    %222 = vector.broadcast %20 : vector<1x256xf32> to vector<4x256xf32>
    %223 = arith.mulf %221, %222 : vector<4x256xf32>
    %224 = vector.extract_strided_slice %213 {offsets = [0, 17], sizes = [4, 256], strides = [1, 1]} : vector<4x290xf32> to vector<4x256xf32>
    %225 = vector.extract_strided_slice %213 {offsets = [0, 18], sizes = [4, 256], strides = [1, 1]} : vector<4x290xf32> to vector<4x256xf32>
    %226 = vector.broadcast %24 : vector<1x256xf32> to vector<4x256xf32>
    %227 = arith.mulf %225, %226 : vector<4x256xf32>
    %228 = vector.extract_strided_slice %213 {offsets = [0, 32], sizes = [4, 256], strides = [1, 1]} : vector<4x290xf32> to vector<4x256xf32>
    %229 = vector.broadcast %20 : vector<1x256xf32> to vector<4x256xf32>
    %230 = arith.mulf %228, %229 : vector<4x256xf32>
    %231 = vector.extract_strided_slice %213 {offsets = [0, 33], sizes = [4, 256], strides = [1, 1]} : vector<4x290xf32> to vector<4x256xf32>
    %232 = vector.extract_strided_slice %213 {offsets = [0, 34], sizes = [4, 256], strides = [1, 1]} : vector<4x290xf32> to vector<4x256xf32>
    %233 = vector.broadcast %24 : vector<1x256xf32> to vector<4x256xf32>
    %234 = arith.mulf %232, %233 : vector<4x256xf32>
    %235 = tpu.concatenate %216, %217, %220, %223, %224, %227, %230, %231, %234 in 0 : vector<4x256xf32>, vector<4x256xf32>, vector<4x256xf32>, vector<4x256xf32>, vector<4x256xf32>, vector<4x256xf32>, vector<4x256xf32>, vector<4x256xf32>, vector<4x256xf32> -> vector<36x256xf32>
    %c0_36 = arith.constant 0 : index
    %c0_37 = arith.constant 0 : index
    %236 = vector.load %arg8[%c0_36, %c0_37] : memref<4x73xf32, #tpu.memory_space<vmem>>, vector<4x73xf32>
    %237 = tpu.concatenate %204, %235, %25 in 0 : vector<36x256xf32>, vector<36x256xf32>, vector<1x256xf32> -> vector<73x256xf32>
    %cst_38 = arith.constant dense<0.000000e+00> : vector<4x256xf32>
    %238 = tpu.matmul %236, %237, %cst_38 {dimension_numbers = #tpu.dot_dimension_numbers<[1], [0], [0], [1], [0, 0, 1, 1], [], []>} : vector<4x73xf32>, vector<73x256xf32>, vector<4x256xf32> -> vector<4x256xf32>
    %cst_39 = arith.constant 0.000000e+00 : f32
    %239 = vector.broadcast %cst_39 : f32 to vector<4x256xf32>
    %240 = arith.cmpf oge, %238, %239 : vector<4x256xf32>
    %cst_40 = arith.constant 0.00999999977 : f32
    %241 = vector.broadcast %cst_40 : f32 to vector<4x256xf32>
    %242 = arith.mulf %241, %238 : vector<4x256xf32>
    %243 = arith.select %240, %238, %242 : vector<4x256xi1>, vector<4x256xf32>
    %244 = tpu.concatenate %26, %243, %26 in 1 : vector<4x17xf32>, vector<4x256xf32>, vector<4x17xf32> -> vector<4x290xf32>
    %245 = vector.extract_strided_slice %244 {offsets = [0, 0], sizes = [4, 256], strides = [1, 1]} : vector<4x290xf32> to vector<4x256xf32>
    %246 = vector.broadcast %20 : vector<1x256xf32> to vector<4x256xf32>
    %247 = arith.mulf %245, %246 : vector<4x256xf32>
    %248 = vector.extract_strided_slice %244 {offsets = [0, 1], sizes = [4, 256], strides = [1, 1]} : vector<4x290xf32> to vector<4x256xf32>
    %249 = vector.extract_strided_slice %244 {offsets = [0, 2], sizes = [4, 256], strides = [1, 1]} : vector<4x290xf32> to vector<4x256xf32>
    %250 = vector.broadcast %24 : vector<1x256xf32> to vector<4x256xf32>
    %251 = arith.mulf %249, %250 : vector<4x256xf32>
    %252 = vector.extract_strided_slice %244 {offsets = [0, 16], sizes = [4, 256], strides = [1, 1]} : vector<4x290xf32> to vector<4x256xf32>
    %253 = vector.broadcast %20 : vector<1x256xf32> to vector<4x256xf32>
    %254 = arith.mulf %252, %253 : vector<4x256xf32>
    %255 = vector.extract_strided_slice %244 {offsets = [0, 17], sizes = [4, 256], strides = [1, 1]} : vector<4x290xf32> to vector<4x256xf32>
    %256 = vector.extract_strided_slice %244 {offsets = [0, 18], sizes = [4, 256], strides = [1, 1]} : vector<4x290xf32> to vector<4x256xf32>
    %257 = vector.broadcast %24 : vector<1x256xf32> to vector<4x256xf32>
    %258 = arith.mulf %256, %257 : vector<4x256xf32>
    %259 = vector.extract_strided_slice %244 {offsets = [0, 32], sizes = [4, 256], strides = [1, 1]} : vector<4x290xf32> to vector<4x256xf32>
    %260 = vector.broadcast %20 : vector<1x256xf32> to vector<4x256xf32>
    %261 = arith.mulf %259, %260 : vector<4x256xf32>
    %262 = vector.extract_strided_slice %244 {offsets = [0, 33], sizes = [4, 256], strides = [1, 1]} : vector<4x290xf32> to vector<4x256xf32>
    %263 = vector.extract_strided_slice %244 {offsets = [0, 34], sizes = [4, 256], strides = [1, 1]} : vector<4x290xf32> to vector<4x256xf32>
    %264 = vector.broadcast %24 : vector<1x256xf32> to vector<4x256xf32>
    %265 = arith.mulf %263, %264 : vector<4x256xf32>
    %266 = tpu.concatenate %247, %248, %251, %254, %255, %258, %261, %262, %265 in 0 : vector<4x256xf32>, vector<4x256xf32>, vector<4x256xf32>, vector<4x256xf32>, vector<4x256xf32>, vector<4x256xf32>, vector<4x256xf32>, vector<4x256xf32>, vector<4x256xf32> -> vector<36x256xf32>
    %c0_41 = arith.constant 0 : index
    %c0_42 = arith.constant 0 : index
    %267 = vector.load %arg9[%c0_41, %c0_42] : memref<4x109xf32, #tpu.memory_space<vmem>>, vector<4x109xf32>
    %268 = tpu.concatenate %204, %235, %266, %25 in 0 : vector<36x256xf32>, vector<36x256xf32>, vector<36x256xf32>, vector<1x256xf32> -> vector<109x256xf32>
    %cst_43 = arith.constant dense<0.000000e+00> : vector<4x256xf32>
    %269 = tpu.matmul %267, %268, %cst_43 {dimension_numbers = #tpu.dot_dimension_numbers<[1], [0], [0], [1], [0, 0, 1, 1], [], []>} : vector<4x109xf32>, vector<109x256xf32>, vector<4x256xf32> -> vector<4x256xf32>
    %cst_44 = arith.constant 0.000000e+00 : f32
    %270 = vector.broadcast %cst_44 : f32 to vector<4x256xf32>
    %271 = arith.cmpf oge, %269, %270 : vector<4x256xf32>
    %cst_45 = arith.constant 0.00999999977 : f32
    %272 = vector.broadcast %cst_45 : f32 to vector<4x256xf32>
    %273 = arith.mulf %272, %269 : vector<4x256xf32>
    %274 = arith.select %271, %269, %273 : vector<4x256xi1>, vector<4x256xf32>
    %275 = tpu.concatenate %26, %274, %26 in 1 : vector<4x17xf32>, vector<4x256xf32>, vector<4x17xf32> -> vector<4x290xf32>
    %276 = vector.extract_strided_slice %275 {offsets = [0, 0], sizes = [4, 256], strides = [1, 1]} : vector<4x290xf32> to vector<4x256xf32>
    %277 = vector.broadcast %20 : vector<1x256xf32> to vector<4x256xf32>
    %278 = arith.mulf %276, %277 : vector<4x256xf32>
    %279 = vector.extract_strided_slice %275 {offsets = [0, 1], sizes = [4, 256], strides = [1, 1]} : vector<4x290xf32> to vector<4x256xf32>
    %280 = vector.extract_strided_slice %275 {offsets = [0, 2], sizes = [4, 256], strides = [1, 1]} : vector<4x290xf32> to vector<4x256xf32>
    %281 = vector.broadcast %24 : vector<1x256xf32> to vector<4x256xf32>
    %282 = arith.mulf %280, %281 : vector<4x256xf32>
    %283 = vector.extract_strided_slice %275 {offsets = [0, 16], sizes = [4, 256], strides = [1, 1]} : vector<4x290xf32> to vector<4x256xf32>
    %284 = vector.broadcast %20 : vector<1x256xf32> to vector<4x256xf32>
    %285 = arith.mulf %283, %284 : vector<4x256xf32>
    %286 = vector.extract_strided_slice %275 {offsets = [0, 17], sizes = [4, 256], strides = [1, 1]} : vector<4x290xf32> to vector<4x256xf32>
    %287 = vector.extract_strided_slice %275 {offsets = [0, 18], sizes = [4, 256], strides = [1, 1]} : vector<4x290xf32> to vector<4x256xf32>
    %288 = vector.broadcast %24 : vector<1x256xf32> to vector<4x256xf32>
    %289 = arith.mulf %287, %288 : vector<4x256xf32>
    %290 = vector.extract_strided_slice %275 {offsets = [0, 32], sizes = [4, 256], strides = [1, 1]} : vector<4x290xf32> to vector<4x256xf32>
    %291 = vector.broadcast %20 : vector<1x256xf32> to vector<4x256xf32>
    %292 = arith.mulf %290, %291 : vector<4x256xf32>
    %293 = vector.extract_strided_slice %275 {offsets = [0, 33], sizes = [4, 256], strides = [1, 1]} : vector<4x290xf32> to vector<4x256xf32>
    %294 = vector.extract_strided_slice %275 {offsets = [0, 34], sizes = [4, 256], strides = [1, 1]} : vector<4x290xf32> to vector<4x256xf32>
    %295 = vector.broadcast %24 : vector<1x256xf32> to vector<4x256xf32>
    %296 = arith.mulf %294, %295 : vector<4x256xf32>
    %297 = tpu.concatenate %278, %279, %282, %285, %286, %289, %292, %293, %296 in 0 : vector<4x256xf32>, vector<4x256xf32>, vector<4x256xf32>, vector<4x256xf32>, vector<4x256xf32>, vector<4x256xf32>, vector<4x256xf32>, vector<4x256xf32>, vector<4x256xf32> -> vector<36x256xf32>
    %c0_46 = arith.constant 0 : index
    %c0_47 = arith.constant 0 : index
    %298 = vector.load %arg10[%c0_46, %c0_47] : memref<4x145xf32, #tpu.memory_space<vmem>>, vector<4x145xf32>
    %299 = tpu.concatenate %204, %235, %266, %297, %25 in 0 : vector<36x256xf32>, vector<36x256xf32>, vector<36x256xf32>, vector<36x256xf32>, vector<1x256xf32> -> vector<145x256xf32>
    %cst_48 = arith.constant dense<0.000000e+00> : vector<4x256xf32>
    %300 = tpu.matmul %298, %299, %cst_48 {dimension_numbers = #tpu.dot_dimension_numbers<[1], [0], [0], [1], [0, 0, 1, 1], [], []>} : vector<4x145xf32>, vector<145x256xf32>, vector<4x256xf32> -> vector<4x256xf32>
    %cst_49 = arith.constant 0.000000e+00 : f32
    %301 = vector.broadcast %cst_49 : f32 to vector<4x256xf32>
    %302 = arith.cmpf oge, %300, %301 : vector<4x256xf32>
    %cst_50 = arith.constant 0.00999999977 : f32
    %303 = vector.broadcast %cst_50 : f32 to vector<4x256xf32>
    %304 = arith.mulf %303, %300 : vector<4x256xf32>
    %305 = arith.select %302, %300, %304 : vector<4x256xi1>, vector<4x256xf32>
    %306 = tpu.concatenate %26, %305, %26 in 1 : vector<4x17xf32>, vector<4x256xf32>, vector<4x17xf32> -> vector<4x290xf32>
    %307 = vector.extract_strided_slice %306 {offsets = [0, 0], sizes = [4, 256], strides = [1, 1]} : vector<4x290xf32> to vector<4x256xf32>
    %308 = vector.broadcast %20 : vector<1x256xf32> to vector<4x256xf32>
    %309 = arith.mulf %307, %308 : vector<4x256xf32>
    %310 = vector.extract_strided_slice %306 {offsets = [0, 1], sizes = [4, 256], strides = [1, 1]} : vector<4x290xf32> to vector<4x256xf32>
    %311 = vector.extract_strided_slice %306 {offsets = [0, 2], sizes = [4, 256], strides = [1, 1]} : vector<4x290xf32> to vector<4x256xf32>
    %312 = vector.broadcast %24 : vector<1x256xf32> to vector<4x256xf32>
    %313 = arith.mulf %311, %312 : vector<4x256xf32>
    %314 = vector.extract_strided_slice %306 {offsets = [0, 16], sizes = [4, 256], strides = [1, 1]} : vector<4x290xf32> to vector<4x256xf32>
    %315 = vector.broadcast %20 : vector<1x256xf32> to vector<4x256xf32>
    %316 = arith.mulf %314, %315 : vector<4x256xf32>
    %317 = vector.extract_strided_slice %306 {offsets = [0, 17], sizes = [4, 256], strides = [1, 1]} : vector<4x290xf32> to vector<4x256xf32>
    %318 = vector.extract_strided_slice %306 {offsets = [0, 18], sizes = [4, 256], strides = [1, 1]} : vector<4x290xf32> to vector<4x256xf32>
    %319 = vector.broadcast %24 : vector<1x256xf32> to vector<4x256xf32>
    %320 = arith.mulf %318, %319 : vector<4x256xf32>
    %321 = vector.extract_strided_slice %306 {offsets = [0, 32], sizes = [4, 256], strides = [1, 1]} : vector<4x290xf32> to vector<4x256xf32>
    %322 = vector.broadcast %20 : vector<1x256xf32> to vector<4x256xf32>
    %323 = arith.mulf %321, %322 : vector<4x256xf32>
    %324 = vector.extract_strided_slice %306 {offsets = [0, 33], sizes = [4, 256], strides = [1, 1]} : vector<4x290xf32> to vector<4x256xf32>
    %325 = vector.extract_strided_slice %306 {offsets = [0, 34], sizes = [4, 256], strides = [1, 1]} : vector<4x290xf32> to vector<4x256xf32>
    %326 = vector.broadcast %24 : vector<1x256xf32> to vector<4x256xf32>
    %327 = arith.mulf %325, %326 : vector<4x256xf32>
    %328 = tpu.concatenate %309, %310, %313, %316, %317, %320, %323, %324, %327 in 0 : vector<4x256xf32>, vector<4x256xf32>, vector<4x256xf32>, vector<4x256xf32>, vector<4x256xf32>, vector<4x256xf32>, vector<4x256xf32>, vector<4x256xf32>, vector<4x256xf32> -> vector<36x256xf32>
    %c0_51 = arith.constant 0 : index
    %c0_52 = arith.constant 0 : index
    %329 = vector.load %arg11[%c0_51, %c0_52] : memref<4x181xf32, #tpu.memory_space<vmem>>, vector<4x181xf32>
    %330 = tpu.concatenate %204, %235, %266, %297, %328, %25 in 0 : vector<36x256xf32>, vector<36x256xf32>, vector<36x256xf32>, vector<36x256xf32>, vector<36x256xf32>, vector<1x256xf32> -> vector<181x256xf32>
    %cst_53 = arith.constant dense<0.000000e+00> : vector<4x256xf32>
    %331 = tpu.matmul %329, %330, %cst_53 {dimension_numbers = #tpu.dot_dimension_numbers<[1], [0], [0], [1], [0, 0, 1, 1], [], []>} : vector<4x181xf32>, vector<181x256xf32>, vector<4x256xf32> -> vector<4x256xf32>
    %cst_54 = arith.constant 2.000000e-01 : f32
    %332 = vector.broadcast %cst_54 : f32 to vector<4x256xf32>
    %333 = arith.mulf %331, %332 : vector<4x256xf32>
    %334 = arith.addf %333, %181 : vector<4x256xf32>
    %335 = tpu.concatenate %26, %334, %26 in 1 : vector<4x17xf32>, vector<4x256xf32>, vector<4x17xf32> -> vector<4x290xf32>
    %336 = vector.extract_strided_slice %335 {offsets = [0, 0], sizes = [4, 256], strides = [1, 1]} : vector<4x290xf32> to vector<4x256xf32>
    %337 = vector.broadcast %20 : vector<1x256xf32> to vector<4x256xf32>
    %338 = arith.mulf %336, %337 : vector<4x256xf32>
    %339 = vector.extract_strided_slice %335 {offsets = [0, 1], sizes = [4, 256], strides = [1, 1]} : vector<4x290xf32> to vector<4x256xf32>
    %340 = vector.extract_strided_slice %335 {offsets = [0, 2], sizes = [4, 256], strides = [1, 1]} : vector<4x290xf32> to vector<4x256xf32>
    %341 = vector.broadcast %24 : vector<1x256xf32> to vector<4x256xf32>
    %342 = arith.mulf %340, %341 : vector<4x256xf32>
    %343 = vector.extract_strided_slice %335 {offsets = [0, 16], sizes = [4, 256], strides = [1, 1]} : vector<4x290xf32> to vector<4x256xf32>
    %344 = vector.broadcast %20 : vector<1x256xf32> to vector<4x256xf32>
    %345 = arith.mulf %343, %344 : vector<4x256xf32>
    %346 = vector.extract_strided_slice %335 {offsets = [0, 17], sizes = [4, 256], strides = [1, 1]} : vector<4x290xf32> to vector<4x256xf32>
    %347 = vector.extract_strided_slice %335 {offsets = [0, 18], sizes = [4, 256], strides = [1, 1]} : vector<4x290xf32> to vector<4x256xf32>
    %348 = vector.broadcast %24 : vector<1x256xf32> to vector<4x256xf32>
    %349 = arith.mulf %347, %348 : vector<4x256xf32>
    %350 = vector.extract_strided_slice %335 {offsets = [0, 32], sizes = [4, 256], strides = [1, 1]} : vector<4x290xf32> to vector<4x256xf32>
    %351 = vector.broadcast %20 : vector<1x256xf32> to vector<4x256xf32>
    %352 = arith.mulf %350, %351 : vector<4x256xf32>
    %353 = vector.extract_strided_slice %335 {offsets = [0, 33], sizes = [4, 256], strides = [1, 1]} : vector<4x290xf32> to vector<4x256xf32>
    %354 = vector.extract_strided_slice %335 {offsets = [0, 34], sizes = [4, 256], strides = [1, 1]} : vector<4x290xf32> to vector<4x256xf32>
    %355 = vector.broadcast %24 : vector<1x256xf32> to vector<4x256xf32>
    %356 = arith.mulf %354, %355 : vector<4x256xf32>
    %357 = tpu.concatenate %338, %339, %342, %345, %346, %349, %352, %353, %356 in 0 : vector<4x256xf32>, vector<4x256xf32>, vector<4x256xf32>, vector<4x256xf32>, vector<4x256xf32>, vector<4x256xf32>, vector<4x256xf32>, vector<4x256xf32>, vector<4x256xf32> -> vector<36x256xf32>
    %c0_55 = arith.constant 0 : index
    %c0_56 = arith.constant 0 : index
    %358 = vector.load %arg12[%c0_55, %c0_56] : memref<4x37xf32, #tpu.memory_space<vmem>>, vector<4x37xf32>
    %359 = tpu.concatenate %357, %25 in 0 : vector<36x256xf32>, vector<1x256xf32> -> vector<37x256xf32>
    %cst_57 = arith.constant dense<0.000000e+00> : vector<4x256xf32>
    %360 = tpu.matmul %358, %359, %cst_57 {dimension_numbers = #tpu.dot_dimension_numbers<[1], [0], [0], [1], [0, 0, 1, 1], [], []>} : vector<4x37xf32>, vector<37x256xf32>, vector<4x256xf32> -> vector<4x256xf32>
    %cst_58 = arith.constant 0.000000e+00 : f32
    %361 = vector.broadcast %cst_58 : f32 to vector<4x256xf32>
    %362 = arith.cmpf oge, %360, %361 : vector<4x256xf32>
    %cst_59 = arith.constant 0.00999999977 : f32
    %363 = vector.broadcast %cst_59 : f32 to vector<4x256xf32>
    %364 = arith.mulf %363, %360 : vector<4x256xf32>
    %365 = arith.select %362, %360, %364 : vector<4x256xi1>, vector<4x256xf32>
    %366 = tpu.concatenate %26, %365, %26 in 1 : vector<4x17xf32>, vector<4x256xf32>, vector<4x17xf32> -> vector<4x290xf32>
    %367 = vector.extract_strided_slice %366 {offsets = [0, 0], sizes = [4, 256], strides = [1, 1]} : vector<4x290xf32> to vector<4x256xf32>
    %368 = vector.broadcast %20 : vector<1x256xf32> to vector<4x256xf32>
    %369 = arith.mulf %367, %368 : vector<4x256xf32>
    %370 = vector.extract_strided_slice %366 {offsets = [0, 1], sizes = [4, 256], strides = [1, 1]} : vector<4x290xf32> to vector<4x256xf32>
    %371 = vector.extract_strided_slice %366 {offsets = [0, 2], sizes = [4, 256], strides = [1, 1]} : vector<4x290xf32> to vector<4x256xf32>
    %372 = vector.broadcast %24 : vector<1x256xf32> to vector<4x256xf32>
    %373 = arith.mulf %371, %372 : vector<4x256xf32>
    %374 = vector.extract_strided_slice %366 {offsets = [0, 16], sizes = [4, 256], strides = [1, 1]} : vector<4x290xf32> to vector<4x256xf32>
    %375 = vector.broadcast %20 : vector<1x256xf32> to vector<4x256xf32>
    %376 = arith.mulf %374, %375 : vector<4x256xf32>
    %377 = vector.extract_strided_slice %366 {offsets = [0, 17], sizes = [4, 256], strides = [1, 1]} : vector<4x290xf32> to vector<4x256xf32>
    %378 = vector.extract_strided_slice %366 {offsets = [0, 18], sizes = [4, 256], strides = [1, 1]} : vector<4x290xf32> to vector<4x256xf32>
    %379 = vector.broadcast %24 : vector<1x256xf32> to vector<4x256xf32>
    %380 = arith.mulf %378, %379 : vector<4x256xf32>
    %381 = vector.extract_strided_slice %366 {offsets = [0, 32], sizes = [4, 256], strides = [1, 1]} : vector<4x290xf32> to vector<4x256xf32>
    %382 = vector.broadcast %20 : vector<1x256xf32> to vector<4x256xf32>
    %383 = arith.mulf %381, %382 : vector<4x256xf32>
    %384 = vector.extract_strided_slice %366 {offsets = [0, 33], sizes = [4, 256], strides = [1, 1]} : vector<4x290xf32> to vector<4x256xf32>
    %385 = vector.extract_strided_slice %366 {offsets = [0, 34], sizes = [4, 256], strides = [1, 1]} : vector<4x290xf32> to vector<4x256xf32>
    %386 = vector.broadcast %24 : vector<1x256xf32> to vector<4x256xf32>
    %387 = arith.mulf %385, %386 : vector<4x256xf32>
    %388 = tpu.concatenate %369, %370, %373, %376, %377, %380, %383, %384, %387 in 0 : vector<4x256xf32>, vector<4x256xf32>, vector<4x256xf32>, vector<4x256xf32>, vector<4x256xf32>, vector<4x256xf32>, vector<4x256xf32>, vector<4x256xf32>, vector<4x256xf32> -> vector<36x256xf32>
    %c0_60 = arith.constant 0 : index
    %c0_61 = arith.constant 0 : index
    %389 = vector.load %arg13[%c0_60, %c0_61] : memref<4x73xf32, #tpu.memory_space<vmem>>, vector<4x73xf32>
    %390 = tpu.concatenate %357, %388, %25 in 0 : vector<36x256xf32>, vector<36x256xf32>, vector<1x256xf32> -> vector<73x256xf32>
    %cst_62 = arith.constant dense<0.000000e+00> : vector<4x256xf32>
    %391 = tpu.matmul %389, %390, %cst_62 {dimension_numbers = #tpu.dot_dimension_numbers<[1], [0], [0], [1], [0, 0, 1, 1], [], []>} : vector<4x73xf32>, vector<73x256xf32>, vector<4x256xf32> -> vector<4x256xf32>
    %cst_63 = arith.constant 0.000000e+00 : f32
    %392 = vector.broadcast %cst_63 : f32 to vector<4x256xf32>
    %393 = arith.cmpf oge, %391, %392 : vector<4x256xf32>
    %cst_64 = arith.constant 0.00999999977 : f32
    %394 = vector.broadcast %cst_64 : f32 to vector<4x256xf32>
    %395 = arith.mulf %394, %391 : vector<4x256xf32>
    %396 = arith.select %393, %391, %395 : vector<4x256xi1>, vector<4x256xf32>
    %397 = tpu.concatenate %26, %396, %26 in 1 : vector<4x17xf32>, vector<4x256xf32>, vector<4x17xf32> -> vector<4x290xf32>
    %398 = vector.extract_strided_slice %397 {offsets = [0, 0], sizes = [4, 256], strides = [1, 1]} : vector<4x290xf32> to vector<4x256xf32>
    %399 = vector.broadcast %20 : vector<1x256xf32> to vector<4x256xf32>
    %400 = arith.mulf %398, %399 : vector<4x256xf32>
    %401 = vector.extract_strided_slice %397 {offsets = [0, 1], sizes = [4, 256], strides = [1, 1]} : vector<4x290xf32> to vector<4x256xf32>
    %402 = vector.extract_strided_slice %397 {offsets = [0, 2], sizes = [4, 256], strides = [1, 1]} : vector<4x290xf32> to vector<4x256xf32>
    %403 = vector.broadcast %24 : vector<1x256xf32> to vector<4x256xf32>
    %404 = arith.mulf %402, %403 : vector<4x256xf32>
    %405 = vector.extract_strided_slice %397 {offsets = [0, 16], sizes = [4, 256], strides = [1, 1]} : vector<4x290xf32> to vector<4x256xf32>
    %406 = vector.broadcast %20 : vector<1x256xf32> to vector<4x256xf32>
    %407 = arith.mulf %405, %406 : vector<4x256xf32>
    %408 = vector.extract_strided_slice %397 {offsets = [0, 17], sizes = [4, 256], strides = [1, 1]} : vector<4x290xf32> to vector<4x256xf32>
    %409 = vector.extract_strided_slice %397 {offsets = [0, 18], sizes = [4, 256], strides = [1, 1]} : vector<4x290xf32> to vector<4x256xf32>
    %410 = vector.broadcast %24 : vector<1x256xf32> to vector<4x256xf32>
    %411 = arith.mulf %409, %410 : vector<4x256xf32>
    %412 = vector.extract_strided_slice %397 {offsets = [0, 32], sizes = [4, 256], strides = [1, 1]} : vector<4x290xf32> to vector<4x256xf32>
    %413 = vector.broadcast %20 : vector<1x256xf32> to vector<4x256xf32>
    %414 = arith.mulf %412, %413 : vector<4x256xf32>
    %415 = vector.extract_strided_slice %397 {offsets = [0, 33], sizes = [4, 256], strides = [1, 1]} : vector<4x290xf32> to vector<4x256xf32>
    %416 = vector.extract_strided_slice %397 {offsets = [0, 34], sizes = [4, 256], strides = [1, 1]} : vector<4x290xf32> to vector<4x256xf32>
    %417 = vector.broadcast %24 : vector<1x256xf32> to vector<4x256xf32>
    %418 = arith.mulf %416, %417 : vector<4x256xf32>
    %419 = tpu.concatenate %400, %401, %404, %407, %408, %411, %414, %415, %418 in 0 : vector<4x256xf32>, vector<4x256xf32>, vector<4x256xf32>, vector<4x256xf32>, vector<4x256xf32>, vector<4x256xf32>, vector<4x256xf32>, vector<4x256xf32>, vector<4x256xf32> -> vector<36x256xf32>
    %c0_65 = arith.constant 0 : index
    %c0_66 = arith.constant 0 : index
    %420 = vector.load %arg14[%c0_65, %c0_66] : memref<4x109xf32, #tpu.memory_space<vmem>>, vector<4x109xf32>
    %421 = tpu.concatenate %357, %388, %419, %25 in 0 : vector<36x256xf32>, vector<36x256xf32>, vector<36x256xf32>, vector<1x256xf32> -> vector<109x256xf32>
    %cst_67 = arith.constant dense<0.000000e+00> : vector<4x256xf32>
    %422 = tpu.matmul %420, %421, %cst_67 {dimension_numbers = #tpu.dot_dimension_numbers<[1], [0], [0], [1], [0, 0, 1, 1], [], []>} : vector<4x109xf32>, vector<109x256xf32>, vector<4x256xf32> -> vector<4x256xf32>
    %cst_68 = arith.constant 0.000000e+00 : f32
    %423 = vector.broadcast %cst_68 : f32 to vector<4x256xf32>
    %424 = arith.cmpf oge, %422, %423 : vector<4x256xf32>
    %cst_69 = arith.constant 0.00999999977 : f32
    %425 = vector.broadcast %cst_69 : f32 to vector<4x256xf32>
    %426 = arith.mulf %425, %422 : vector<4x256xf32>
    %427 = arith.select %424, %422, %426 : vector<4x256xi1>, vector<4x256xf32>
    %428 = tpu.concatenate %26, %427, %26 in 1 : vector<4x17xf32>, vector<4x256xf32>, vector<4x17xf32> -> vector<4x290xf32>
    %429 = vector.extract_strided_slice %428 {offsets = [0, 0], sizes = [4, 256], strides = [1, 1]} : vector<4x290xf32> to vector<4x256xf32>
    %430 = vector.broadcast %20 : vector<1x256xf32> to vector<4x256xf32>
    %431 = arith.mulf %429, %430 : vector<4x256xf32>
    %432 = vector.extract_strided_slice %428 {offsets = [0, 1], sizes = [4, 256], strides = [1, 1]} : vector<4x290xf32> to vector<4x256xf32>
    %433 = vector.extract_strided_slice %428 {offsets = [0, 2], sizes = [4, 256], strides = [1, 1]} : vector<4x290xf32> to vector<4x256xf32>
    %434 = vector.broadcast %24 : vector<1x256xf32> to vector<4x256xf32>
    %435 = arith.mulf %433, %434 : vector<4x256xf32>
    %436 = vector.extract_strided_slice %428 {offsets = [0, 16], sizes = [4, 256], strides = [1, 1]} : vector<4x290xf32> to vector<4x256xf32>
    %437 = vector.broadcast %20 : vector<1x256xf32> to vector<4x256xf32>
    %438 = arith.mulf %436, %437 : vector<4x256xf32>
    %439 = vector.extract_strided_slice %428 {offsets = [0, 17], sizes = [4, 256], strides = [1, 1]} : vector<4x290xf32> to vector<4x256xf32>
    %440 = vector.extract_strided_slice %428 {offsets = [0, 18], sizes = [4, 256], strides = [1, 1]} : vector<4x290xf32> to vector<4x256xf32>
    %441 = vector.broadcast %24 : vector<1x256xf32> to vector<4x256xf32>
    %442 = arith.mulf %440, %441 : vector<4x256xf32>
    %443 = vector.extract_strided_slice %428 {offsets = [0, 32], sizes = [4, 256], strides = [1, 1]} : vector<4x290xf32> to vector<4x256xf32>
    %444 = vector.broadcast %20 : vector<1x256xf32> to vector<4x256xf32>
    %445 = arith.mulf %443, %444 : vector<4x256xf32>
    %446 = vector.extract_strided_slice %428 {offsets = [0, 33], sizes = [4, 256], strides = [1, 1]} : vector<4x290xf32> to vector<4x256xf32>
    %447 = vector.extract_strided_slice %428 {offsets = [0, 34], sizes = [4, 256], strides = [1, 1]} : vector<4x290xf32> to vector<4x256xf32>
    %448 = vector.broadcast %24 : vector<1x256xf32> to vector<4x256xf32>
    %449 = arith.mulf %447, %448 : vector<4x256xf32>
    %450 = tpu.concatenate %431, %432, %435, %438, %439, %442, %445, %446, %449 in 0 : vector<4x256xf32>, vector<4x256xf32>, vector<4x256xf32>, vector<4x256xf32>, vector<4x256xf32>, vector<4x256xf32>, vector<4x256xf32>, vector<4x256xf32>, vector<4x256xf32> -> vector<36x256xf32>
    %c0_70 = arith.constant 0 : index
    %c0_71 = arith.constant 0 : index
    %451 = vector.load %arg15[%c0_70, %c0_71] : memref<4x145xf32, #tpu.memory_space<vmem>>, vector<4x145xf32>
    %452 = tpu.concatenate %357, %388, %419, %450, %25 in 0 : vector<36x256xf32>, vector<36x256xf32>, vector<36x256xf32>, vector<36x256xf32>, vector<1x256xf32> -> vector<145x256xf32>
    %cst_72 = arith.constant dense<0.000000e+00> : vector<4x256xf32>
    %453 = tpu.matmul %451, %452, %cst_72 {dimension_numbers = #tpu.dot_dimension_numbers<[1], [0], [0], [1], [0, 0, 1, 1], [], []>} : vector<4x145xf32>, vector<145x256xf32>, vector<4x256xf32> -> vector<4x256xf32>
    %cst_73 = arith.constant 0.000000e+00 : f32
    %454 = vector.broadcast %cst_73 : f32 to vector<4x256xf32>
    %455 = arith.cmpf oge, %453, %454 : vector<4x256xf32>
    %cst_74 = arith.constant 0.00999999977 : f32
    %456 = vector.broadcast %cst_74 : f32 to vector<4x256xf32>
    %457 = arith.mulf %456, %453 : vector<4x256xf32>
    %458 = arith.select %455, %453, %457 : vector<4x256xi1>, vector<4x256xf32>
    %459 = tpu.concatenate %26, %458, %26 in 1 : vector<4x17xf32>, vector<4x256xf32>, vector<4x17xf32> -> vector<4x290xf32>
    %460 = vector.extract_strided_slice %459 {offsets = [0, 0], sizes = [4, 256], strides = [1, 1]} : vector<4x290xf32> to vector<4x256xf32>
    %461 = vector.broadcast %20 : vector<1x256xf32> to vector<4x256xf32>
    %462 = arith.mulf %460, %461 : vector<4x256xf32>
    %463 = vector.extract_strided_slice %459 {offsets = [0, 1], sizes = [4, 256], strides = [1, 1]} : vector<4x290xf32> to vector<4x256xf32>
    %464 = vector.extract_strided_slice %459 {offsets = [0, 2], sizes = [4, 256], strides = [1, 1]} : vector<4x290xf32> to vector<4x256xf32>
    %465 = vector.broadcast %24 : vector<1x256xf32> to vector<4x256xf32>
    %466 = arith.mulf %464, %465 : vector<4x256xf32>
    %467 = vector.extract_strided_slice %459 {offsets = [0, 16], sizes = [4, 256], strides = [1, 1]} : vector<4x290xf32> to vector<4x256xf32>
    %468 = vector.broadcast %20 : vector<1x256xf32> to vector<4x256xf32>
    %469 = arith.mulf %467, %468 : vector<4x256xf32>
    %470 = vector.extract_strided_slice %459 {offsets = [0, 17], sizes = [4, 256], strides = [1, 1]} : vector<4x290xf32> to vector<4x256xf32>
    %471 = vector.extract_strided_slice %459 {offsets = [0, 18], sizes = [4, 256], strides = [1, 1]} : vector<4x290xf32> to vector<4x256xf32>
    %472 = vector.broadcast %24 : vector<1x256xf32> to vector<4x256xf32>
    %473 = arith.mulf %471, %472 : vector<4x256xf32>
    %474 = vector.extract_strided_slice %459 {offsets = [0, 32], sizes = [4, 256], strides = [1, 1]} : vector<4x290xf32> to vector<4x256xf32>
    %475 = vector.broadcast %20 : vector<1x256xf32> to vector<4x256xf32>
    %476 = arith.mulf %474, %475 : vector<4x256xf32>
    %477 = vector.extract_strided_slice %459 {offsets = [0, 33], sizes = [4, 256], strides = [1, 1]} : vector<4x290xf32> to vector<4x256xf32>
    %478 = vector.extract_strided_slice %459 {offsets = [0, 34], sizes = [4, 256], strides = [1, 1]} : vector<4x290xf32> to vector<4x256xf32>
    %479 = vector.broadcast %24 : vector<1x256xf32> to vector<4x256xf32>
    %480 = arith.mulf %478, %479 : vector<4x256xf32>
    %481 = tpu.concatenate %462, %463, %466, %469, %470, %473, %476, %477, %480 in 0 : vector<4x256xf32>, vector<4x256xf32>, vector<4x256xf32>, vector<4x256xf32>, vector<4x256xf32>, vector<4x256xf32>, vector<4x256xf32>, vector<4x256xf32>, vector<4x256xf32> -> vector<36x256xf32>
    %c0_75 = arith.constant 0 : index
    %c0_76 = arith.constant 0 : index
    %482 = vector.load %arg16[%c0_75, %c0_76] : memref<4x181xf32, #tpu.memory_space<vmem>>, vector<4x181xf32>
    %483 = tpu.concatenate %357, %388, %419, %450, %481, %25 in 0 : vector<36x256xf32>, vector<36x256xf32>, vector<36x256xf32>, vector<36x256xf32>, vector<36x256xf32>, vector<1x256xf32> -> vector<181x256xf32>
    %cst_77 = arith.constant dense<0.000000e+00> : vector<4x256xf32>
    %484 = tpu.matmul %482, %483, %cst_77 {dimension_numbers = #tpu.dot_dimension_numbers<[1], [0], [0], [1], [0, 0, 1, 1], [], []>} : vector<4x181xf32>, vector<181x256xf32>, vector<4x256xf32> -> vector<4x256xf32>
    %cst_78 = arith.constant 2.000000e-01 : f32
    %485 = vector.broadcast %cst_78 : f32 to vector<4x256xf32>
    %486 = arith.mulf %484, %485 : vector<4x256xf32>
    %487 = arith.addf %486, %334 : vector<4x256xf32>
    %cst_79 = arith.constant 2.000000e-01 : f32
    %488 = vector.broadcast %cst_79 : f32 to vector<4x256xf32>
    %489 = arith.mulf %487, %488 : vector<4x256xf32>
    %490 = arith.addf %489, %28 : vector<4x256xf32>
    %c0_80 = arith.constant 0 : index
    %c0_81 = arith.constant 0 : index
    %c0_82 = arith.constant 0 : index
    %491 = vector.load %arg17[%c0_80, %c0_81, %c0_82] : memref<1x4x256xf32, #tpu.memory_space<vmem>>, vector<1x4x256xf32>
    %492 = vector.shape_cast %491 : vector<1x4x256xf32> to vector<4x256xf32>
    %493 = vector.shape_cast %490 : vector<4x256xf32> to vector<1x4x256xf32>
    tpu.vector_store %arg17[%c0_80, %c0_81, %c0_82], %493 {strides = array<i32>} : memref<1x4x256xf32, #tpu.memory_space<vmem>>, vector<1x4x256xf32>,
    return
  }
  func.func @transform_0(%arg0: i32) -> (i32, i32, i32) {
    %c0_i32 = arith.constant 0 : i32
    %c0_i32_0 = arith.constant 0 : i32
    %c0_i32_1 = arith.constant 0 : i32
    return %arg0, %c0_i32, %c0_i32_0 : i32, i32, i32
  }
  func.func @transform_1(%arg0: i32) -> (i32, i32) {
    %c0_i32 = arith.constant 0 : i32
    %c0_i32_0 = arith.constant 0 : i32
    %c0_i32_1 = arith.constant 0 : i32
    return %c0_i32, %c0_i32_0 : i32, i32
  }
  func.func @transform_2(%arg0: i32) -> (i32, i32) {
    %c0_i32 = arith.constant 0 : i32
    %c0_i32_0 = arith.constant 0 : i32
    %c0_i32_1 = arith.constant 0 : i32
    return %c0_i32, %c0_i32_0 : i32, i32
  }
  func.func @transform_3(%arg0: i32) -> (i32, i32) {
    %c0_i32 = arith.constant 0 : i32
    %c0_i32_0 = arith.constant 0 : i32
    %c0_i32_1 = arith.constant 0 : i32
    return %c0_i32, %c0_i32_0 : i32, i32
  }
  func.func @transform_4(%arg0: i32) -> (i32, i32) {
    %c0_i32 = arith.constant 0 : i32
    %c0_i32_0 = arith.constant 0 : i32
    %c0_i32_1 = arith.constant 0 : i32
    return %c0_i32, %c0_i32_0 : i32, i32
  }
  func.func @transform_5(%arg0: i32) -> (i32, i32) {
    %c0_i32 = arith.constant 0 : i32
    %c0_i32_0 = arith.constant 0 : i32
    %c0_i32_1 = arith.constant 0 : i32
    return %c0_i32, %c0_i32_0 : i32, i32
  }
  func.func @transform_6(%arg0: i32) -> (i32, i32) {
    %c0_i32 = arith.constant 0 : i32
    %c0_i32_0 = arith.constant 0 : i32
    %c0_i32_1 = arith.constant 0 : i32
    return %c0_i32, %c0_i32_0 : i32, i32
  }
  func.func @transform_7(%arg0: i32) -> (i32, i32) {
    %c0_i32 = arith.constant 0 : i32
    %c0_i32_0 = arith.constant 0 : i32
    %c0_i32_1 = arith.constant 0 : i32
    return %c0_i32, %c0_i32_0 : i32, i32
  }
  func.func @transform_8(%arg0: i32) -> (i32, i32) {
    %c0_i32 = arith.constant 0 : i32
    %c0_i32_0 = arith.constant 0 : i32
    %c0_i32_1 = arith.constant 0 : i32
    return %c0_i32, %c0_i32_0 : i32, i32
  }
  func.func @transform_9(%arg0: i32) -> (i32, i32) {
    %c0_i32 = arith.constant 0 : i32
    %c0_i32_0 = arith.constant 0 : i32
    %c0_i32_1 = arith.constant 0 : i32
    return %c0_i32, %c0_i32_0 : i32, i32
  }
  func.func @transform_10(%arg0: i32) -> (i32, i32) {
    %c0_i32 = arith.constant 0 : i32
    %c0_i32_0 = arith.constant 0 : i32
    %c0_i32_1 = arith.constant 0 : i32
    return %c0_i32, %c0_i32_0 : i32, i32
  }
  func.func @transform_11(%arg0: i32) -> (i32, i32) {
    %c0_i32 = arith.constant 0 : i32
    %c0_i32_0 = arith.constant 0 : i32
    %c0_i32_1 = arith.constant 0 : i32
    return %c0_i32, %c0_i32_0 : i32, i32
  }
  func.func @transform_12(%arg0: i32) -> (i32, i32) {
    %c0_i32 = arith.constant 0 : i32
    %c0_i32_0 = arith.constant 0 : i32
    %c0_i32_1 = arith.constant 0 : i32
    return %c0_i32, %c0_i32_0 : i32, i32
  }
  func.func @transform_13(%arg0: i32) -> (i32, i32) {
    %c0_i32 = arith.constant 0 : i32
    %c0_i32_0 = arith.constant 0 : i32
    %c0_i32_1 = arith.constant 0 : i32
    return %c0_i32, %c0_i32_0 : i32, i32
  }
  func.func @transform_14(%arg0: i32) -> (i32, i32) {
    %c0_i32 = arith.constant 0 : i32
    %c0_i32_0 = arith.constant 0 : i32
    %c0_i32_1 = arith.constant 0 : i32
    return %c0_i32, %c0_i32_0 : i32, i32
  }
  func.func @transform_15(%arg0: i32) -> (i32, i32) {
    %c0_i32 = arith.constant 0 : i32
    %c0_i32_0 = arith.constant 0 : i32
    %c0_i32_1 = arith.constant 0 : i32
    return %c0_i32, %c0_i32_0 : i32, i32
  }
  func.func @transform_16(%arg0: i32) -> (i32, i32, i32) {
    %c0_i32 = arith.constant 0 : i32
    %c0_i32_0 = arith.constant 0 : i32
    %c0_i32_1 = arith.constant 0 : i32
    return %arg0, %c0_i32, %c0_i32_0 : i32, i32, i32
  }
}

</mosaic_0001>

<bundles_post_ra>
// kernel: rrdb_forward.1
= control target key start
LH: loop header
LB: loop body
LE: loop exit
PB: predicated region body
PF: predicated region fallthrough
CT: control target
= control target key end

     0   :  { %s4572_s21 = smov 0   ;;  %s6872_s0 = inlined_call_operand.vmem [shape: f32[2,4,256], index: 0, kind: input, shape index: {}]   ;;  %s6873_s1 = inlined_call_operand.vmem [shape: f32[4,37], index: 1, kind: input, shape index: {}]   ;;  %s6874_s2 = inlined_call_operand.vmem [shape: f32[4,73], index: 2, kind: input, shape index: {}]   ;;  %s6875_s3 = inlined_call_operand.vmem [shape: f32[4,109], index: 3, kind: input, shape index: {}]   ;;  %s6876_s4 = inlined_call_operand.vmem [shape: f32[4,145], index: 4, kind: input, shape index: {}]   ;;  %s6877_s5 = inlined_call_operand.vmem [shape: f32[4,181], index: 5, kind: input, shape index: {}]   ;;  %s6878_s6 = inlined_call_operand.vmem [shape: f32[4,37], index: 6, kind: input, shape index: {}]   ;;  %s6879_s7 = inlined_call_operand.vmem [shape: f32[4,73], index: 7, kind: input, shape index: {}]   ;;  %s6880_s8 = inlined_call_operand.vmem [shape: f32[4,109], index: 8, kind: input, shape index: {}]   ;;  %s6881_s9 = inlined_call_operand.vmem [shape: f32[4,145], index: 9, kind: input, shape index: {}]   ;;  %s6882_s10 = inlined_call_operand.vmem [shape: f32[4,181], index: 10, kind: input, shape index: {}]   ;;  %s6883_s11 = inlined_call_operand.vmem [shape: f32[4,37], index: 11, kind: input, shape index: {}]   ;;  %s6884_s12 = inlined_call_operand.vmem [shape: f32[4,73], index: 12, kind: input, shape index: {}]   ;;  %s6885_s13 = inlined_call_operand.vmem [shape: f32[4,109], index: 13, kind: input, shape index: {}]   ;;  %s6886_s14 = inlined_call_operand.vmem [shape: f32[4,145], index: 14, kind: input, shape index: {}]   ;;  %s6887_s15 = inlined_call_operand.vmem [shape: f32[4,181], index: 15, kind: input, shape index: {}]   ;;  %s6888_s16 = inlined_call_operand.vmem [shape: f32[2,4,256], index: 16, kind: output, shape index: {}]  }
   0x1   :  { %6935 = sst [smem:[#allocation14_spill]] %s6872_s0 }
   0x2 LB: > { %s4343_s22 = sadd.s32 4294967295, %s4469_s21   ;;  %p4347_p0 = scmp.ge.s32.totalorder %s4469_s21, 1  ;;  %s4469_s21 = sphi %s4572_s21, %s26_s21  }
   0x3   : > { %p462_p1 = scmp.lt.s32.totalorder %s4469_s21, 3 }
   0x5   : > { %p463_p2 = pnand %p4347_p0, %p462_p1 }
   0x7   : > { %466 = sbr.rel (%p463_p2) target bundleno = 7351 (0x1cb7), region = 84 }
   0xc   : > { %p512_p3 = scmp.lt.s32.totalorder %s4343_s22, 1  ;;  %v522_v0 = vlaneseq  ;;  %v6890_v1 = vmov 0.0   ;;  %s6936_s26 = sld [smem:[#allocation14_spill]]  ;;  %vm568_vm4 = vcmask 138240   ;;  %vm621_vm5 = vcmask 261120  }
   0xd   : > { %842 = vmatprep.mubr.f32.mxu0 %v6890_v1  ;;  %s4472_s28 = smov 17   ;;  %s4473_s29 = smov 34   ;;  %vm583_vm6 = vcmask 15360   ;;  %vm609_vm7 = vcmask 146432   ;;  %vm633_vm8 = vcmask 277504   ;;  %vm597_vm9 = vcmask 130048  }
   0xe   : > { %s6989_s22 = smov (!%p512_p3, %s4343_s22), 1  ;;  %v523_v2 = vand.u32 127, %v522_v0  ;;  %s4474_s30 = smov 32   ;;  %vm725_vm10 = vcmask 785408   ;;  %vm750_vm11 = vcmask 769024   ;;  %vm736_vm12 = vcmask 777216  }
   0xf   : > { %s4403_s23 = sshll.u32 %s6989_s22, 3  ;;  %s4475_s0 = smov 18   ;;  %vm755_vm13 = vcmask 1043456   ;;  %vm771_vm14 = vcmask 1044480   ;;  %vm711_vm15 = vcmask 900096  }
  0x10   : > { %v524_v3 = vadd.s32 128, %v523_v2  ;;  %v529_v4 = vand.u32 15, %v523_v2  ;;  %s4476_s17 = smov 2   ;;  %s4477_s18 = smov 16  }
  0x11   : > { %s4478_s19 = smov 111   ;;  %s4479_s20 = smov 94  }
  0x12   : > { %s4589_s27 = scalar_lea.vmem %s6936_s26, %s4403_s23  ;;  %v536_v6 = vand.u32 15, %v524_v3  ;;  %vm549_vm0 = vcmp.ge.s32.totalorder %v529_v4, 1  ;;  %vm555_vm1 = vcmp.le.s32.totalorder %v529_v4, 14  ;;  %s4480_s24 = smov 96  }
  0x13   : > { %v561_v5 = vld [vmem:[%s4589_s27] sm:$0xff]  ;;  %v4354_v8 = vsel %vm555_vm1, 1.0, %v6890_v1  ;;  %v4597_v9 = vsel %vm549_vm0, 1.0, %v6890_v1  ;;  %s4481_s25 = smov 95   ;;  %s4482_s26 = smov 126   ;;  %vm694_vm0 = vcmask 908288  }
  0x14   : > { %564 = vrot.lane.b32.xlu0 %v561_v5, %s4472_s28  ;;  %v4593_v7 = vcombine.high %v561_v5, %v561_v5  ;;  %vm556_vm2 = vcmp.le.s32.totalorder %v536_v6, 14  ;;  %vm550_vm3 = vcmp.ge.s32.totalorder %v536_v6, 1  ;;  %vm683_vm1 = vcmask 916480  }
  0x15   : > { %v4355_v10 = vsel %vm556_vm2, 1.0, %v6890_v1  ;;  %v4601_v11 = vsel %vm550_vm3, 1.0, %v6890_v1  ;;  %vm666_vm2 = vcmask 1031168   ;;  %vm652_vm3 = vcmask 1039360  }
  0x16   : > { %6937 = vst [vmem:[#allocation2_spill] sm:$0xff] %v4593_v7  ;;  %v4429_v12 = vpack.i.bf16 %v4355_v10, %v4354_v8  ;;  %v4439_v13 = vpack.i.bf16 %v4601_v11, %v4597_v9 }
  0x18   : > { %566 = vrot.lane.b32.xlu0 %v4593_v7, %s4472_s28  ;;  %4430 = vrot.lane.b32.xlu1 %v4429_v12, %s4473_s29  ;;  %s4483_s29 = smov 110  }
  0x1c   : > { %4440 = vrot.lane.b32.xlu0 %v4439_v13, %s4474_s30  ;;  %4435 = vrot.lane.b32.xlu1 %v4429_v12, %s4475_s0  ;;  %s4484_s30 = smov 127   ;;  %s4485_s0 = smov 112  }
  0x20   : > { %4450 = vrot.lane.b32.xlu0 %v4429_v12, %s4476_s17  ;;  %4445 = vrot.lane.b32.xlu1 %v4439_v13, %s4477_s18 }
  0x86   : > { %v565_v14 = vpop.permute.xlu0 %564 }
  0x87   : > { %v4608_v15 = vsel %vm568_vm4, 0.0, %v565_v14 }
  0x88   : > { %688 = vrot.lane.b32.xlu0 %v4608_v15, %s4478_s19  ;;  %v643_v24 = vrot.slane %v4608_v15, 4 }
  0x8a   : > { %v567_v16 = vpop.permute.xlu0 %566  ;;  %v4431_v17 = vpop.permute.xlu1 %4430 }
  0x8b   : > { %v4612_v18 = vunpack.i.l.bf16 %v4431_v17  ;;  %v4629_v26 = vsel %vm568_vm4, %v565_v14, %v567_v16  ;;  %v4634_v28 = vsel %vm568_vm4, %v567_v16, 0.0  ;;  %v4640_v30 = vunpack.i.h.bf16 %v4431_v17 }
  0x8c   : > { %v645_v35 = vrot.slane %v4634_v28, 4  ;;  %v644_v38 = vrot.slane %v4629_v26, 4 }
  0x8d   : > { %v638_v20 = vmul.f32 %v4612_v18, %v4608_v15  ;;  %v640_v34 = vmul.f32 %v4640_v30, %v4634_v28  ;;  %v4691_v51 = vsel %vm633_vm8, %v4612_v18, %v4640_v30  ;;  %vm1039_vm8 = vcmask 1040384  }
  0x8e   : > { %v4441_v19 = vpop.permute.xlu0 %4440  ;;  %v4436_v29 = vpop.permute.xlu1 %4435  ;;  %v639_v54 = vmul.f32 %v4691_v51, %v4629_v26 }
  0x8f   : > { %v4616_v21 = vunpack.i.l.bf16 %v4441_v19  ;;  %744 = vrot.lane.b32.xlu1 %v638_v20, %s4479_s20  ;;  %v4631_v27 = vunpack.i.h.bf16 %v4441_v19  ;;  %v4644_v32 = vunpack.i.l.bf16 %v4436_v29  ;;  %v4664_v42 = vunpack.i.h.bf16 %v4436_v29 }
  0x91   : > { %v626_v22 = vmul.f32 %v4616_v21, %v4608_v15  ;;  %6938 = vst [vmem:[#allocation3_spill] sm:$0xff] %v4644_v32  ;;  %v628_v33 = vmul.f32 %v4631_v27, %v4634_v28  ;;  %v614_v36 = vmul.f32 %v4644_v32, %v4608_v15  ;;  %6941 = vst [vmem:[#allocation6_spill] sm:$0xff] %v4664_v42 }
  0x92   : > { %v4451_v23 = vpop.permute.xlu0 %4450  ;;  %v4446_v37 = vpop.permute.xlu1 %4445  ;;  %v4670_v44 = vsel %vm621_vm5, %v4616_v21, %v4631_v27  ;;  %v4686_v50 = vsel %vm609_vm7, %v4644_v32, %v4664_v42  ;;  %v616_v55 = vmul.f32 %v4664_v42, %v4634_v28  ;;  %vm6911_vm5 = vcmask 302080  }
  0x93   : > { %719 = vrot.lane.b32.xlu0 %v626_v22, %s4480_s24  ;;  %730 = vrot.lane.b32.xlu1 %v643_v24, %s4481_s25  ;;  %v4626_v25 = vunpack.i.l.bf16 %v4451_v23  ;;  %v4658_v39 = vunpack.i.h.bf16 %v4451_v23  ;;  %v4660_v40 = vunpack.i.l.bf16 %v4446_v37  ;;  %v702_v41 = vrot.slane %v614_v36, 4  ;;  %6942 = vst [vmem:[#allocation7_spill] sm:$0xff] %v4670_v44  ;;  %6945 = vst [vmem:[#allocation10_spill] sm:$0xff] %v4686_v50 }
  0x94   : > { %v627_v46 = vmul.f32 %v4670_v44, %v4629_v26  ;;  %v4678_v47 = vunpack.i.h.bf16 %v4446_v37  ;;  %v615_v53 = vmul.f32 %v4686_v50, %v4629_v26  ;;  %v704_v59 = vrot.slane %v616_v55, 4 }
  0x95   : > { %v588_v31 = vmul.f32 %v4626_v25, %v4608_v15  ;;  %6939 = vst [vmem:[#allocation4_spill] sm:$0xff] %v4658_v39  ;;  %6940 = vst [vmem:[#allocation5_spill] sm:$0xff] %v4660_v40  ;;  %v590_v43 = vmul.f32 %v4658_v39, %v4634_v28  ;;  %v602_v45 = vmul.f32 %v4660_v40, %v4608_v15 }
  0x96   : > { %6943 = vst [vmem:[#allocation8_spill] sm:$0xff] %v4678_v47  ;;  %v4682_v49 = vsel %vm583_vm6, %v4626_v25, %v4658_v39  ;;  %v4704_v56 = vsel %vm597_vm9, %v4660_v40, %v4678_v47  ;;  %v703_v57 = vrot.slane %v615_v53, 4  ;;  %v604_v60 = vmul.f32 %v4678_v47, %v4634_v28 }
  0x97   : > { %690 = vrot.lane.b32.xlu0 %v4629_v26, %s4478_s19  ;;  %692 = vrot.lane.b32.xlu1 %v4634_v28, %s4478_s19  ;;  %v674_v48 = vrot.slane %v602_v45, 4  ;;  %6944 = vst [vmem:[#allocation9_spill] sm:$0xff] %v4682_v49  ;;  %v589_v52 = vmul.f32 %v4682_v49, %v4629_v26  ;;  %6946 = vst [vmem:[#allocation11_spill] sm:$0xff] %v4704_v56  ;;  %v603_v58 = vmul.f32 %v4704_v56, %v4629_v26  ;;  %vm6889_vm9 = vcmask 596992  }
  0x98   : > { %v676_v62 = vrot.slane %v604_v60, 4 }
  0x99   : > { %v675_v61 = vrot.slane %v603_v58, 4 }
  0x9b   : > { %660 = vrot.lane.b32.xlu0 %v588_v31, %s4482_s26  ;;  %723 = vrot.lane.b32.xlu1 %v628_v33, %s4480_s24 }
  0x9f   : > { %748 = vrot.lane.b32.xlu0 %v640_v34, %s4479_s20  ;;  %734 = vrot.lane.b32.xlu1 %v645_v35, %s4481_s25 }
  0xa3   : > { %732 = vrot.lane.b32.xlu0 %v644_v38, %s4481_s25  ;;  %705 = vrot.lane.b32.xlu1 %v702_v41, %s4483_s29 }
  0xa7   : > { %648 = vrot.lane.b32.xlu0 %v644_v38, %s4484_s30  ;;  %664 = vrot.lane.b32.xlu1 %v590_v43, %s4482_s26 }
  0xab   : > { %721 = vrot.lane.b32.xlu0 %v627_v46, %s4480_s24  ;;  %677 = vrot.lane.b32.xlu1 %v674_v48, %s4485_s0 }
  0xaf   : > { %662 = vrot.lane.b32.xlu0 %v589_v52, %s4482_s26  ;;  %746 = vrot.lane.b32.xlu1 %v639_v54, %s4479_s20 }
  0xb3   : > { %707 = vrot.lane.b32.xlu0 %v703_v57, %s4483_s29  ;;  %709 = vrot.lane.b32.xlu1 %v704_v59, %s4483_s29 }
  0xb7   : > { %679 = vrot.lane.b32.xlu0 %v675_v61, %s4485_s0  ;;  %681 = vrot.lane.b32.xlu1 %v676_v62, %s4485_s0 }
  0xbb   : > { %646 = vrot.lane.b32.xlu0 %v643_v24, %s4484_s30  ;;  %650 = vrot.lane.b32.xlu1 %v645_v35, %s4484_s30 }
  0xfa   : > { %v689_v63 = vpop.permute.xlu0 %688 }
 0x101   : > { %v745_v0 = vpop.permute.xlu1 %744 }
 0x105   : > { %v720_v2 = vpop.permute.xlu0 %719  ;;  %v731_v3 = vpop.permute.xlu1 %730 }
 0x109   : > { %v691_v4 = vpop.permute.xlu0 %690  ;;  %v693_v5 = vpop.permute.xlu1 %692 }
 0x10a   : > { %v696_v45 = vsel %vm694_vm0, %v691_v4, %v693_v5  ;;  %v695_v52 = vsel %vm694_vm0, %v689_v63, %v691_v4  ;;  %v575_v5 = vmul.f32 %v4597_v9, %v4608_v15 }
 0x10d   : > { %v661_v6 = vpop.permute.xlu0 %660  ;;  %v724_v8 = vpop.permute.xlu1 %723 }
 0x111   : > { %v749_v10 = vpop.permute.xlu0 %748  ;;  %v735_v12 = vpop.permute.xlu1 %734 }
 0x115   : > { %v733_v13 = vpop.permute.xlu0 %732  ;;  %v706_v14 = vpop.permute.xlu1 %705 }
 0x116   : > { %v738_v35 = vsel %vm736_vm12, %v733_v13, %v735_v12  ;;  %v737_v37 = vsel %vm736_vm12, %v731_v3, %v733_v13  ;;  %v576_v3 = vmul.f32 %v4601_v11, %v4629_v26 }
 0x119   : > { %v649_v16 = vpop.permute.xlu0 %648  ;;  %v665_v17 = vpop.permute.xlu1 %664 }
 0x11d   : > { %v722_v19 = vpop.permute.xlu0 %721  ;;  %v678_v20 = vpop.permute.xlu1 %677 }
 0x11e   : > { %v727_v24 = vsel %vm725_vm10, %v722_v19, %v724_v8  ;;  %v726_v31 = vsel %vm725_vm10, %v720_v2, %v722_v19 }
 0x11f   : > { %v4738_v43 = vsel %vm755_vm13, %v727_v24, %v738_v35  ;;  %v4744_v48 = vsel %vm755_vm13, %v726_v31, %v737_v37  ;;  %v6892_v37 = vmov 1.0  }
 0x121   : > { %v663_v22 = vpop.permute.xlu0 %662  ;;  %v747_v23 = vpop.permute.xlu1 %746 }
 0x122   : > { %v4722_v28 = vsel %vm750_vm11, %v747_v23, %v749_v10  ;;  %v4725_v29 = vsel %vm750_vm11, %v745_v0, %v747_v23  ;;  %v668_v59 = vsel %vm666_vm2, %v663_v22, %v665_v17  ;;  %v667_v61 = vsel %vm666_vm2, %v661_v6, %v663_v22  ;;  %v764_v10 = vld [vmem:[%s6873_s1] sm:$0xf] }
 0x123   : > { %v766_v33 = vsel %vm755_vm13, %v4722_v28, 1.0  ;;  %v765_v34 = vsel %vm755_vm13, %v4725_v29, 1.0 }
 0x124   : > { %4356 = vmatprep.subr.msk.mxu0 %vm771_vm14, %v766_v33 }
 0x125   : > { %v708_v36 = vpop.permute.xlu0 %707  ;;  %v710_v41 = vpop.permute.xlu1 %709  ;;  %4357 = vmatpush1.msk.msra.mxu0 %vm771_vm14, %v765_v34 }
 0x126   : > { %v712_v38 = vsel %vm711_vm15, %v706_v14, %v708_v36  ;;  %v713_v46 = vsel %vm711_vm15, %v708_v36, %v710_v41  ;;  %802 = vmatprep.subr.mxu0 %v4738_v43 }
 0x127   : > { %v4748_v53 = vsel %vm755_vm13, %v696_v45, %v713_v46  ;;  %803 = vmatpush1.msra.mxu0 %v4744_v48  ;;  %v4753_v55 = vsel %vm755_vm13, %v695_v52, %v712_v38 }
 0x128   : > { %804 = vmatprep.subr.mxu0 %v4748_v53 }
 0x129   : > { %v680_v54 = vpop.permute.xlu0 %679  ;;  %v682_v58 = vpop.permute.xlu1 %681  ;;  %805 = vmatpush1.msra.mxu0 %v4753_v55 }
 0x12a   : > { %v684_v57 = vsel %vm683_vm1, %v678_v20, %v680_v54  ;;  %v685_v60 = vsel %vm683_vm1, %v680_v54, %v682_v58 }
 0x12b   : > { %v4761_v62 = vsel %vm755_vm13, %v668_v59, %v685_v60  ;;  %v4765_v0 = vsel %vm755_vm13, %v667_v61, %v684_v57 }
 0x12c   : > { %806 = vmatprep.subr.mxu0 %v4761_v62 }
 0x12d   : > { %v647_v63 = vpop.permute.xlu0 %646  ;;  %v651_v4 = vpop.permute.xlu1 %650  ;;  %807 = vmatpush1.msra.mxu0 %v4765_v0 }
 0x12e   : > { %v653_v2 = vsel %vm652_vm3, %v647_v63, %v649_v16  ;;  %v654_v6 = vsel %vm652_vm3, %v649_v16, %v651_v4 }
 0x12f   : > { %v4775_v8 = vsel %vm755_vm13, %v576_v3, %v654_v6  ;;  %v4781_v12 = vsel %vm755_vm13, %v575_v5, %v653_v2 }
 0x130   : > { %808 = vmatprep.subr.mxu0 %v4775_v8 }
 0x131   : > { %809 = vmatpush1.msra.mxu0 %v4781_v12 }
 0x132   : > { %4358 = vmatmul.mubr.msk.f32.vlgmr.msra.gmra.mxu0 %vm6911_vm5, %v764_v10  ;;  %4359 = vmatprep.subr.msk.mxu0 %vm1039_vm8, %v6892_v37 }
 0x133   : > { %1107 = vmatprep.mubr.f32.mxu0 %v6890_v1  ;;  %4360 = vmatpush1.msk.msra.mxu0 %vm1039_vm8, %v6892_v37 }
 0x1f2   : > { %v844_v15 = vpop.f32.mrf.mxu0 }
 0x1f3   : > { %vm849_vm6 = vcmp.ge.f32.partialorder %v844_v15, 0.0  ;;  %v851_v26 = vmul.f32 0.01, %v844_v15 }
 0x1f4   : > { %v846_v13 = vpop.f32.mrf.mxu0 }
 0x1f5   : > { %vm850_vm7 = vcmp.ge.f32.partialorder %v846_v13, 0.0  ;;  %v852_v14 = vmul.f32 0.01, %v846_v13  ;;  %v853_v16 = vsel %vm849_vm6, %v844_v15, %v851_v26 }
 0x1f6   : > { %857 = vrot.lane.b32.xlu1 %v853_v16, %s4472_s28 }
 0x1f7   : > { %v854_v17 = vsel %vm850_vm7, %v846_v13, %v852_v14 }
 0x1f8   : > { %859 = vrot.lane.b32.xlu0 %v854_v17, %s4472_s28 }
 0x268   : > { %v858_v19 = vpop.permute.xlu1 %857 }
 0x269   : > { %v4790_v20 = vsel %vm568_vm4, 0.0, %v858_v19 }
 0x26a   : > { %928 = vrot.lane.b32.xlu0 %v4790_v20, %s4478_s19  ;;  %v878_v22 = vmul.f32 %v4616_v21, %v4790_v20  ;;  %v860_v23 = vpop.permute.xlu0 %859  ;;  %v886_v24 = vrot.slane %v4790_v20, 4  ;;  %v881_v34 = vmul.f32 %v4612_v18, %v4790_v20  ;;  %v869_v35 = vmul.f32 %v4626_v25, %v4790_v20 }
 0x26b   : > { %v4800_v31 = vsel %vm568_vm4, %v858_v19, %v860_v23  ;;  %v866_v33 = vsel %vm568_vm4, %v860_v23, 0.0  ;;  %v875_v52 = vmul.f32 %v4644_v32, %v4790_v20  ;;  %v872_v60 = vmul.f32 %v4660_v40, %v4790_v20 }
 0x26c   : > { %957 = vrot.lane.b32.xlu1 %v878_v22, %s4480_s24  ;;  %v879_v36 = vmul.f32 %v4800_v31, %v4670_v44  ;;  %v880_v38 = vmul.f32 %v4631_v27, %v866_v33  ;;  %v887_v41 = vrot.slane %v4800_v31, 4  ;;  %v888_v45 = vrot.slane %v866_v33, 4 }
 0x26d   : > { %v882_v46 = vmul.f32 %v4800_v31, %v4691_v51  ;;  %v883_v54 = vmul.f32 %v4640_v30, %v866_v33  ;;  %v941_v57 = vrot.slane %v875_v52, 4  ;;  %v870_v58 = vmul.f32 %v4800_v31, %v4682_v49 }
 0x26e   : > { %967 = vrot.lane.b32.xlu0 %v886_v24, %s4481_s25  ;;  %v871_v59 = vmul.f32 %v4658_v39, %v866_v33  ;;  %v877_v61 = vmul.f32 %v4664_v42, %v866_v33  ;;  %v915_v63 = vrot.slane %v872_v60, 4  ;;  %v876_v2 = vmul.f32 %v4800_v31, %v4686_v50 }
 0x26f   : > { %v873_v4 = vmul.f32 %v4800_v31, %v4704_v56  ;;  %v874_v6 = vmul.f32 %v4678_v47, %v866_v33 }
 0x270   : > { %930 = vrot.lane.b32.xlu1 %v4800_v31, %s4478_s19  ;;  %v943_v3 = vrot.slane %v877_v61, 4  ;;  %v942_v5 = vrot.slane %v876_v2, 4 }
 0x271   : > { %v916_v10 = vrot.slane %v873_v4, 4  ;;  %v917_v15 = vrot.slane %v874_v6, 4 }
 0x272   : > { %932 = vrot.lane.b32.xlu0 %v866_v33, %s4478_s19 }
 0x274   : > { %980 = vrot.lane.b32.xlu1 %v881_v34, %s4479_s20 }
 0x276   : > { %902 = vrot.lane.b32.xlu0 %v869_v35, %s4482_s26 }
 0x278   : > { %959 = vrot.lane.b32.xlu1 %v879_v36, %s4480_s24 }
 0x27a   : > { %961 = vrot.lane.b32.xlu0 %v880_v38, %s4480_s24 }
 0x27c   : > { %969 = vrot.lane.b32.xlu1 %v887_v41, %s4481_s25 }
 0x27e   : > { %971 = vrot.lane.b32.xlu0 %v888_v45, %s4481_s25 }
 0x280   : > { %982 = vrot.lane.b32.xlu1 %v882_v46, %s4479_s20 }
 0x282   : > { %984 = vrot.lane.b32.xlu0 %v883_v54, %s4479_s20 }
 0x284   : > { %944 = vrot.lane.b32.xlu1 %v941_v57, %s4483_s29 }
 0x286   : > { %904 = vrot.lane.b32.xlu0 %v870_v58, %s4482_s26 }
 0x288   : > { %906 = vrot.lane.b32.xlu1 %v871_v59, %s4482_s26 }
 0x28a   : > { %891 = vrot.lane.b32.xlu0 %v887_v41, %s4484_s30 }
 0x28c   : > { %918 = vrot.lane.b32.xlu1 %v915_v63, %s4485_s0 }
 0x28e   : > { %948 = vrot.lane.b32.xlu0 %v943_v3, %s4483_s29 }
 0x290   : > { %946 = vrot.lane.b32.xlu1 %v942_v5, %s4483_s29 }
 0x292   : > { %920 = vrot.lane.b32.xlu0 %v916_v10, %s4485_s0 }
 0x294   : > { %922 = vrot.lane.b32.xlu1 %v917_v15, %s4485_s0 }
 0x296   : > { %889 = vrot.lane.b32.xlu0 %v886_v24, %s4484_s30 }
 0x298   : > { %893 = vrot.lane.b32.xlu1 %v888_v45, %s4484_s30 }
 0x2dc   : > { %v929_v26 = vpop.permute.xlu0 %928 }
 0x2de   : > { %v958_v13 = vpop.permute.xlu1 %957 }
 0x2e0   : > { %v968_v14 = vpop.permute.xlu0 %967 }
 0x2e2   : > { %v931_v16 = vpop.permute.xlu1 %930 }
 0x2e4   : > { %v933_v17 = vpop.permute.xlu0 %932 }
 0x2e6   : > { %v981_v19 = vpop.permute.xlu1 %980 }
 0x2e8   : > { %v903_v22 = vpop.permute.xlu0 %902 }
 0x2ea   : > { %v960_v23 = vpop.permute.xlu1 %959 }
 0x2eb   : > { %v963_v45 = vsel %vm725_vm10, %v958_v13, %v960_v23 }
 0x2ec   : > { %v962_v33 = vpop.permute.xlu0 %961 }
 0x2ed   : > { %v964_v41 = vsel %vm725_vm10, %v960_v23, %v962_v33  ;;  %v935_v23 = vsel %vm694_vm0, %v931_v16, %v933_v17 }
 0x2ee   : > { %v970_v34 = vpop.permute.xlu1 %969 }
 0x2ef   : > { %v973_v36 = vsel %vm736_vm12, %v968_v14, %v970_v34 }
 0x2f0   : > { %v972_v35 = vpop.permute.xlu0 %971  ;;  %v994_v54 = vsel %vm755_vm13, %v963_v45, %v973_v36 }
 0x2f1   : > { %v974_v38 = vsel %vm736_vm12, %v970_v34, %v972_v35  ;;  %v1015_v2 = vrot.slane %v994_v54, 4 }
 0x2f2   : > { %v983_v24 = vpop.permute.xlu1 %982  ;;  %v995_v46 = vsel %vm755_vm13, %v964_v41, %v974_v38 }
 0x2f3   : > { %v986_v52 = vsel %vm750_vm11, %v981_v19, %v983_v24  ;;  %v1017_v60 = vrot.slane %v995_v46, 4  ;;  %v934_v19 = vsel %vm694_vm0, %v929_v26, %v931_v16 }
 0x2f4   : > { %v985_v57 = vpop.permute.xlu0 %984  ;;  %v1019_v58 = vrot.slane %v986_v52, 4 }
 0x2f5   : > { %v987_v59 = vsel %vm750_vm11, %v983_v24, %v985_v57 }
 0x2f6   : > { %v1021_v61 = vrot.slane %v987_v59, 4  ;;  %v945_v63 = vpop.permute.xlu1 %944  ;;  %v4866_v5 = vsel %vm755_vm13, %v1015_v2, %v1019_v58  ;;  %v867_v59 = vmul.f32 %v4597_v9, %v4790_v20 }
 0x2f8   : > { %v905_v3 = vpop.permute.xlu0 %904  ;;  %v4862_v4 = vsel %vm755_vm13, %v1017_v60, %v1021_v61 }
 0x2f9   : > { %1057 = vmatprep.subr.mxu0 %v4862_v4  ;;  %v908_v41 = vsel %vm666_vm2, %v903_v22, %v905_v3 }
 0x2fa   : > { %v907_v6 = vpop.permute.xlu1 %906  ;;  %1058 = vmatpush1.msra.mxu0 %v4866_v5 }
 0x2fb   : > { %v909_v16 = vsel %vm666_vm2, %v905_v3, %v907_v6 }
 0x2fc   : > { %v892_v10 = vpop.permute.xlu0 %891 }
 0x2fe   : > { %v919_v15 = vpop.permute.xlu1 %918 }
 0x300   : > { %v949_v13 = vpop.permute.xlu0 %948 }
 0x302   : > { %v947_v14 = vpop.permute.xlu1 %946 }
 0x303   : > { %v950_v33 = vsel %vm711_vm15, %v945_v63, %v947_v14  ;;  %v951_v34 = vsel %vm711_vm15, %v947_v14, %v949_v13 }
 0x304   : > { %v992_v35 = vsel %vm755_vm13, %v934_v19, %v950_v33  ;;  %v993_v36 = vsel %vm755_vm13, %v935_v23, %v951_v34  ;;  %v921_v38 = vpop.permute.xlu0 %920 }
 0x305   : > { %v1011_v24 = vrot.slane %v992_v35, 4  ;;  %v1013_v45 = vrot.slane %v993_v36, 4  ;;  %v924_v46 = vsel %vm683_vm1, %v919_v15, %v921_v38 }
 0x306   : > { %v990_v52 = vsel %vm755_vm13, %v908_v41, %v924_v46  ;;  %v923_v26 = vpop.permute.xlu1 %922 }
 0x307   : > { %v925_v17 = vsel %vm683_vm1, %v921_v38, %v923_v26  ;;  %v4881_v54 = vsel %vm755_vm13, %v1013_v45, %v1017_v60  ;;  %v4884_v57 = vsel %vm755_vm13, %v1011_v24, %v1015_v2  ;;  %v1007_v58 = vrot.slane %v990_v52, 4 }
 0x308   : > { %v991_v22 = vsel %vm755_vm13, %v909_v16, %v925_v17  ;;  %1059 = vmatprep.subr.mxu0 %v4881_v54  ;;  %v890_v61 = vpop.permute.xlu0 %889  ;;  %v868_v2 = vmul.f32 %v4601_v11, %v4800_v31 }
 0x309   : > { %v1009_v63 = vrot.slane %v991_v22, 4  ;;  %v895_v3 = vsel %vm652_vm3, %v890_v61, %v892_v10  ;;  %1060 = vmatpush1.msra.mxu0 %v4884_v57  ;;  %v4902_v19 = vsel %vm755_vm13, %v1007_v58, %v1011_v24 }
 0x30a   : > { %v988_v60 = vsel %vm755_vm13, %v867_v59, %v895_v3  ;;  %v894_v6 = vpop.permute.xlu1 %893 }
 0x30b   : > { %v896_v15 = vsel %vm652_vm3, %v892_v10, %v894_v6  ;;  %v4897_v13 = vsel %vm755_vm13, %v1009_v63, %v1013_v45  ;;  %v1005_v14 = vrot.slane %v988_v60, 4 }
 0x30c   : > { %v989_v20 = vsel %vm755_vm13, %v868_v2, %v896_v15  ;;  %1061 = vmatprep.subr.mxu0 %v4897_v13 }
 0x30d   : > { %v1006_v23 = vrot.slane %v989_v20, 4  ;;  %1062 = vmatpush1.msra.mxu0 %v4902_v19  ;;  %v4910_v31 = vsel %vm755_vm13, %v1005_v14, %v1007_v58  ;;  %v4920_v34 = vsel %vm755_vm13, %v4725_v29, %v1005_v14 }
 0x30f   : > { %v4906_v33 = vsel %vm755_vm13, %v1006_v23, %v1009_v63  ;;  %v4915_v10 = vsel %vm755_vm13, %v4722_v28, %v1006_v23  ;;  %v996_v28 = vld [vmem:[%s6874_s2] sm:$0xf] }
 0x310   : > { %1063 = vmatprep.subr.mxu0 %v4906_v33 }
 0x311   : > { %1064 = vmatpush1.msra.mxu0 %v4910_v31 }
 0x312   : > { %1065 = vmatprep.subr.mxu0 %v4915_v10 }
 0x313   : > { %1066 = vmatpush1.msra.mxu0 %v4920_v34 }
 0x314   : > { %1067 = vmatprep.subr.mxu0 %v4738_v43 }
 0x315   : > { %1068 = vmatpush1.msra.mxu0 %v4744_v48 }
 0x316   : > { %1069 = vmatprep.subr.mxu0 %v4748_v53 }
 0x317   : > { %1070 = vmatpush1.msra.mxu0 %v4753_v55 }
 0x318   : > { %1071 = vmatprep.subr.mxu0 %v4761_v62 }
 0x319   : > { %1072 = vmatpush1.msra.mxu0 %v4765_v0 }
 0x31a   : > { %1073 = vmatprep.subr.mxu0 %v4775_v8 }
 0x31b   : > { %1074 = vmatpush1.msra.mxu0 %v4781_v12 }
 0x31c   : > { %4361 = vmatmul.mubr.msk.f32.vlgmr.msra.gmra.mxu0 %vm6889_vm9, %v996_v28 }
 0x31d   : > { %1340 = vmatprep.mubr.f32.mxu0 %v6890_v1 }
 0x3dc   : > { %v1109_v29 = vpop.f32.mrf.mxu0 }
 0x3dd   : > { %vm1114_vm6 = vcmp.ge.f32.partialorder %v1109_v29, 0.0  ;;  %v1116_v35 = vmul.f32 0.01, %v1109_v29 }
 0x3de   : > { %v1111_v36 = vpop.f32.mrf.mxu0 }
 0x3df   : > { %vm1115_vm7 = vcmp.ge.f32.partialorder %v1111_v36, 0.0  ;;  %v1117_v38 = vmul.f32 0.01, %v1111_v36  ;;  %v1118_v41 = vsel %vm1114_vm6, %v1109_v29, %v1116_v35  ;;  %vm1266_vm6 = vcmask 891904  }
 0x3e0   : > { %1122 = vrot.lane.b32.xlu1 %v1118_v41, %s4472_s28 }
 0x3e1   : > { %v1119_v24 = vsel %vm1115_vm7, %v1111_v36, %v1117_v38 }
 0x3e2   : > { %1124 = vrot.lane.b32.xlu0 %v1119_v24, %s4472_s28 }
 0x452   : > { %v1123_v45 = vpop.permute.xlu1 %1122 }
 0x453   : > { %v4939_v46 = vsel %vm568_vm4, 0.0, %v1123_v45 }
 0x454   : > { %1193 = vrot.lane.b32.xlu0 %v4939_v46, %s4478_s19  ;;  %v1146_v52 = vmul.f32 %v4612_v18, %v4939_v46  ;;  %v1143_v26 = vmul.f32 %v4616_v21, %v4939_v46  ;;  %v1125_v16 = vpop.permute.xlu0 %1124  ;;  %v1151_v17 = vrot.slane %v4939_v46, 4  ;;  %v1134_v59 = vmul.f32 %v4626_v25, %v4939_v46 }
 0x455   : > { %v4952_v58 = vsel %vm568_vm4, %v1123_v45, %v1125_v16  ;;  %v1131_v22 = vsel %vm568_vm4, %v1125_v16, 0.0  ;;  %v1140_v2 = vmul.f32 %v4644_v32, %v4939_v46  ;;  %v1137_v28 = vmul.f32 %v4660_v40, %v4939_v46 }
 0x456   : > { %1245 = vrot.lane.b32.xlu1 %v1146_v52, %s4479_s20  ;;  %v1147_v61 = vmul.f32 %v4952_v58, %v4691_v51  ;;  %v1148_v63 = vmul.f32 %v4640_v30, %v1131_v22  ;;  %v1145_v3 = vmul.f32 %v4631_v27, %v1131_v22  ;;  %v1144_v60 = vmul.f32 %v4952_v58, %v4670_v44 }
 0x457   : > { %v1153_v6 = vrot.slane %v1131_v22, 4  ;;  %v1152_v15 = vrot.slane %v4952_v58, 4  ;;  %v1206_v14 = vrot.slane %v1140_v2, 4  ;;  %v1135_v20 = vmul.f32 %v4952_v58, %v4682_v49 }
 0x458   : > { %1222 = vrot.lane.b32.xlu0 %v1143_v26, %s4480_s24  ;;  %v1136_v23 = vmul.f32 %v4658_v39, %v1131_v22  ;;  %v1141_v29 = vmul.f32 %v4952_v58, %v4686_v50  ;;  %v1180_v35 = vrot.slane %v1137_v28, 4  ;;  %v1142_v36 = vmul.f32 %v4664_v42, %v1131_v22 }
 0x459   : > { %v1138_v41 = vmul.f32 %v4952_v58, %v4704_v56  ;;  %v1139_v45 = vmul.f32 %v4678_v47, %v1131_v22 }
 0x45a   : > { %1232 = vrot.lane.b32.xlu1 %v1151_v17, %s4481_s25  ;;  %v1207_v38 = vrot.slane %v1141_v29, 4  ;;  %v1208_v24 = vrot.slane %v1142_v36, 4 }
 0x45b   : > { %v1181_v52 = vrot.slane %v1138_v41, 4  ;;  %v1182_v26 = vrot.slane %v1139_v45, 4 }
 0x45c   : > { %1195 = vrot.lane.b32.xlu0 %v4952_v58, %s4478_s19 }
 0x45e   : > { %1197 = vrot.lane.b32.xlu1 %v1131_v22, %s4478_s19 }
 0x460   : > { %1167 = vrot.lane.b32.xlu0 %v1134_v59, %s4482_s26 }
 0x462   : > { %1247 = vrot.lane.b32.xlu1 %v1147_v61, %s4479_s20 }
 0x464   : > { %1249 = vrot.lane.b32.xlu0 %v1148_v63, %s4479_s20 }
 0x466   : > { %1226 = vrot.lane.b32.xlu1 %v1145_v3, %s4480_s24 }
 0x468   : > { %1224 = vrot.lane.b32.xlu0 %v1144_v60, %s4480_s24 }
 0x46a   : > { %1236 = vrot.lane.b32.xlu1 %v1153_v6, %s4481_s25 }
 0x46c   : > { %1234 = vrot.lane.b32.xlu0 %v1152_v15, %s4481_s25 }
 0x46e   : > { %1209 = vrot.lane.b32.xlu1 %v1206_v14, %s4483_s29 }
 0x470   : > { %1169 = vrot.lane.b32.xlu0 %v1135_v20, %s4482_s26 }
 0x472   : > { %1171 = vrot.lane.b32.xlu1 %v1136_v23, %s4482_s26 }
 0x474   : > { %1156 = vrot.lane.b32.xlu0 %v1152_v15, %s4484_s30 }
 0x476   : > { %1183 = vrot.lane.b32.xlu1 %v1180_v35, %s4485_s0 }
 0x478   : > { %1211 = vrot.lane.b32.xlu0 %v1207_v38, %s4483_s29 }
 0x47a   : > { %1213 = vrot.lane.b32.xlu1 %v1208_v24, %s4483_s29 }
 0x47c   : > { %1185 = vrot.lane.b32.xlu0 %v1181_v52, %s4485_s0 }
 0x47e   : > { %1187 = vrot.lane.b32.xlu1 %v1182_v26, %s4485_s0 }
 0x480   : > { %1154 = vrot.lane.b32.xlu0 %v1151_v17, %s4484_s30 }
 0x482   : > { %1158 = vrot.lane.b32.xlu1 %v1153_v6, %s4484_s30 }
 0x4c6   : > { %v1194_v16 = vpop.permute.xlu0 %1193 }
 0x4c8   : > { %v1246_v59 = vpop.permute.xlu1 %1245 }
 0x4ca   : > { %v1223_v61 = vpop.permute.xlu0 %1222 }
 0x4cc   : > { %v1233_v63 = vpop.permute.xlu1 %1232 }
 0x4ce   : > { %v1196_v3 = vpop.permute.xlu0 %1195 }
 0x4d0   : > { %v1198_v60 = vpop.permute.xlu1 %1197 }
 0x4d2   : > { %v1168_v2 = vpop.permute.xlu0 %1167 }
 0x4d4   : > { %v1248_v22 = vpop.permute.xlu1 %1247 }
 0x4d5   : > { %v4999_v15 = vsel %vm750_vm11, %v1246_v59, %v1248_v22 }
 0x4d6   : > { %v1250_v14 = vpop.permute.xlu0 %1249  ;;  %v1264_v6 = vsel %vm755_vm13, %v4999_v15, 1.0 }
 0x4d7   : > { %v5002_v20 = vsel %vm750_vm11, %v1248_v22, %v1250_v14 }
 0x4d8   : > { %v1265_v17 = vsel %vm755_vm13, %v5002_v20, 1.0  ;;  %v1227_v23 = vpop.permute.xlu1 %1226 }
 0x4d9   : > { %4362 = vmatprep.subr.msk.mxu0 %vm771_vm14, %v1265_v17 }
 0x4da   : > { %4363 = vmatpush1.msk.msra.mxu0 %vm771_vm14, %v1264_v6  ;;  %v1225_v28 = vpop.permute.xlu0 %1224  ;;  %v1200_v6 = vsel %vm694_vm0, %v1196_v3, %v1198_v60 }
 0x4db   : > { %v1228_v36 = vsel %vm725_vm10, %v1223_v61, %v1225_v28  ;;  %v1229_v38 = vsel %vm725_vm10, %v1225_v28, %v1227_v23 }
 0x4dc   : > { %v1237_v29 = vpop.permute.xlu1 %1236 }
 0x4de   : > { %v1235_v35 = vpop.permute.xlu0 %1234 }
 0x4df   : > { %v1238_v41 = vsel %vm736_vm12, %v1233_v63, %v1235_v35  ;;  %v1239_v24 = vsel %vm736_vm12, %v1235_v35, %v1237_v29  ;;  %v1199_v29 = vsel %vm694_vm0, %v1194_v16, %v1196_v3 }
 0x4e0   : > { %v1210_v45 = vpop.permute.xlu1 %1209  ;;  %v5015_v52 = vsel %vm755_vm13, %v1229_v38, %v1239_v24  ;;  %v5018_v26 = vsel %vm755_vm13, %v1228_v36, %v1238_v41 }
 0x4e1   : > { %1282 = vmatprep.subr.mxu0 %v5015_v52 }
 0x4e2   : > { %1283 = vmatpush1.msra.mxu0 %v5018_v26  ;;  %v1170_v59 = vpop.permute.xlu0 %1169 }
 0x4e3   : > { %v1173_v16 = vsel %vm666_vm2, %v1168_v2, %v1170_v59  ;;  %v1132_v2 = vmul.f32 %v4597_v9, %v4939_v46  ;;  %v1263_v46 = vld [vmem:[%s6875_s3] sm:$0xf] }
 0x4e4   : > { %v1172_v22 = vpop.permute.xlu1 %1171 }
 0x4e5   : > { %v1174_v60 = vsel %vm666_vm2, %v1170_v59, %v1172_v22  ;;  %v1133_v22 = vmul.f32 %v4601_v11, %v4952_v58 }
 0x4e6   : > { %v1157_v61 = vpop.permute.xlu0 %1156 }
 0x4e8   : > { %v1184_v14 = vpop.permute.xlu1 %1183 }
 0x4ea   : > { %v1212_v17 = vpop.permute.xlu0 %1211 }
 0x4eb   : > { %v1215_v63 = vsel %vm711_vm15, %v1210_v45, %v1212_v17 }
 0x4ec   : > { %v1214_v23 = vpop.permute.xlu1 %1213  ;;  %v5031_v38 = vsel %vm755_vm13, %v1199_v29, %v1215_v63 }
 0x4ed   : > { %v1216_v28 = vsel %vm711_vm15, %v1212_v17, %v1214_v23 }
 0x4ee   : > { %v1186_v35 = vpop.permute.xlu0 %1185  ;;  %v5027_v36 = vsel %vm755_vm13, %v1200_v6, %v1216_v28 }
 0x4ef   : > { %1284 = vmatprep.subr.mxu0 %v5027_v36  ;;  %v1189_v41 = vsel %vm683_vm1, %v1184_v14, %v1186_v35 }
 0x4f0   : > { %v1188_v24 = vpop.permute.xlu1 %1187  ;;  %1285 = vmatpush1.msra.mxu0 %v5031_v38  ;;  %v5043_v63 = vsel %vm755_vm13, %v1173_v16, %v1189_v41 }
 0x4f1   : > { %v1190_v45 = vsel %vm683_vm1, %v1186_v35, %v1188_v24 }
 0x4f2   : > { %v1155_v3 = vpop.permute.xlu0 %1154  ;;  %v5039_v17 = vsel %vm755_vm13, %v1174_v60, %v1190_v45 }
 0x4f3   : > { %1286 = vmatprep.subr.mxu0 %v5039_v17  ;;  %v1160_v14 = vsel %vm652_vm3, %v1155_v3, %v1157_v61 }
 0x4f4   : > { %v1159_v23 = vpop.permute.xlu1 %1158  ;;  %1287 = vmatpush1.msra.mxu0 %v5043_v63  ;;  %v5057_v28 = vsel %vm755_vm13, %v1132_v2, %v1160_v14 }
 0x4f5   : > { %v1161_v6 = vsel %vm652_vm3, %v1157_v61, %v1159_v23 }
 0x4f6   : > { %v5053_v59 = vsel %vm755_vm13, %v1133_v22, %v1161_v6 }
 0x4f7   : > { %1288 = vmatprep.subr.mxu0 %v5053_v59 }
 0x4f8   : > { %1289 = vmatpush1.msra.mxu0 %v5057_v28 }
 0x4f9   : > { %1290 = vmatprep.subr.mxu0 %v4862_v4 }
 0x4fa   : > { %1291 = vmatpush1.msra.mxu0 %v4866_v5 }
 0x4fb   : > { %1292 = vmatprep.subr.mxu0 %v4881_v54 }
 0x4fc   : > { %1293 = vmatpush1.msra.mxu0 %v4884_v57 }
 0x4fd   : > { %1294 = vmatprep.subr.mxu0 %v4897_v13 }
 0x4fe   : > { %1295 = vmatpush1.msra.mxu0 %v4902_v19 }
 0x4ff   : > { %1296 = vmatprep.subr.mxu0 %v4906_v33 }
 0x500   : > { %1297 = vmatpush1.msra.mxu0 %v4910_v31 }
 0x501   : > { %1298 = vmatprep.subr.mxu0 %v4915_v10 }
 0x502   : > { %1299 = vmatpush1.msra.mxu0 %v4920_v34 }
 0x503   : > { %1300 = vmatprep.subr.mxu0 %v4738_v43 }
 0x504   : > { %1301 = vmatpush1.msra.mxu0 %v4744_v48 }
 0x505   : > { %1302 = vmatprep.subr.mxu0 %v4748_v53 }
 0x506   : > { %1303 = vmatpush1.msra.mxu0 %v4753_v55 }
 0x507   : > { %1304 = vmatprep.subr.mxu0 %v4761_v62 }
 0x508   : > { %1305 = vmatpush1.msra.mxu0 %v4765_v0 }
 0x509   : > { %1306 = vmatprep.subr.mxu0 %v4775_v8 }
 0x50a   : > { %1307 = vmatpush1.msra.mxu0 %v4781_v12 }
 0x50b   : > { %4364 = vmatmul.mubr.msk.f32.vlgmr.msra.gmra.mxu0 %vm1266_vm6, %v1263_v46 }
 0x5cb   : > { %v1342_v58 = vpop.f32.mrf.mxu0 }
 0x5cc   : > { %vm1347_vm7 = vcmp.ge.f32.partialorder %v1342_v58, 0.0  ;;  %v1349_v61 = vmul.f32 0.01, %v1342_v58 }
 0x5cd   : > { %v1344_v29 = vpop.f32.mrf.mxu0 }
 0x5ce   : > { %vm1348_vm9 = vcmp.ge.f32.partialorder %v1344_v29, 0.0  ;;  %v1350_v35 = vmul.f32 0.01, %v1344_v29  ;;  %v1351_v41 = vsel %vm1347_vm7, %v1342_v58, %v1349_v61 }
 0x5cf   : > { %1355 = vrot.lane.b32.xlu1 %v1351_v41, %s4472_s28 }
 0x5d0   : > { %v1352_v24 = vsel %vm1348_vm9, %v1344_v29, %v1350_v35 }
 0x5d1   : > { %1357 = vrot.lane.b32.xlu0 %v1352_v24, %s4472_s28 }
 0x641   : > { %v1356_v60 = vpop.permute.xlu1 %1355 }
 0x642   : > { %v5085_v45 = vsel %vm568_vm4, 0.0, %v1356_v60 }
 0x643   : > { %1426 = vrot.lane.b32.xlu1 %v5085_v45, %s4478_s19  ;;  %v1358_v16 = vpop.permute.xlu0 %1357  ;;  %v1370_v22 = vmul.f32 %v4660_v40, %v5085_v45  ;;  %v1367_v6 = vmul.f32 %v4626_v25, %v5085_v45  ;;  %v1373_v46 = vmul.f32 %v4644_v32, %v5085_v45 }
 0x644   : > { %v1364_v3 = vsel %vm568_vm4, %v1358_v16, 0.0  ;;  %v5092_v14 = vsel %vm568_vm4, %v1356_v60, %v1358_v16 }
 0x645   : > { %1430 = vrot.lane.b32.xlu0 %v1364_v3, %s4478_s19  ;;  %v1369_v23 = vmul.f32 %v4658_v39, %v1364_v3  ;;  %v1413_v2 = vrot.slane %v1370_v22, 4  ;;  %v1368_v58 = vmul.f32 %v5092_v14, %v4682_v49  ;;  %v1439_v61 = vrot.slane %v1373_v46, 4 }
 0x646   : > { %v1372_v29 = vmul.f32 %v4678_v47, %v1364_v3  ;;  %v1385_v35 = vrot.slane %v5092_v14, 4  ;;  %v1371_v41 = vmul.f32 %v5092_v14, %v4704_v56  ;;  %v1375_v60 = vmul.f32 %v4664_v42, %v1364_v3 }
 0x647   : > { %1428 = vrot.lane.b32.xlu1 %v5092_v14, %s4478_s19  ;;  %v1384_v46 = vrot.slane %v5085_v45, 4 }
 0x648   : > { %v1415_v24 = vrot.slane %v1372_v29, 4  ;;  %v1414_v16 = vrot.slane %v1371_v41, 4  ;;  %v1441_v22 = vrot.slane %v1375_v60, 4  ;;  %v1376_v29 = vmul.f32 %v4616_v21, %v5085_v45  ;;  %v5147_v60 = vld [vmem:[%s6876_s4] sm:$0xff] }
 0x649   : > { %1404 = vrot.lane.b32.xlu0 %v1369_v23, %s4482_s26  ;;  %v1374_v23 = vmul.f32 %v5092_v14, %v4686_v50  ;;  %v1380_v41 = vmul.f32 %v5092_v14, %v4691_v51 }
 0x64b   : > { %1400 = vrot.lane.b32.xlu1 %v1367_v6, %s4482_s26  ;;  %v1440_v6 = vrot.slane %v1374_v23, 4 }
 0x64d   : > { %1416 = vrot.lane.b32.xlu0 %v1413_v2, %s4485_s0  ;;  %v1386_v2 = vrot.slane %v1364_v3, 4 }
 0x64f   : > { %1402 = vrot.lane.b32.xlu1 %v1368_v58, %s4482_s26  ;;  %v1377_v58 = vmul.f32 %v5092_v14, %v4670_v44 }
 0x651   : > { %1442 = vrot.lane.b32.xlu0 %v1439_v61, %s4483_s29  ;;  %v1378_v61 = vmul.f32 %v4631_v27, %v1364_v3 }
 0x653   : > { %1389 = vrot.lane.b32.xlu1 %v1385_v35, %s4484_s30 }
 0x655   : > { %1420 = vrot.lane.b32.xlu0 %v1415_v24, %s4485_s0  ;;  %v1381_v24 = vmul.f32 %v4640_v30, %v1364_v3 }
 0x657   : > { %1418 = vrot.lane.b32.xlu1 %v1414_v16, %s4485_s0  ;;  %v1534_v16 = vcombine.high %v5147_v60, %v5147_v60 }
 0x659   : > { %1446 = vrot.lane.b32.xlu0 %v1441_v22, %s4483_s29  ;;  %4367 = vmatprep.mubr.msk.f32.mxu1 %vm568_vm4, %v1534_v16 }
 0x65b   : > { %1444 = vrot.lane.b32.xlu1 %v1440_v6, %s4483_s29 }
 0x65d   : > { %1391 = vrot.lane.b32.xlu0 %v1386_v2, %s4484_s30 }
 0x65f   : > { %1387 = vrot.lane.b32.xlu1 %v1384_v46, %s4484_s30 }
 0x661   : > { %1457 = vrot.lane.b32.xlu0 %v1377_v58, %s4480_s24 }
 0x663   : > { %1459 = vrot.lane.b32.xlu1 %v1378_v61, %s4480_s24 }
 0x665   : > { %1467 = vrot.lane.b32.xlu0 %v1385_v35, %s4481_s25  ;;  %v1379_v35 = vmul.f32 %v4612_v18, %v5085_v45 }
 0x667   : > { %1469 = vrot.lane.b32.xlu1 %v1386_v2, %s4481_s25 }
 0x669   : > { %1455 = vrot.lane.b32.xlu0 %v1376_v29, %s4480_s24 }
 0x66b   : > { %1465 = vrot.lane.b32.xlu1 %v1384_v46, %s4481_s25 }
 0x66d   : > { %1480 = vrot.lane.b32.xlu0 %v1380_v41, %s4479_s20 }
 0x66f   : > { %1482 = vrot.lane.b32.xlu1 %v1381_v24, %s4479_s20 }
 0x671   : > { %1478 = vrot.lane.b32.xlu0 %v1379_v35, %s4479_s20 }
 0x6b5   : > { %v1427_v23 = vpop.permute.xlu1 %1426 }
 0x6b7   : > { %v1431_v22 = vpop.permute.xlu0 %1430 }
 0x6b9   : > { %v1429_v3 = vpop.permute.xlu1 %1428 }
 0x6ba   : > { %v1432_v50 = vsel %vm694_vm0, %v1427_v23, %v1429_v3  ;;  %v1433_v40 = vsel %vm694_vm0, %v1429_v3, %v1431_v22 }
 0x6bb   : > { %v1405_v6 = vpop.permute.xlu0 %1404 }
 0x6bd   : > { %v1401_v2 = vpop.permute.xlu1 %1400 }
 0x6bf   : > { %v1417_v46 = vpop.permute.xlu0 %1416 }
 0x6c1   : > { %v1403_v58 = vpop.permute.xlu1 %1402 }
 0x6c2   : > { %v1407_v37 = vsel %vm666_vm2, %v1403_v58, %v1405_v6  ;;  %v1406_v16 = vsel %vm666_vm2, %v1401_v2, %v1403_v58  ;;  %v1366_v6 = vmul.f32 %v4601_v11, %v5092_v14 }
 0x6c3   : > { %v1443_v61 = vpop.permute.xlu0 %1442 }
 0x6c5   : > { %v1390_v29 = vpop.permute.xlu1 %1389 }
 0x6c7   : > { %v1421_v41 = vpop.permute.xlu0 %1420 }
 0x6c9   : > { %v1419_v24 = vpop.permute.xlu1 %1418 }
 0x6ca   : > { %v1422_v35 = vsel %vm683_vm1, %v1417_v46, %v1419_v24  ;;  %v1423_v1 = vsel %vm683_vm1, %v1419_v24, %v1421_v41 }
 0x6cb   : > { %v1447_v7 = vpop.permute.xlu0 %1446  ;;  %v1489_v47 = vsel %vm755_vm13, %v1407_v37, %v1423_v1  ;;  %v1488_v42 = vsel %vm755_vm13, %v1406_v16, %v1422_v35 }
 0x6cc   : > { %v1507_v2 = vrot.slane %v1489_v47, 4  ;;  %v1505_v22 = vrot.slane %v1488_v42, 4 }
 0x6cd   : > { %v1445_v56 = vpop.permute.xlu1 %1444 }
 0x6ce   : > { %v1448_v39 = vsel %vm711_vm15, %v1443_v61, %v1445_v56  ;;  %v1449_v46 = vsel %vm711_vm15, %v1445_v56, %v1447_v7  ;;  %v1365_v56 = vmul.f32 %v4597_v9, %v5085_v45 }
 0x6cf   : > { %v1392_v49 = vpop.permute.xlu0 %1391  ;;  %v5165_v41 = vsel %vm755_vm13, %v1433_v40, %v1449_v46  ;;  %v5168_v1 = vsel %vm755_vm13, %v1432_v50, %v1448_v39 }
 0x6d0   : > { %v1394_v37 = vsel %vm652_vm3, %v1390_v29, %v1392_v49  ;;  %v1511_v23 = vrot.slane %v5165_v41, 4  ;;  %v1509_v3 = vrot.slane %v5168_v1, 4 }
 0x6d1   : > { %v1487_v7 = vsel %vm755_vm13, %v1366_v6, %v1394_v37  ;;  %v1388_v14 = vpop.permute.xlu1 %1387 }
 0x6d2   : > { %v1504_v58 = vrot.slane %v1487_v7, 4  ;;  %v1393_v40 = vsel %vm652_vm3, %v1388_v14, %v1390_v29  ;;  %v1512_v39 = vsel %vm755_vm13, %v1507_v2, %v1511_v23  ;;  %v1510_v47 = vsel %vm755_vm13, %v1505_v22, %v1509_v3 }
 0x6d3   : > { %v1486_v42 = vsel %vm755_vm13, %v1365_v56, %v1393_v40  ;;  %1537 = vmatprep.subr.mxu1 %v1512_v39  ;;  %1771 = vmatprep.subr.mxu0 %v1512_v39  ;;  %v5184_v50 = vpop.permute.xlu0 %1457 }
 0x6d4   : > { %v1503_v49 = vrot.slane %v1486_v42, 4  ;;  %1538 = vmatpush1.msra.mxu1 %v1510_v47  ;;  %1772 = vmatpush1.msra.mxu0 %v1510_v47  ;;  %v1508_v45 = vsel %vm755_vm13, %v1504_v58, %v1507_v2  ;;  %v1532_v29 = vsel %vm755_vm13, %v5002_v20, %v1504_v58 }
 0x6d5   : > { %1539 = vmatprep.subr.mxu1 %v1508_v45  ;;  %1773 = vmatprep.subr.mxu0 %v1508_v45  ;;  %v1460_v35 = vpop.permute.xlu1 %1459 }
 0x6d6   : > { %v1506_v61 = vsel %vm755_vm13, %v1503_v49, %v1505_v22  ;;  %v1531_v24 = vsel %vm755_vm13, %v4999_v15, %v1503_v49 }
 0x6d7   : > { %1540 = vmatpush1.msra.mxu1 %v1506_v61  ;;  %1774 = vmatpush1.msra.mxu0 %v1506_v61  ;;  %v1468_v16 = vpop.permute.xlu0 %1467  ;;  %v6950_v61 = vld [vmem:[#allocation4_spill] sm:$0xff] }
 0x6d8   : > { %1541 = vmatprep.subr.mxu1 %v1532_v29  ;;  %1775 = vmatprep.subr.mxu0 %v1532_v29 }
 0x6d9   : > { %1542 = vmatpush1.msra.mxu1 %v1531_v24  ;;  %1776 = vmatpush1.msra.mxu0 %v1531_v24  ;;  %v1470_v15 = vpop.permute.xlu1 %1469  ;;  %v6951_v24 = vld [vmem:[#allocation5_spill] sm:$0xff] }
 0x6da   : > { %1543 = vmatprep.subr.mxu1 %v5015_v52  ;;  %1777 = vmatprep.subr.mxu0 %v5015_v52 }
 0x6db   : > { %1544 = vmatpush1.msra.mxu1 %v5018_v26  ;;  %1778 = vmatpush1.msra.mxu0 %v5018_v26  ;;  %v1456_v20 = vpop.permute.xlu0 %1455 }
 0x6dc   : > { %1545 = vmatprep.subr.mxu1 %v5027_v36  ;;  %1779 = vmatprep.subr.mxu0 %v5027_v36  ;;  %v6947_v36 = vmov 1.0  }
 0x6dd   : > { %1546 = vmatpush1.msra.mxu1 %v5031_v38  ;;  %1780 = vmatpush1.msra.mxu0 %v5031_v38  ;;  %v1466_v52 = vpop.permute.xlu1 %1465  ;;  %v6948_v38 = vmov 0.0  }
 0x6de   : > { %1547 = vmatprep.subr.mxu1 %v5039_v17  ;;  %1781 = vmatprep.subr.mxu0 %v5039_v17 }
 0x6df   : > { %1548 = vmatpush1.msra.mxu1 %v5043_v63  ;;  %1782 = vmatpush1.msra.mxu0 %v5043_v63  ;;  %v1481_v26 = vpop.permute.xlu0 %1480 }
 0x6e0   : > { %1549 = vmatprep.subr.mxu1 %v5053_v59  ;;  %1783 = vmatprep.subr.mxu0 %v5053_v59 }
 0x6e1   : > { %1550 = vmatpush1.msra.mxu1 %v5057_v28  ;;  %1784 = vmatpush1.msra.mxu0 %v5057_v28 }
 0x6e2   : > { %1551 = vmatprep.subr.mxu1 %v4862_v4  ;;  %1785 = vmatprep.subr.mxu0 %v4862_v4  ;;  %v1483_v4 = vpop.permute.xlu1 %1482 }
 0x6e3   : > { %1552 = vmatpush1.msra.mxu1 %v4866_v5  ;;  %1786 = vmatpush1.msra.mxu0 %v4866_v5  ;;  %v1479_v5 = vpop.permute.xlu0 %1478 }
 0x6e4   : > { %1553 = vmatprep.subr.mxu1 %v4881_v54  ;;  %1787 = vmatprep.subr.mxu0 %v4881_v54  ;;  %v1472_v54 = vsel %vm736_vm12, %v1468_v16, %v1470_v15 }
 0x6e5   : > { %1554 = vmatpush1.msra.mxu1 %v4884_v57  ;;  %1788 = vmatpush1.msra.mxu0 %v4884_v57  ;;  %v1471_v57 = vsel %vm736_vm12, %v1466_v52, %v1468_v16  ;;  %v6952_v16 = vld [vmem:[#allocation10_spill] sm:$0xff] }
 0x6e6   : > { %1555 = vmatprep.subr.mxu1 %v4897_v13  ;;  %1789 = vmatprep.subr.mxu0 %v4897_v13  ;;  %v1485_v13 = vsel %vm750_vm11, %v1481_v26, %v1483_v4  ;;  %v6953_v52 = vld [vmem:[#allocation6_spill] sm:$0xff] }
 0x6e7   : > { %1556 = vmatpush1.msra.mxu1 %v4902_v19  ;;  %1790 = vmatpush1.msra.mxu0 %v4902_v19  ;;  %v1462_v19 = vsel %vm725_vm10, %v5184_v50, %v1460_v35 }
 0x6e8   : > { %1557 = vmatprep.subr.mxu1 %v4906_v33  ;;  %1791 = vmatprep.subr.mxu0 %v4906_v33  ;;  %v1484_v33 = vsel %vm750_vm11, %v1479_v5, %v1481_v26  ;;  %v6954_v5 = vld [vmem:[#allocation11_spill] sm:$0xff] }
 0x6e9   : > { %1558 = vmatpush1.msra.mxu1 %v4910_v31  ;;  %1792 = vmatpush1.msra.mxu0 %v4910_v31  ;;  %v1519_v31 = vrot.slane %v1485_v13, 4  ;;  %v6955_v13 = vld [vmem:[#allocation8_spill] sm:$0xff] }
 0x6ea   : > { %1559 = vmatprep.subr.mxu1 %v4915_v10  ;;  %1793 = vmatprep.subr.mxu0 %v4915_v10  ;;  %v1517_v10 = vrot.slane %v1484_v33, 4 }
 0x6eb   : > { %1560 = vmatpush1.msra.mxu1 %v4920_v34  ;;  %1794 = vmatpush1.msra.mxu0 %v4920_v34 }
 0x6ec   : > { %1561 = vmatprep.subr.mxu1 %v4738_v43  ;;  %1795 = vmatprep.subr.mxu0 %v4738_v43  ;;  %v1493_v43 = vsel %vm755_vm13, %v1462_v19, %v1472_v54 }
 0x6ed   : > { %1562 = vmatpush1.msra.mxu1 %v4744_v48  ;;  %1796 = vmatpush1.msra.mxu0 %v4744_v48  ;;  %v1461_v48 = vsel %vm725_vm10, %v1456_v20, %v5184_v50  ;;  %v6949_v50 = vld [vmem:[#allocation9_spill] sm:$0xff] }
 0x6ee   : > { %1563 = vmatprep.subr.mxu1 %v4748_v53  ;;  %1797 = vmatprep.subr.mxu0 %v4748_v53  ;;  %v1492_v53 = vsel %vm755_vm13, %v1461_v48, %v1471_v57  ;;  %v5342_v48 = vld [vmem:[%s6877_s5] sm:$0xff] }
 0x6ef   : > { %1564 = vmatpush1.msra.mxu1 %v4753_v55  ;;  %1798 = vmatpush1.msra.mxu0 %v4753_v55  ;;  %v1515_v55 = vrot.slane %v1493_v43, 4  ;;  %v1513_v34 = vrot.slane %v1492_v53, 4  ;;  %v1761_v53 = vcombine.high %v5342_v48, %v5342_v48 }
 0x6f0   : > { %1565 = vmatprep.subr.mxu1 %v4761_v62  ;;  %1799 = vmatprep.subr.mxu0 %v4761_v62 }
 0x6f1   : > { %1566 = vmatpush1.msra.mxu1 %v4765_v0  ;;  %1800 = vmatpush1.msra.mxu0 %v4765_v0  ;;  %v5259_v62 = vsel %vm755_vm13, %v1515_v55, %v1519_v31  ;;  %v5263_v0 = vsel %vm755_vm13, %v1513_v34, %v1517_v10 }
 0x6f2   : > { %1567 = vmatprep.subr.mxu1 %v4775_v8  ;;  %1801 = vmatprep.subr.mxu0 %v4775_v8  ;;  %v5269_v8 = vsel %vm755_vm13, %v1511_v23, %v1515_v55 }
 0x6f3   : > { %1568 = vmatpush1.msra.mxu1 %v4781_v12  ;;  %1802 = vmatpush1.msra.mxu0 %v4781_v12  ;;  %v5275_v12 = vsel %vm755_vm13, %v1509_v3, %v1513_v34 }
 0x6f4   : > { %4365 = vmatprep.subr.msk.mxu1 %vm1039_vm8, %v6947_v36 }
 0x6f5   : > { %4366 = vmatpush2.msk.msra.mxu1 %vm1039_vm8, %v6947_v36 }
 0x6f6   : > { %1597 = vmatprep.subr.mxu1 %v5259_v62 }
 0x6f7   : > { %1598 = vmatpush2.msra.mxu1 %v5263_v0 }
 0x6f8   : > { %1599 = vmatprep.subr.mxu1 %v5269_v8 }
 0x6f9   : > { %1600 = vmatpush2.msra.mxu1 %v5275_v12 }
 0x6fa   : > { %1602 = vmatmul.mubr.f32.vlgmr.msra.gmra.mxu1 %v5147_v60 }
 0x6fb   : > { %2066 = vmatprep.mubr.f32.mxu1 %v6948_v38 }
 0x7ba   : > { %v1603_v17 = vpop.f32.mrf.mxu1 }
 0x7bb   : > { %vm1608_vm9 = vcmp.ge.f32.partialorder %v1603_v17, 0.0  ;;  %v1610_v63 = vmul.f32 0.01, %v1603_v17 }
 0x7bc   : > { %v1605_v59 = vpop.f32.mrf.mxu1 }
 0x7bd   : > { %vm1609_vm7 = vcmp.ge.f32.partialorder %v1605_v59, 0.0  ;;  %v1611_v28 = vmul.f32 0.01, %v1605_v59  ;;  %v1612_v46 = vsel %vm1608_vm9, %v1603_v17, %v1610_v63  ;;  %vm6910_vm9 = vcmask 433152  }
 0x7be   : > { %1616 = vrot.lane.b32.xlu1 %v1612_v46, %s4472_s28  ;;  %4370 = vmatprep.mubr.msk.f32.mxu0 %vm6910_vm9, %v1761_v53 }
 0x7bf   : > { %v1613_v6 = vsel %vm1609_vm7, %v1605_v59, %v1611_v28 }
 0x7c0   : > { %1618 = vrot.lane.b32.xlu0 %v1613_v6, %s4472_s28 }
 0x830   : > { %v1617_v41 = vpop.permute.xlu1 %1616 }
 0x831   : > { %v5283_v2 = vsel %vm568_vm4, 0.0, %v1617_v41 }
 0x832   : > { %1687 = vrot.lane.b32.xlu0 %v5283_v2, %s4478_s19  ;;  %v1640_v60 = vmul.f32 %v4612_v18, %v5283_v2  ;;  %v1637_v1 = vmul.f32 %v4616_v21, %v5283_v2  ;;  %v1619_v37 = vpop.permute.xlu0 %1618  ;;  %v1645_v23 = vrot.slane %v5283_v2, 4  ;;  %v1628_v7 = vmul.f32 %v4626_v25, %v5283_v2 }
 0x833   : > { %v5296_v22 = vsel %vm568_vm4, %v1617_v41, %v1619_v37  ;;  %v1625_v3 = vsel %vm568_vm4, %v1619_v37, 0.0  ;;  %v1634_v47 = vmul.f32 %v4644_v32, %v5283_v2  ;;  %v1631_v35 = vmul.f32 %v6951_v24, %v5283_v2 }
 0x834   : > { %1739 = vrot.lane.b32.xlu1 %v1640_v60, %s4479_s20  ;;  %v1641_v56 = vmul.f32 %v5296_v22, %v4691_v51  ;;  %v1642_v14 = vmul.f32 %v4640_v30, %v1625_v3  ;;  %v1639_v58 = vmul.f32 %v4631_v27, %v1625_v3  ;;  %v1638_v40 = vmul.f32 %v5296_v22, %v4670_v44 }
 0x835   : > { %v1647_v39 = vrot.slane %v1625_v3, 4  ;;  %v1646_v42 = vrot.slane %v5296_v22, 4  ;;  %v1700_v49 = vrot.slane %v1634_v47, 4  ;;  %v1629_v45 = vmul.f32 %v5296_v22, %v6949_v50 }
 0x836   : > { %1716 = vrot.lane.b32.xlu0 %v1637_v1, %s4480_s24  ;;  %v1630_v29 = vmul.f32 %v6950_v61, %v1625_v3  ;;  %v1635_v15 = vmul.f32 %v5296_v22, %v6952_v16  ;;  %v1674_v20 = vrot.slane %v1631_v35, 4  ;;  %v1636_v26 = vmul.f32 %v6953_v52, %v1625_v3 }
 0x837   : > { %v1632_v54 = vmul.f32 %v5296_v22, %v6954_v5  ;;  %v1633_v19 = vmul.f32 %v6955_v13, %v1625_v3 }
 0x838   : > { %1726 = vrot.lane.b32.xlu1 %v1645_v23, %s4481_s25  ;;  %v1701_v4 = vrot.slane %v1635_v15, 4  ;;  %v1702_v57 = vrot.slane %v1636_v26, 4 }
 0x839   : > { %v1675_v33 = vrot.slane %v1632_v54, 4  ;;  %v1676_v43 = vrot.slane %v1633_v19, 4 }
 0x83a   : > { %1689 = vrot.lane.b32.xlu0 %v5296_v22, %s4478_s19 }
 0x83c   : > { %1691 = vrot.lane.b32.xlu1 %v1625_v3, %s4478_s19 }
 0x83e   : > { %1661 = vrot.lane.b32.xlu0 %v1628_v7, %s4482_s26 }
 0x840   : > { %1741 = vrot.lane.b32.xlu1 %v1641_v56, %s4479_s20 }
 0x842   : > { %1743 = vrot.lane.b32.xlu0 %v1642_v14, %s4479_s20 }
 0x844   : > { %1720 = vrot.lane.b32.xlu1 %v1639_v58, %s4480_s24 }
 0x846   : > { %1718 = vrot.lane.b32.xlu0 %v1638_v40, %s4480_s24 }
 0x848   : > { %1730 = vrot.lane.b32.xlu1 %v1647_v39, %s4481_s25 }
 0x84a   : > { %1728 = vrot.lane.b32.xlu0 %v1646_v42, %s4481_s25 }
 0x84c   : > { %1703 = vrot.lane.b32.xlu1 %v1700_v49, %s4483_s29 }
 0x84e   : > { %1663 = vrot.lane.b32.xlu0 %v1629_v45, %s4482_s26 }
 0x850   : > { %1665 = vrot.lane.b32.xlu1 %v1630_v29, %s4482_s26 }
 0x852   : > { %1650 = vrot.lane.b32.xlu0 %v1646_v42, %s4484_s30 }
 0x854   : > { %1677 = vrot.lane.b32.xlu1 %v1674_v20, %s4485_s0 }
 0x856   : > { %1705 = vrot.lane.b32.xlu0 %v1701_v4, %s4483_s29 }
 0x858   : > { %1707 = vrot.lane.b32.xlu1 %v1702_v57, %s4483_s29 }
 0x85a   : > { %1679 = vrot.lane.b32.xlu0 %v1675_v33, %s4485_s0 }
 0x85c   : > { %1681 = vrot.lane.b32.xlu1 %v1676_v43, %s4485_s0 }
 0x85e   : > { %1648 = vrot.lane.b32.xlu0 %v1645_v23, %s4484_s30 }
 0x860   : > { %1652 = vrot.lane.b32.xlu1 %v1647_v39, %s4484_s30 }
 0x8a4   : > { %v1688_v31 = vpop.permute.xlu0 %1687 }
 0x8a6   : > { %v1740_v10 = vpop.permute.xlu1 %1739 }
 0x8a8   : > { %v1717_v55 = vpop.permute.xlu0 %1716 }
 0x8aa   : > { %v1727_v34 = vpop.permute.xlu1 %1726 }
 0x8ac   : > { %v1690_v17 = vpop.permute.xlu0 %1689 }
 0x8ad   : > { %v1693_v57 = vsel %vm694_vm0, %v1688_v31, %v1690_v17 }
 0x8ae   : > { %v1692_v63 = vpop.permute.xlu1 %1691 }
 0x8af   : > { %v1694_v4 = vsel %vm694_vm0, %v1690_v17, %v1692_v63 }
 0x8b0   : > { %v1662_v59 = vpop.permute.xlu0 %1661 }
 0x8b2   : > { %v1742_v28 = vpop.permute.xlu1 %1741 }
 0x8b3   : > { %v1745_v46 = vsel %vm750_vm11, %v1740_v10, %v1742_v28 }
 0x8b4   : > { %v1744_v6 = vpop.permute.xlu0 %1743  ;;  %v1758_v37 = vsel %vm755_vm13, %v1745_v46, 1.0 }
 0x8b5   : > { %v1746_v41 = vsel %vm750_vm11, %v1742_v28, %v1744_v6 }
 0x8b6   : > { %v1759_v60 = vsel %vm755_vm13, %v1746_v41, 1.0  ;;  %v1721_v1 = vpop.permute.xlu1 %1720  ;;  %v1627_v41 = vmul.f32 %v4601_v11, %v5296_v22 }
 0x8b7   : > { %4368 = vmatprep.subr.msk.mxu0 %vm771_vm14, %v1759_v60 }
 0x8b8   : > { %4369 = vmatpush2.msk.msra.mxu0 %vm771_vm14, %v1758_v37  ;;  %v1719_v23 = vpop.permute.xlu0 %1718 }
 0x8b9   : > { %v1722_v56 = vsel %vm725_vm10, %v1717_v55, %v1719_v23  ;;  %v1723_v14 = vsel %vm725_vm10, %v1719_v23, %v1721_v1  ;;  %v1626_v1 = vmul.f32 %v4597_v9, %v5283_v2 }
 0x8ba   : > { %v1731_v3 = vpop.permute.xlu1 %1730 }
 0x8bc   : > { %v1729_v7 = vpop.permute.xlu0 %1728 }
 0x8bd   : > { %v1732_v58 = vsel %vm736_vm12, %v1727_v34, %v1729_v7  ;;  %v1733_v40 = vsel %vm736_vm12, %v1729_v7, %v1731_v3  ;;  %v4461_v3 = vld [vmem:[%s4589_s27] sm:$0xff] }
 0x8be   : > { %v1704_v39 = vpop.permute.xlu1 %1703  ;;  %v1756_v47 = vsel %vm755_vm13, %v1723_v14, %v1733_v40  ;;  %v1755_v42 = vsel %vm755_vm13, %v1722_v56, %v1732_v58  ;;  %v6957_v14 = vld [vmem:[#allocation2_spill] sm:$0xff] }
 0x8bf   : > { %1823 = vmatprep.subr.mxu0 %v1756_v47 }
 0x8c0   : > { %1824 = vmatpush2.msra.mxu0 %v1755_v42  ;;  %v1664_v49 = vpop.permute.xlu0 %1663 }
 0x8c1   : > { %v1667_v63 = vsel %vm666_vm2, %v1662_v59, %v1664_v49 }
 0x8c2   : > { %v1666_v45 = vpop.permute.xlu1 %1665 }
 0x8c3   : > { %v1668_v55 = vsel %vm666_vm2, %v1664_v49, %v1666_v45 }
 0x8c4   : > { %v1651_v29 = vpop.permute.xlu0 %1650 }
 0x8c6   : > { %v1678_v35 = vpop.permute.xlu1 %1677 }
 0x8c8   : > { %v1706_v15 = vpop.permute.xlu0 %1705 }
 0x8c9   : > { %v1709_v20 = vsel %vm711_vm15, %v1704_v39, %v1706_v15 }
 0x8ca   : > { %v1708_v26 = vpop.permute.xlu1 %1707  ;;  %v1753_v43 = vsel %vm755_vm13, %v1693_v57, %v1709_v20 }
 0x8cb   : > { %v1710_v54 = vsel %vm711_vm15, %v1706_v15, %v1708_v26 }
 0x8cc   : > { %v1680_v19 = vpop.permute.xlu0 %1679  ;;  %v1754_v33 = vsel %vm755_vm13, %v1694_v4, %v1710_v54 }
 0x8cd   : > { %1825 = vmatprep.subr.mxu0 %v1754_v33  ;;  %v1683_v53 = vsel %vm683_vm1, %v1678_v35, %v1680_v19 }
 0x8ce   : > { %v1682_v10 = vpop.permute.xlu1 %1681  ;;  %1826 = vmatpush2.msra.mxu0 %v1753_v43  ;;  %v1751_v31 = vsel %vm755_vm13, %v1667_v63, %v1683_v53 }
 0x8cf   : > { %v1684_v34 = vsel %vm683_vm1, %v1680_v19, %v1682_v10 }
 0x8d0   : > { %v1649_v28 = vpop.permute.xlu0 %1648  ;;  %v1752_v46 = vsel %vm755_vm13, %v1668_v55, %v1684_v34 }
 0x8d1   : > { %1827 = vmatprep.subr.mxu0 %v1752_v46  ;;  %v1654_v17 = vsel %vm652_vm3, %v1649_v28, %v1651_v29 }
 0x8d2   : > { %v1653_v6 = vpop.permute.xlu1 %1652  ;;  %1828 = vmatpush2.msra.mxu0 %v1751_v31  ;;  %v1749_v37 = vsel %vm755_vm13, %v1626_v1, %v1654_v17 }
 0x8d3   : > { %v1655_v60 = vsel %vm652_vm3, %v1651_v29, %v1653_v6 }
 0x8d4   : > { %v1750_v59 = vsel %vm755_vm13, %v1627_v41, %v1655_v60 }
 0x8d5   : > { %1829 = vmatprep.subr.mxu0 %v1750_v59 }
 0x8d6   : > { %1830 = vmatpush2.msra.mxu0 %v1749_v37 }
 0x8d7   : > { %1831 = vmatprep.subr.mxu0 %v5259_v62 }
 0x8d8   : > { %1832 = vmatpush2.msra.mxu0 %v5263_v0 }
 0x8d9   : > { %1833 = vmatprep.subr.mxu0 %v5269_v8 }
 0x8da   : > { %1834 = vmatpush2.msra.mxu0 %v5275_v12 }
 0x8db   : > { %1836 = vmatmul.mubr.f32.vlgmr.msra.gmra.mxu0 %v5342_v48 }
 0x8dc   : > { %2558 = vmatprep.mubr.f32.mxu0 %v6948_v38 }
 0x99b   : > { %v1837_v22 = vpop.f32.mrf.mxu0 }
 0x99c   : > { %v1842_v2 = vmul.f32 0.2, %v1837_v22 }
 0x99d   : > { %v1839_v23 = vpop.f32.mrf.mxu0 }
 0x99e   : > { %v5389_v7 = vadd.f32 %v4461_v3, %v1842_v2  ;;  %v1843_v56 = vmul.f32 0.2, %v1839_v23 }
 0x9a0   : > { %6956 = vst [vmem:[#allocation12_spill] sm:$0xff] %v5389_v7  ;;  %v5392_v58 = vadd.f32 %v1843_v56, %v6957_v14  ;;  %1849 = vrot.lane.b32.xlu1 %v5389_v7, %s4472_s28 }
 0x9a2   : > { %6958 = vst [vmem:[#allocation13_spill] sm:$0xff] %v5392_v58  ;;  %1851 = vrot.lane.b32.xlu0 %v5392_v58, %s4472_s28 }
 0xa12   : > { %v1850_v62 = vpop.permute.xlu1 %1849 }
 0xa13   : > { %v5399_v0 = vsel %vm568_vm4, 0.0, %v1850_v62 }
 0xa14   : > { %1920 = vrot.lane.b32.xlu0 %v5399_v0, %s4478_s19  ;;  %v1873_v8 = vmul.f32 %v4612_v18, %v5399_v0  ;;  %v1870_v12 = vmul.f32 %v4616_v21, %v5399_v0  ;;  %v1852_v48 = vpop.permute.xlu0 %1851  ;;  %v1878_v40 = vrot.slane %v5399_v0, 4  ;;  %v1861_v42 = vmul.f32 %v4626_v25, %v5399_v0 }
 0xa15   : > { %v5412_v39 = vsel %vm568_vm4, %v1850_v62, %v1852_v48  ;;  %v1858_v47 = vsel %vm568_vm4, %v1852_v48, 0.0  ;;  %v1867_v20 = vmul.f32 %v4644_v32, %v5399_v0  ;;  %v1864_v19 = vmul.f32 %v6951_v24, %v5399_v0 }
 0xa16   : > { %1972 = vrot.lane.b32.xlu1 %v1873_v8, %s4479_s20  ;;  %v1874_v49 = vmul.f32 %v5412_v39, %v4691_v51  ;;  %v1875_v45 = vmul.f32 %v4640_v30, %v1858_v47  ;;  %v1872_v29 = vmul.f32 %v4631_v27, %v1858_v47  ;;  %v1871_v35 = vmul.f32 %v5412_v39, %v4670_v44 }
 0xa17   : > { %v1880_v15 = vrot.slane %v1858_v47, 4  ;;  %v1879_v26 = vrot.slane %v5412_v39, 4  ;;  %v1933_v4 = vrot.slane %v1867_v20, 4  ;;  %v1862_v54 = vmul.f32 %v5412_v39, %v6949_v50 }
 0xa18   : > { %1949 = vrot.lane.b32.xlu0 %v1870_v12, %s4480_s24  ;;  %v1863_v57 = vmul.f32 %v6950_v61, %v1858_v47  ;;  %v1868_v33 = vmul.f32 %v5412_v39, %v6952_v16  ;;  %v1907_v43 = vrot.slane %v1864_v19, 4  ;;  %v1869_v53 = vmul.f32 %v6953_v52, %v1858_v47 }
 0xa19   : > { %v1865_v55 = vmul.f32 %v5412_v39, %v6954_v5  ;;  %v1866_v63 = vmul.f32 %v6955_v13, %v1858_v47 }
 0xa1a   : > { %1959 = vrot.lane.b32.xlu1 %v1878_v40, %s4481_s25  ;;  %v1934_v10 = vrot.slane %v1868_v33, 4  ;;  %v1935_v34 = vrot.slane %v1869_v53, 4 }
 0xa1b   : > { %v1908_v28 = vrot.slane %v1865_v55, 4  ;;  %v1909_v46 = vrot.slane %v1866_v63, 4 }
 0xa1c   : > { %1922 = vrot.lane.b32.xlu0 %v5412_v39, %s4478_s19 }
 0xa1e   : > { %1924 = vrot.lane.b32.xlu1 %v1858_v47, %s4478_s19 }
 0xa20   : > { %1894 = vrot.lane.b32.xlu0 %v1861_v42, %s4482_s26 }
 0xa22   : > { %1974 = vrot.lane.b32.xlu1 %v1874_v49, %s4479_s20 }
 0xa24   : > { %1976 = vrot.lane.b32.xlu0 %v1875_v45, %s4479_s20 }
 0xa26   : > { %1953 = vrot.lane.b32.xlu1 %v1872_v29, %s4480_s24 }
 0xa28   : > { %1951 = vrot.lane.b32.xlu0 %v1871_v35, %s4480_s24 }
 0xa2a   : > { %1963 = vrot.lane.b32.xlu1 %v1880_v15, %s4481_s25 }
 0xa2c   : > { %1961 = vrot.lane.b32.xlu0 %v1879_v26, %s4481_s25 }
 0xa2e   : > { %1936 = vrot.lane.b32.xlu1 %v1933_v4, %s4483_s29 }
 0xa30   : > { %1896 = vrot.lane.b32.xlu0 %v1862_v54, %s4482_s26 }
 0xa32   : > { %1898 = vrot.lane.b32.xlu1 %v1863_v57, %s4482_s26 }
 0xa34   : > { %1883 = vrot.lane.b32.xlu0 %v1879_v26, %s4484_s30 }
 0xa36   : > { %1910 = vrot.lane.b32.xlu1 %v1907_v43, %s4485_s0 }
 0xa38   : > { %1938 = vrot.lane.b32.xlu0 %v1934_v10, %s4483_s29 }
 0xa3a   : > { %1940 = vrot.lane.b32.xlu1 %v1935_v34, %s4483_s29 }
 0xa3c   : > { %1912 = vrot.lane.b32.xlu0 %v1908_v28, %s4485_s0 }
 0xa3e   : > { %1914 = vrot.lane.b32.xlu1 %v1909_v46, %s4485_s0 }
 0xa40   : > { %1881 = vrot.lane.b32.xlu0 %v1878_v40, %s4484_s30 }
 0xa42   : > { %1885 = vrot.lane.b32.xlu1 %v1880_v15, %s4484_s30 }
 0xa86   : > { %v1921_v31 = vpop.permute.xlu0 %1920 }
 0xa88   : > { %v1973_v17 = vpop.permute.xlu1 %1972 }
 0xa8a   : > { %v1950_v6 = vpop.permute.xlu0 %1949 }
 0xa8c   : > { %v1960_v41 = vpop.permute.xlu1 %1959 }
 0xa8e   : > { %v1923_v60 = vpop.permute.xlu0 %1922 }
 0xa8f   : > { %v1926_v53 = vsel %vm694_vm0, %v1921_v31, %v1923_v60 }
 0xa90   : > { %v1925_v1 = vpop.permute.xlu1 %1924 }
 0xa91   : > { %v1927_v33 = vsel %vm694_vm0, %v1923_v60, %v1925_v1 }
 0xa92   : > { %v1895_v59 = vpop.permute.xlu0 %1894 }
 0xa94   : > { %v1975_v37 = vpop.permute.xlu1 %1974 }
 0xa95   : > { %v5459_v22 = vsel %vm750_vm11, %v1973_v17, %v1975_v37 }
 0xa96   : > { %v1977_v2 = vpop.permute.xlu0 %1976  ;;  %v1991_v62 = vsel %vm755_vm13, %v5459_v22, 1.0 }
 0xa97   : > { %v5462_v23 = vsel %vm750_vm11, %v1975_v37, %v1977_v2  ;;  %v1860_v2 = vmul.f32 %v4601_v11, %v5412_v39 }
 0xa98   : > { %v1992_v3 = vsel %vm755_vm13, %v5462_v23, 1.0  ;;  %v1954_v56 = vpop.permute.xlu1 %1953 }
 0xa99   : > { %4371 = vmatprep.subr.msk.mxu1 %vm771_vm14, %v1992_v3 }
 0xa9a   : > { %4372 = vmatpush1.msk.msra.mxu1 %vm771_vm14, %v1991_v62  ;;  %v1952_v8 = vpop.permute.xlu0 %1951  ;;  %v1990_v62 = vld [vmem:[%s6878_s6] sm:$0xf] }
 0xa9b   : > { %v1955_v40 = vsel %vm725_vm10, %v1950_v6, %v1952_v8  ;;  %v1956_v47 = vsel %vm725_vm10, %v1952_v8, %v1954_v56 }
 0xa9c   : > { %v1964_v12 = vpop.permute.xlu1 %1963 }
 0xa9e   : > { %v1962_v48 = vpop.permute.xlu0 %1961 }
 0xa9f   : > { %v1965_v42 = vsel %vm736_vm12, %v1960_v41, %v1962_v48  ;;  %v1966_v49 = vsel %vm736_vm12, %v1962_v48, %v1964_v12 }
 0xaa0   : > { %v1937_v45 = vpop.permute.xlu1 %1936  ;;  %v5475_v29 = vsel %vm755_vm13, %v1956_v47, %v1966_v49  ;;  %v5478_v35 = vsel %vm755_vm13, %v1955_v40, %v1965_v42 }
 0xaa1   : > { %2026 = vmatprep.subr.mxu1 %v5475_v29 }
 0xaa2   : > { %2027 = vmatpush1.msra.mxu1 %v5478_v35  ;;  %v1897_v15 = vpop.permute.xlu0 %1896 }
 0xaa3   : > { %v1900_v31 = vsel %vm666_vm2, %v1895_v59, %v1897_v15  ;;  %v1859_v59 = vmul.f32 %v4597_v9, %v5399_v0 }
 0xaa4   : > { %v1899_v20 = vpop.permute.xlu1 %1898 }
 0xaa5   : > { %v1901_v46 = vsel %vm666_vm2, %v1897_v15, %v1899_v20 }
 0xaa6   : > { %v1884_v26 = vpop.permute.xlu0 %1883 }
 0xaa8   : > { %v1911_v4 = vpop.permute.xlu1 %1910 }
 0xaaa   : > { %v1939_v54 = vpop.permute.xlu0 %1938 }
 0xaab   : > { %v1942_v57 = vsel %vm711_vm15, %v1937_v45, %v1939_v54 }
 0xaac   : > { %v1941_v19 = vpop.permute.xlu1 %1940  ;;  %v5491_v34 = vsel %vm755_vm13, %v1926_v53, %v1942_v57 }
 0xaad   : > { %v1943_v43 = vsel %vm711_vm15, %v1939_v54, %v1941_v19 }
 0xaae   : > { %v5487_v10 = vsel %vm755_vm13, %v1927_v33, %v1943_v43  ;;  %v1913_v55 = vpop.permute.xlu0 %1912 }
 0xaaf   : > { %2028 = vmatprep.subr.mxu1 %v5487_v10  ;;  %v1916_v63 = vsel %vm683_vm1, %v1911_v4, %v1913_v55 }
 0xab0   : > { %v1915_v28 = vpop.permute.xlu1 %1914  ;;  %2029 = vmatpush1.msra.mxu1 %v5491_v34  ;;  %v5503_v60 = vsel %vm755_vm13, %v1900_v31, %v1916_v63 }
 0xab1   : > { %v1917_v17 = vsel %vm683_vm1, %v1913_v55, %v1915_v28 }
 0xab2   : > { %v5499_v6 = vsel %vm755_vm13, %v1901_v46, %v1917_v17  ;;  %v1882_v41 = vpop.permute.xlu0 %1881 }
 0xab3   : > { %2030 = vmatprep.subr.mxu1 %v5499_v6  ;;  %v1887_v1 = vsel %vm652_vm3, %v1882_v41, %v1884_v26 }
 0xab4   : > { %v1886_v37 = vpop.permute.xlu1 %1885  ;;  %2031 = vmatpush1.msra.mxu1 %v5503_v60  ;;  %v5519_v8 = vsel %vm755_vm13, %v1859_v59, %v1887_v1 }
 0xab5   : > { %v1888_v3 = vsel %vm652_vm3, %v1884_v26, %v1886_v37 }
 0xab6   : > { %v5513_v56 = vsel %vm755_vm13, %v1860_v2, %v1888_v3 }
 0xab7   : > { %2032 = vmatprep.subr.mxu1 %v5513_v56 }
 0xab8   : > { %2033 = vmatpush1.msra.mxu1 %v5519_v8 }
 0xab9   : > { %4373 = vmatmul.mubr.msk.f32.vlgmr.msra.gmra.mxu1 %vm6911_vm5, %v1990_v62  ;;  %4374 = vmatprep.subr.msk.mxu1 %vm1039_vm8, %v6947_v36 }
 0xaba   : > { %4375 = vmatpush1.msk.msra.mxu1 %vm1039_vm8, %v6947_v36  ;;  %2326 = vmatprep.mubr.f32.mxu1 %v6948_v38 }
 0xb79   : > { %v2068_v0 = vpop.f32.mrf.mxu1 }
 0xb7a   : > { %vm2073_vm7 = vcmp.ge.f32.partialorder %v2068_v0, 0.0  ;;  %v2075_v39 = vmul.f32 0.01, %v2068_v0 }
 0xb7b   : > { %v2070_v12 = vpop.f32.mrf.mxu1 }
 0xb7c   : > { %vm2074_vm9 = vcmp.ge.f32.partialorder %v2070_v12, 0.0  ;;  %v2076_v48 = vmul.f32 0.01, %v2070_v12  ;;  %v2077_v40 = vsel %vm2073_vm7, %v2068_v0, %v2075_v39 }
 0xb7d   : > { %2081 = vrot.lane.b32.xlu1 %v2077_v40, %s4472_s28 }
 0xb7e   : > { %v2078_v47 = vsel %vm2074_vm9, %v2070_v12, %v2076_v48  ;;  %vm6959_vm9 = vcmask 596992  }
 0xb7f   : > { %2083 = vrot.lane.b32.xlu0 %v2078_v47, %s4472_s28 }
 0xbef   : > { %v2082_v42 = vpop.permute.xlu1 %2081 }
 0xbf0   : > { %v5532_v49 = vsel %vm568_vm4, 0.0, %v2082_v42 }
 0xbf1   : > { %2152 = vrot.lane.b32.xlu0 %v5532_v49, %s4478_s19  ;;  %v2102_v45 = vmul.f32 %v4616_v21, %v5532_v49  ;;  %v2084_v15 = vpop.permute.xlu0 %2083  ;;  %v2110_v20 = vrot.slane %v5532_v49, 4  ;;  %v2105_v54 = vmul.f32 %v4612_v18, %v5532_v49  ;;  %v2093_v57 = vmul.f32 %v4626_v25, %v5532_v49 }
 0xbf2   : > { %v5542_v26 = vsel %vm568_vm4, %v2082_v42, %v2084_v15  ;;  %v2090_v4 = vsel %vm568_vm4, %v2084_v15, 0.0  ;;  %v2099_v63 = vmul.f32 %v4644_v32, %v5532_v49  ;;  %v2096_v41 = vmul.f32 %v6951_v24, %v5532_v49 }
 0xbf3   : > { %2181 = vrot.lane.b32.xlu1 %v2102_v45, %s4480_s24  ;;  %v2103_v19 = vmul.f32 %v5542_v26, %v4670_v44  ;;  %v2104_v33 = vmul.f32 %v4631_v27, %v2090_v4  ;;  %v2111_v43 = vrot.slane %v5542_v26, 4  ;;  %v2112_v53 = vrot.slane %v2090_v4, 4 }
 0xbf4   : > { %v2106_v55 = vmul.f32 %v5542_v26, %v4691_v51  ;;  %v2107_v28 = vmul.f32 %v4640_v30, %v2090_v4  ;;  %v2165_v46 = vrot.slane %v2099_v63, 4  ;;  %v2094_v17 = vmul.f32 %v5542_v26, %v6949_v50 }
 0xbf5   : > { %2191 = vrot.lane.b32.xlu0 %v2110_v20, %s4481_s25  ;;  %v2095_v31 = vmul.f32 %v6950_v61, %v2090_v4  ;;  %v2101_v1 = vmul.f32 %v6953_v52, %v2090_v4  ;;  %v2139_v37 = vrot.slane %v2096_v41, 4  ;;  %v2100_v2 = vmul.f32 %v5542_v26, %v6952_v16 }
 0xbf6   : > { %v2097_v3 = vmul.f32 %v5542_v26, %v6954_v5  ;;  %v2098_v0 = vmul.f32 %v6955_v13, %v2090_v4 }
 0xbf7   : > { %2154 = vrot.lane.b32.xlu1 %v5542_v26, %s4478_s19  ;;  %v2167_v59 = vrot.slane %v2101_v1, 4  ;;  %v2166_v62 = vrot.slane %v2100_v2, 4 }
 0xbf8   : > { %v2140_v39 = vrot.slane %v2097_v3, 4  ;;  %v2141_v12 = vrot.slane %v2098_v0, 4 }
 0xbf9   : > { %2156 = vrot.lane.b32.xlu0 %v2090_v4, %s4478_s19 }
 0xbfb   : > { %2204 = vrot.lane.b32.xlu1 %v2105_v54, %s4479_s20 }
 0xbfd   : > { %2126 = vrot.lane.b32.xlu0 %v2093_v57, %s4482_s26 }
 0xbff   : > { %2183 = vrot.lane.b32.xlu1 %v2103_v19, %s4480_s24 }
 0xc01   : > { %2185 = vrot.lane.b32.xlu0 %v2104_v33, %s4480_s24 }
 0xc03   : > { %2193 = vrot.lane.b32.xlu1 %v2111_v43, %s4481_s25 }
 0xc05   : > { %2195 = vrot.lane.b32.xlu0 %v2112_v53, %s4481_s25 }
 0xc07   : > { %2206 = vrot.lane.b32.xlu1 %v2106_v55, %s4479_s20 }
 0xc09   : > { %2208 = vrot.lane.b32.xlu0 %v2107_v28, %s4479_s20 }
 0xc0b   : > { %2168 = vrot.lane.b32.xlu1 %v2165_v46, %s4483_s29 }
 0xc0d   : > { %2128 = vrot.lane.b32.xlu0 %v2094_v17, %s4482_s26 }
 0xc0f   : > { %2130 = vrot.lane.b32.xlu1 %v2095_v31, %s4482_s26 }
 0xc11   : > { %2115 = vrot.lane.b32.xlu0 %v2111_v43, %s4484_s30 }
 0xc13   : > { %2142 = vrot.lane.b32.xlu1 %v2139_v37, %s4485_s0 }
 0xc15   : > { %2172 = vrot.lane.b32.xlu0 %v2167_v59, %s4483_s29 }
 0xc17   : > { %2170 = vrot.lane.b32.xlu1 %v2166_v62, %s4483_s29 }
 0xc19   : > { %2144 = vrot.lane.b32.xlu0 %v2140_v39, %s4485_s0 }
 0xc1b   : > { %2146 = vrot.lane.b32.xlu1 %v2141_v12, %s4485_s0 }
 0xc1d   : > { %2113 = vrot.lane.b32.xlu0 %v2110_v20, %s4484_s30 }
 0xc1f   : > { %2117 = vrot.lane.b32.xlu1 %v2112_v53, %s4484_s30 }
 0xc63   : > { %v2153_v48 = vpop.permute.xlu0 %2152 }
 0xc65   : > { %v2182_v40 = vpop.permute.xlu1 %2181 }
 0xc67   : > { %v2192_v47 = vpop.permute.xlu0 %2191 }
 0xc69   : > { %v2155_v42 = vpop.permute.xlu1 %2154 }
 0xc6b   : > { %v2157_v45 = vpop.permute.xlu0 %2156 }
 0xc6d   : > { %v2205_v15 = vpop.permute.xlu1 %2204 }
 0xc6f   : > { %v2127_v54 = vpop.permute.xlu0 %2126 }
 0xc71   : > { %v2184_v4 = vpop.permute.xlu1 %2183 }
 0xc72   : > { %v2187_v53 = vsel %vm725_vm10, %v2182_v40, %v2184_v4 }
 0xc73   : > { %v2186_v57 = vpop.permute.xlu0 %2185 }
 0xc74   : > { %v2188_v63 = vsel %vm725_vm10, %v2184_v4, %v2186_v57  ;;  %v2158_v57 = vsel %vm694_vm0, %v2153_v48, %v2155_v42 }
 0xc75   : > { %v2194_v19 = vpop.permute.xlu1 %2193 }
 0xc76   : > { %v2197_v43 = vsel %vm736_vm12, %v2192_v47, %v2194_v19 }
 0xc77   : > { %v2196_v33 = vpop.permute.xlu0 %2195  ;;  %v2218_v17 = vsel %vm755_vm13, %v2187_v53, %v2197_v43 }
 0xc78   : > { %v2198_v55 = vsel %vm736_vm12, %v2194_v19, %v2196_v33  ;;  %v2239_v3 = vrot.slane %v2218_v17, 4  ;;  %v2159_v19 = vsel %vm694_vm0, %v2155_v42, %v2157_v45 }
 0xc79   : > { %v2207_v20 = vpop.permute.xlu1 %2206  ;;  %v2219_v28 = vsel %vm755_vm13, %v2188_v63, %v2198_v55 }
 0xc7a   : > { %v2210_v46 = vsel %vm750_vm11, %v2205_v15, %v2207_v20  ;;  %v2241_v37 = vrot.slane %v2219_v28, 4 }
 0xc7b   : > { %v2209_v31 = vpop.permute.xlu0 %2208  ;;  %v2243_v41 = vrot.slane %v2210_v46, 4 }
 0xc7c   : > { %v2211_v1 = vsel %vm750_vm11, %v2207_v20, %v2209_v31 }
 0xc7d   : > { %v2245_v2 = vrot.slane %v2211_v1, 4  ;;  %v2169_v59 = vpop.permute.xlu1 %2168  ;;  %v5604_v39 = vsel %vm755_vm13, %v2239_v3, %v2243_v41 }
 0xc7f   : > { %v2129_v62 = vpop.permute.xlu0 %2128  ;;  %v5600_v0 = vsel %vm755_vm13, %v2241_v37, %v2245_v2 }
 0xc80   : > { %2276 = vmatprep.subr.mxu1 %v5600_v0  ;;  %v2132_v53 = vsel %vm666_vm2, %v2127_v54, %v2129_v62 }
 0xc81   : > { %v2131_v12 = vpop.permute.xlu1 %2130  ;;  %2277 = vmatpush1.msra.mxu1 %v5604_v39 }
 0xc82   : > { %v2133_v42 = vsel %vm666_vm2, %v2129_v62, %v2131_v12 }
 0xc83   : > { %v2116_v40 = vpop.permute.xlu0 %2115 }
 0xc85   : > { %v2143_v47 = vpop.permute.xlu1 %2142 }
 0xc87   : > { %v2173_v15 = vpop.permute.xlu0 %2172 }
 0xc89   : > { %v2171_v4 = vpop.permute.xlu1 %2170 }
 0xc8a   : > { %v2174_v33 = vsel %vm711_vm15, %v2169_v59, %v2171_v4  ;;  %v2175_v43 = vsel %vm711_vm15, %v2171_v4, %v2173_v15  ;;  %v2091_v59 = vmul.f32 %v4597_v9, %v5532_v49 }
 0xc8b   : > { %v2216_v55 = vsel %vm755_vm13, %v2158_v57, %v2174_v33  ;;  %v2217_v63 = vsel %vm755_vm13, %v2159_v19, %v2175_v43  ;;  %v2145_v20 = vpop.permute.xlu0 %2144 }
 0xc8c   : > { %v2235_v28 = vrot.slane %v2216_v55, 4  ;;  %v2237_v46 = vrot.slane %v2217_v63, 4  ;;  %v2148_v17 = vsel %vm683_vm1, %v2143_v47, %v2145_v20 }
 0xc8d   : > { %v2214_v31 = vsel %vm755_vm13, %v2132_v53, %v2148_v17  ;;  %v2147_v48 = vpop.permute.xlu1 %2146 }
 0xc8e   : > { %v2149_v45 = vsel %vm683_vm1, %v2145_v20, %v2147_v48  ;;  %v5619_v41 = vsel %vm755_vm13, %v2237_v46, %v2241_v37  ;;  %v5622_v1 = vsel %vm755_vm13, %v2235_v28, %v2239_v3  ;;  %v2231_v2 = vrot.slane %v2214_v31, 4 }
 0xc8f   : > { %v2215_v54 = vsel %vm755_vm13, %v2133_v42, %v2149_v45  ;;  %2278 = vmatprep.subr.mxu1 %v5619_v41  ;;  %v2114_v47 = vpop.permute.xlu0 %2113  ;;  %v2092_v3 = vmul.f32 %v4601_v11, %v5542_v26 }
 0xc90   : > { %v2233_v15 = vrot.slane %v2215_v54, 4  ;;  %v2119_v62 = vsel %vm652_vm3, %v2114_v47, %v2116_v40  ;;  %2279 = vmatpush1.msra.mxu1 %v5622_v1  ;;  %v5640_v33 = vsel %vm755_vm13, %v2231_v2, %v2235_v28 }
 0xc91   : > { %v2212_v37 = vsel %vm755_vm13, %v2091_v59, %v2119_v62  ;;  %v2118_v12 = vpop.permute.xlu1 %2117 }
 0xc92   : > { %v2120_v4 = vsel %vm652_vm3, %v2116_v40, %v2118_v12  ;;  %v5635_v57 = vsel %vm755_vm13, %v2233_v15, %v2237_v46  ;;  %v2229_v19 = vrot.slane %v2212_v37, 4 }
 0xc93   : > { %v2213_v49 = vsel %vm755_vm13, %v2092_v3, %v2120_v4  ;;  %2280 = vmatprep.subr.mxu1 %v5635_v57 }
 0xc94   : > { %v2230_v43 = vrot.slane %v2213_v49, 4  ;;  %2281 = vmatpush1.msra.mxu1 %v5640_v33  ;;  %v5648_v26 = vsel %vm755_vm13, %v2229_v19, %v2231_v2  ;;  %v5658_v63 = vsel %vm755_vm13, %v5459_v22, %v2229_v19 }
 0xc96   : > { %v5644_v55 = vsel %vm755_vm13, %v2230_v43, %v2233_v15  ;;  %v5653_v40 = vsel %vm755_vm13, %v5462_v23, %v2230_v43  ;;  %v2220_v23 = vld [vmem:[%s6879_s7] sm:$0xf] }
 0xc97   : > { %2282 = vmatprep.subr.mxu1 %v5644_v55 }
 0xc98   : > { %2283 = vmatpush1.msra.mxu1 %v5648_v26 }
 0xc99   : > { %2284 = vmatprep.subr.mxu1 %v5653_v40 }
 0xc9a   : > { %2285 = vmatpush1.msra.mxu1 %v5658_v63 }
 0xc9b   : > { %2286 = vmatprep.subr.mxu1 %v5475_v29 }
 0xc9c   : > { %2287 = vmatpush1.msra.mxu1 %v5478_v35 }
 0xc9d   : > { %2288 = vmatprep.subr.mxu1 %v5487_v10 }
 0xc9e   : > { %2289 = vmatpush1.msra.mxu1 %v5491_v34 }
 0xc9f   : > { %2290 = vmatprep.subr.mxu1 %v5499_v6 }
 0xca0   : > { %2291 = vmatpush1.msra.mxu1 %v5503_v60 }
 0xca1   : > { %2292 = vmatprep.subr.mxu1 %v5513_v56 }
 0xca2   : > { %2293 = vmatpush1.msra.mxu1 %v5519_v8 }
 0xca3   : > { %4376 = vmatmul.mubr.msk.f32.vlgmr.msra.gmra.mxu1 %vm6959_vm9, %v2220_v23 }
 0xd63   : > { %v2328_v22 = vpop.f32.mrf.mxu1 }
 0xd64   : > { %vm2333_vm7 = vcmp.ge.f32.partialorder %v2328_v22, 0.0  ;;  %v2335_v20 = vmul.f32 0.01, %v2328_v22 }
 0xd65   : > { %v2330_v53 = vpop.f32.mrf.mxu1 }
 0xd66   : > { %vm2334_vm5 = vcmp.ge.f32.partialorder %v2330_v53, 0.0  ;;  %v2336_v28 = vmul.f32 0.01, %v2330_v53  ;;  %v2337_v46 = vsel %vm2333_vm7, %v2328_v22, %v2335_v20 }
 0xd67   : > { %2341 = vrot.lane.b32.xlu1 %v2337_v46, %s4472_s28 }
 0xd68   : > { %v2338_v17 = vsel %vm2334_vm5, %v2330_v53, %v2336_v28 }
 0xd69   : > { %2343 = vrot.lane.b32.xlu0 %v2338_v17, %s4472_s28 }
 0xdd9   : > { %v2342_v31 = vpop.permute.xlu1 %2341 }
 0xdda   : > { %v5676_v48 = vsel %vm568_vm4, 0.0, %v2342_v31 }
 0xddb   : > { %2412 = vrot.lane.b32.xlu0 %v5676_v48, %s4478_s19  ;;  %v2365_v42 = vmul.f32 %v4612_v18, %v5676_v48  ;;  %v2362_v45 = vmul.f32 %v4616_v21, %v5676_v48  ;;  %v2344_v2 = vpop.permute.xlu0 %2343  ;;  %v2370_v54 = vrot.slane %v5676_v48, 4  ;;  %v2353_v15 = vmul.f32 %v4626_v25, %v5676_v48 }
 0xddc   : > { %v5689_v59 = vsel %vm568_vm4, %v2342_v31, %v2344_v2  ;;  %v2350_v47 = vsel %vm568_vm4, %v2344_v2, 0.0  ;;  %v2359_v19 = vmul.f32 %v4644_v32, %v5676_v48  ;;  %v2356_v20 = vmul.f32 %v6951_v24, %v5676_v48 }
 0xddd   : > { %2464 = vrot.lane.b32.xlu1 %v2365_v42, %s4479_s20  ;;  %v2366_v62 = vmul.f32 %v5689_v59, %v4691_v51  ;;  %v2367_v37 = vmul.f32 %v4640_v30, %v2350_v47  ;;  %v2364_v12 = vmul.f32 %v4631_v27, %v2350_v47  ;;  %v2363_v3 = vmul.f32 %v5689_v59, %v4670_v44 }
 0xdde   : > { %v2372_v4 = vrot.slane %v2350_v47, 4  ;;  %v2371_v49 = vrot.slane %v5689_v59, 4  ;;  %v2425_v43 = vrot.slane %v2359_v19, 4  ;;  %v2354_v23 = vmul.f32 %v5689_v59, %v6949_v50 }
 0xddf   : > { %2441 = vrot.lane.b32.xlu0 %v2362_v45, %s4480_s24  ;;  %v2355_v22 = vmul.f32 %v6950_v61, %v2350_v47  ;;  %v2360_v53 = vmul.f32 %v5689_v59, %v6952_v16  ;;  %v2399_v28 = vrot.slane %v2356_v20, 4  ;;  %v2361_v46 = vmul.f32 %v6953_v52, %v2350_v47 }
 0xde0   : > { %v2357_v31 = vmul.f32 %v5689_v59, %v6954_v5  ;;  %v2358_v45 = vmul.f32 %v6955_v13, %v2350_v47 }
 0xde1   : > { %2451 = vrot.lane.b32.xlu1 %v2370_v54, %s4481_s25  ;;  %v2426_v17 = vrot.slane %v2360_v53, 4  ;;  %v2427_v42 = vrot.slane %v2361_v46, 4 }
 0xde2   : > { %v2400_v2 = vrot.slane %v2357_v31, 4 }
 0xde3   : > { %2414 = vrot.lane.b32.xlu0 %v5689_v59, %s4478_s19 }
 0xde5   : > { %2416 = vrot.lane.b32.xlu1 %v2350_v47, %s4478_s19 }
 0xde7   : > { %2386 = vrot.lane.b32.xlu0 %v2353_v15, %s4482_s26  ;;  %v2401_v15 = vrot.slane %v2358_v45, 4 }
 0xde9   : > { %2466 = vrot.lane.b32.xlu1 %v2366_v62, %s4479_s20 }
 0xdeb   : > { %2468 = vrot.lane.b32.xlu0 %v2367_v37, %s4479_s20 }
 0xded   : > { %2445 = vrot.lane.b32.xlu1 %v2364_v12, %s4480_s24 }
 0xdef   : > { %2443 = vrot.lane.b32.xlu0 %v2363_v3, %s4480_s24 }
 0xdf1   : > { %2455 = vrot.lane.b32.xlu1 %v2372_v4, %s4481_s25 }
 0xdf3   : > { %2453 = vrot.lane.b32.xlu0 %v2371_v49, %s4481_s25 }
 0xdf5   : > { %2428 = vrot.lane.b32.xlu1 %v2425_v43, %s4483_s29 }
 0xdf7   : > { %2388 = vrot.lane.b32.xlu0 %v2354_v23, %s4482_s26 }
 0xdf9   : > { %2390 = vrot.lane.b32.xlu1 %v2355_v22, %s4482_s26 }
 0xdfb   : > { %2375 = vrot.lane.b32.xlu0 %v2371_v49, %s4484_s30 }
 0xdfd   : > { %2402 = vrot.lane.b32.xlu1 %v2399_v28, %s4485_s0 }
 0xdff   : > { %2430 = vrot.lane.b32.xlu0 %v2426_v17, %s4483_s29 }
 0xe01   : > { %2432 = vrot.lane.b32.xlu1 %v2427_v42, %s4483_s29 }
 0xe03   : > { %2404 = vrot.lane.b32.xlu0 %v2400_v2, %s4485_s0 }
 0xe05   : > { %2406 = vrot.lane.b32.xlu1 %v2401_v15, %s4485_s0 }
 0xe07   : > { %2373 = vrot.lane.b32.xlu0 %v2370_v54, %s4484_s30 }
 0xe09   : > { %2377 = vrot.lane.b32.xlu1 %v2372_v4, %s4484_s30 }
 0xe4d   : > { %v2413_v62 = vpop.permute.xlu0 %2412 }
 0xe4f   : > { %v2465_v37 = vpop.permute.xlu1 %2464 }
 0xe51   : > { %v2442_v12 = vpop.permute.xlu0 %2441 }
 0xe53   : > { %v2452_v3 = vpop.permute.xlu1 %2451 }
 0xe55   : > { %v2415_v19 = vpop.permute.xlu0 %2414 }
 0xe57   : > { %v2417_v49 = vpop.permute.xlu1 %2416 }
 0xe59   : > { %v2387_v43 = vpop.permute.xlu0 %2386 }
 0xe5b   : > { %v2467_v47 = vpop.permute.xlu1 %2466 }
 0xe5c   : > { %v5736_v23 = vsel %vm750_vm11, %v2465_v37, %v2467_v47 }
 0xe5d   : > { %v2469_v22 = vpop.permute.xlu0 %2468  ;;  %v2483_v4 = vsel %vm755_vm13, %v5736_v23, 1.0 }
 0xe5e   : > { %v5739_v20 = vsel %vm750_vm11, %v2467_v47, %v2469_v22 }
 0xe5f   : > { %v2484_v54 = vsel %vm755_vm13, %v5739_v20, 1.0  ;;  %v2446_v53 = vpop.permute.xlu1 %2445 }
 0xe60   : > { %4377 = vmatprep.subr.msk.mxu0 %vm771_vm14, %v2484_v54 }
 0xe61   : > { %4378 = vmatpush1.msk.msra.mxu0 %vm771_vm14, %v2483_v4  ;;  %v2444_v28 = vpop.permute.xlu0 %2443 }
 0xe62   : > { %v2447_v31 = vsel %vm725_vm10, %v2442_v12, %v2444_v28  ;;  %v2448_v42 = vsel %vm725_vm10, %v2444_v28, %v2446_v53 }
 0xe63   : > { %v2456_v46 = vpop.permute.xlu1 %2455 }
 0xe65   : > { %v2454_v17 = vpop.permute.xlu0 %2453 }
 0xe66   : > { %v2457_v45 = vsel %vm736_vm12, %v2452_v3, %v2454_v17  ;;  %v2458_v2 = vsel %vm736_vm12, %v2454_v17, %v2456_v46  ;;  %v2419_v46 = vsel %vm694_vm0, %v2415_v19, %v2417_v49 }
 0xe67   : > { %v2429_v15 = vpop.permute.xlu1 %2428  ;;  %v5752_v37 = vsel %vm755_vm13, %v2448_v42, %v2458_v2  ;;  %v5755_v47 = vsel %vm755_vm13, %v2447_v31, %v2457_v45  ;;  %v2418_v42 = vsel %vm694_vm0, %v2413_v62, %v2415_v19 }
 0xe68   : > { %2500 = vmatprep.subr.mxu0 %v5752_v37 }
 0xe69   : > { %2501 = vmatpush1.msra.mxu0 %v5755_v47  ;;  %v2389_v22 = vpop.permute.xlu0 %2388 }
 0xe6a   : > { %v2392_v62 = vsel %vm666_vm2, %v2387_v43, %v2389_v22  ;;  %v2351_v43 = vmul.f32 %v4597_v9, %v5676_v48  ;;  %v2482_v48 = vld [vmem:[%s6880_s8] sm:$0xf] }
 0xe6b   : > { %v2391_v54 = vpop.permute.xlu1 %2390 }
 0xe6c   : > { %v2393_v49 = vsel %vm666_vm2, %v2389_v22, %v2391_v54  ;;  %v2352_v54 = vmul.f32 %v4601_v11, %v5689_v59 }
 0xe6d   : > { %v2376_v12 = vpop.permute.xlu0 %2375 }
 0xe6f   : > { %v2403_v4 = vpop.permute.xlu1 %2402 }
 0xe71   : > { %v2431_v53 = vpop.permute.xlu0 %2430 }
 0xe72   : > { %v2434_v3 = vsel %vm711_vm15, %v2429_v15, %v2431_v53 }
 0xe73   : > { %v2433_v28 = vpop.permute.xlu1 %2432  ;;  %v5768_v2 = vsel %vm755_vm13, %v2418_v42, %v2434_v3 }
 0xe74   : > { %v2435_v17 = vsel %vm711_vm15, %v2431_v53, %v2433_v28 }
 0xe75   : > { %v2405_v31 = vpop.permute.xlu0 %2404  ;;  %v5764_v45 = vsel %vm755_vm13, %v2419_v46, %v2435_v17 }
 0xe76   : > { %2502 = vmatprep.subr.mxu0 %v5764_v45  ;;  %v2408_v14 = vsel %vm683_vm1, %v2403_v4, %v2405_v31 }
 0xe77   : > { %v2407_v58 = vpop.permute.xlu1 %2406  ;;  %2503 = vmatpush1.msra.mxu0 %v5768_v2  ;;  %v5780_v3 = vsel %vm755_vm13, %v2392_v62, %v2408_v14 }
 0xe78   : > { %v2409_v15 = vsel %vm683_vm1, %v2405_v31, %v2407_v58 }
 0xe79   : > { %v2374_v19 = vpop.permute.xlu0 %2373  ;;  %v5776_v53 = vsel %vm755_vm13, %v2393_v49, %v2409_v15 }
 0xe7a   : > { %2504 = vmatprep.subr.mxu0 %v5776_v53  ;;  %v2379_v4 = vsel %vm652_vm3, %v2374_v19, %v2376_v12 }
 0xe7b   : > { %v2378_v28 = vpop.permute.xlu1 %2377  ;;  %2505 = vmatpush1.msra.mxu0 %v5780_v3  ;;  %v5794_v14 = vsel %vm755_vm13, %v2351_v43, %v2379_v4 }
 0xe7c   : > { %v2380_v58 = vsel %vm652_vm3, %v2376_v12, %v2378_v28 }
 0xe7d   : > { %v5790_v22 = vsel %vm755_vm13, %v2352_v54, %v2380_v58 }
 0xe7e   : > { %2506 = vmatprep.subr.mxu0 %v5790_v22 }
 0xe7f   : > { %2507 = vmatpush1.msra.mxu0 %v5794_v14 }
 0xe80   : > { %2508 = vmatprep.subr.mxu0 %v5600_v0 }
 0xe81   : > { %2509 = vmatpush1.msra.mxu0 %v5604_v39 }
 0xe82   : > { %2510 = vmatprep.subr.mxu0 %v5619_v41 }
 0xe83   : > { %2511 = vmatpush1.msra.mxu0 %v5622_v1 }
 0xe84   : > { %2512 = vmatprep.subr.mxu0 %v5635_v57 }
 0xe85   : > { %2513 = vmatpush1.msra.mxu0 %v5640_v33 }
 0xe86   : > { %2514 = vmatprep.subr.mxu0 %v5644_v55 }
 0xe87   : > { %2515 = vmatpush1.msra.mxu0 %v5648_v26 }
 0xe88   : > { %2516 = vmatprep.subr.mxu0 %v5653_v40 }
 0xe89   : > { %2517 = vmatpush1.msra.mxu0 %v5658_v63 }
 0xe8a   : > { %2518 = vmatprep.subr.mxu0 %v5475_v29 }
 0xe8b   : > { %2519 = vmatpush1.msra.mxu0 %v5478_v35 }
 0xe8c   : > { %2520 = vmatprep.subr.mxu0 %v5487_v10 }
 0xe8d   : > { %2521 = vmatpush1.msra.mxu0 %v5491_v34 }
 0xe8e   : > { %2522 = vmatprep.subr.mxu0 %v5499_v6 }
 0xe8f   : > { %2523 = vmatpush1.msra.mxu0 %v5503_v60 }
 0xe90   : > { %2524 = vmatprep.subr.mxu0 %v5513_v56 }
 0xe91   : > { %2525 = vmatpush1.msra.mxu0 %v5519_v8 }
 0xe92   : > { %4379 = vmatmul.mubr.msk.f32.vlgmr.msra.gmra.mxu0 %vm1266_vm6, %v2482_v48 }
 0xf52   : > { %v2560_v59 = vpop.f32.mrf.mxu0 }
 0xf53   : > { %vm2565_vm5 = vcmp.ge.f32.partialorder %v2560_v59, 0.0  ;;  %v2567_v12 = vmul.f32 0.01, %v2560_v59 }
 0xf54   : > { %v2562_v46 = vpop.f32.mrf.mxu0 }
 0xf55   : > { %vm2566_vm9 = vcmp.ge.f32.partialorder %v2562_v46, 0.0  ;;  %v2568_v17 = vmul.f32 0.01, %v2562_v46  ;;  %v2569_v42 = vsel %vm2565_vm5, %v2560_v59, %v2567_v12 }
 0xf56   : > { %2573 = vrot.lane.b32.xlu1 %v2569_v42, %s4472_s28 }
 0xf57   : > { %v2570_v31 = vsel %vm2566_vm9, %v2562_v46, %v2568_v17  ;;  %vm6969_vm9 = vcmask 433152  }
 0xf58   : > { %2575 = vrot.lane.b32.xlu0 %v2570_v31, %s4472_s28 }
 0xfc8   : > { %v2574_v49 = vpop.permute.xlu1 %2573 }
 0xfc9   : > { %v5822_v15 = vsel %vm568_vm4, 0.0, %v2574_v49 }
 0xfca   : > { %2644 = vrot.lane.b32.xlu1 %v5822_v15, %s4478_s19  ;;  %v2576_v62 = vpop.permute.xlu0 %2575  ;;  %v2588_v54 = vmul.f32 %v6951_v24, %v5822_v15  ;;  %v2585_v58 = vmul.f32 %v4626_v25, %v5822_v15  ;;  %v2591_v48 = vmul.f32 %v4644_v32, %v5822_v15 }
 0xfcb   : > { %v2582_v19 = vsel %vm568_vm4, %v2576_v62, 0.0  ;;  %v5829_v4 = vsel %vm568_vm4, %v2574_v49, %v2576_v62 }
 0xfcc   : > { %2648 = vrot.lane.b32.xlu0 %v2582_v19, %s4478_s19  ;;  %v2587_v28 = vmul.f32 %v6950_v61, %v2582_v19  ;;  %v2631_v43 = vrot.slane %v2588_v54, 4  ;;  %v2586_v59 = vmul.f32 %v5829_v4, %v6949_v50  ;;  %v2657_v12 = vrot.slane %v2591_v48, 4 }
 0xfcd   : > { %v2590_v46 = vmul.f32 %v6955_v13, %v2582_v19  ;;  %v2603_v17 = vrot.slane %v5829_v4, 4  ;;  %v2589_v42 = vmul.f32 %v5829_v4, %v6954_v5  ;;  %v2593_v49 = vmul.f32 %v6953_v52, %v2582_v19 }
 0xfce   : > { %2646 = vrot.lane.b32.xlu1 %v5829_v4, %s4478_s19  ;;  %v2602_v48 = vrot.slane %v5822_v15, 4 }
 0xfcf   : > { %v2633_v31 = vrot.slane %v2590_v46, 4  ;;  %v2632_v62 = vrot.slane %v2589_v42, 4  ;;  %v2659_v54 = vrot.slane %v2593_v49, 4  ;;  %v2594_v46 = vmul.f32 %v4616_v21, %v5822_v15  ;;  %v5884_v49 = vld [vmem:[%s6881_s9] sm:$0xff] }
 0xfd0   : > { %2622 = vrot.lane.b32.xlu0 %v2587_v28, %s4482_s26  ;;  %v2592_v28 = vmul.f32 %v5829_v4, %v6952_v16  ;;  %v2598_v42 = vmul.f32 %v5829_v4, %v4691_v51 }
 0xfd2   : > { %2618 = vrot.lane.b32.xlu1 %v2585_v58, %s4482_s26  ;;  %v2658_v58 = vrot.slane %v2592_v28, 4 }
 0xfd4   : > { %2634 = vrot.lane.b32.xlu0 %v2631_v43, %s4485_s0  ;;  %v2604_v43 = vrot.slane %v2582_v19, 4 }
 0xfd6   : > { %2620 = vrot.lane.b32.xlu1 %v2586_v59, %s4482_s26  ;;  %v2595_v59 = vmul.f32 %v5829_v4, %v4670_v44 }
 0xfd8   : > { %2660 = vrot.lane.b32.xlu0 %v2657_v12, %s4483_s29  ;;  %v2596_v12 = vmul.f32 %v4631_v27, %v2582_v19 }
 0xfda   : > { %2607 = vrot.lane.b32.xlu1 %v2603_v17, %s4484_s30 }
 0xfdc   : > { %2638 = vrot.lane.b32.xlu0 %v2633_v31, %s4485_s0  ;;  %v2599_v31 = vmul.f32 %v4640_v30, %v2582_v19 }
 0xfde   : > { %2636 = vrot.lane.b32.xlu1 %v2632_v62, %s4485_s0  ;;  %v2752_v62 = vcombine.high %v5884_v49, %v5884_v49 }
 0xfe0   : > { %2664 = vrot.lane.b32.xlu0 %v2659_v54, %s4483_s29  ;;  %4382 = vmatprep.mubr.msk.f32.mxu1 %vm568_vm4, %v2752_v62 }
 0xfe2   : > { %2662 = vrot.lane.b32.xlu1 %v2658_v58, %s4483_s29 }
 0xfe4   : > { %2609 = vrot.lane.b32.xlu0 %v2604_v43, %s4484_s30 }
 0xfe6   : > { %2605 = vrot.lane.b32.xlu1 %v2602_v48, %s4484_s30 }
 0xfe8   : > { %2675 = vrot.lane.b32.xlu0 %v2595_v59, %s4480_s24 }
 0xfea   : > { %2677 = vrot.lane.b32.xlu1 %v2596_v12, %s4480_s24 }
 0xfec   : > { %2685 = vrot.lane.b32.xlu0 %v2603_v17, %s4481_s25  ;;  %v2597_v17 = vmul.f32 %v4612_v18, %v5822_v15 }
 0xfee   : > { %2687 = vrot.lane.b32.xlu1 %v2604_v43, %s4481_s25 }
 0xff0   : > { %2673 = vrot.lane.b32.xlu0 %v2594_v46, %s4480_s24 }
 0xff2   : > { %2683 = vrot.lane.b32.xlu1 %v2602_v48, %s4481_s25 }
 0xff4   : > { %2698 = vrot.lane.b32.xlu0 %v2598_v42, %s4479_s20 }
 0xff6   : > { %2700 = vrot.lane.b32.xlu1 %v2599_v31, %s4479_s20 }
 0xff8   : > { %2696 = vrot.lane.b32.xlu0 %v2597_v17, %s4479_s20 }
0x103c   : > { %v2645_v28 = vpop.permute.xlu1 %2644 }
0x103e   : > { %v2649_v54 = vpop.permute.xlu0 %2648 }
0x1040   : > { %v2647_v19 = vpop.permute.xlu1 %2646 }
0x1041   : > { %v2650_v61 = vsel %vm694_vm0, %v2645_v28, %v2647_v19  ;;  %v2651_v50 = vsel %vm694_vm0, %v2647_v19, %v2649_v54 }
0x1042   : > { %v2623_v58 = vpop.permute.xlu0 %2622 }
0x1044   : > { %v2619_v43 = vpop.permute.xlu1 %2618 }
0x1046   : > { %v2635_v48 = vpop.permute.xlu0 %2634 }
0x1048   : > { %v2621_v59 = vpop.permute.xlu1 %2620 }
0x1049   : > { %v2624_v13 = vsel %vm666_vm2, %v2619_v43, %v2621_v59  ;;  %v2625_v62 = vsel %vm666_vm2, %v2621_v59, %v2623_v58 }
0x104a   : > { %v2661_v12 = vpop.permute.xlu0 %2660 }
0x104c   : > { %v2608_v46 = vpop.permute.xlu1 %2607 }
0x104e   : > { %v2639_v42 = vpop.permute.xlu0 %2638 }
0x1050   : > { %v2637_v31 = vpop.permute.xlu1 %2636 }
0x1051   : > { %v2640_v17 = vsel %vm683_vm1, %v2635_v48, %v2637_v31  ;;  %v2641_v7 = vsel %vm683_vm1, %v2637_v31, %v2639_v42 }
0x1052   : > { %v2665_v5 = vpop.permute.xlu0 %2664  ;;  %v2706_v52 = vsel %vm755_vm13, %v2624_v13, %v2640_v17  ;;  %v2707_v16 = vsel %vm755_vm13, %v2625_v62, %v2641_v7  ;;  %v2584_v13 = vmul.f32 %v4601_v11, %v5829_v4 }
0x1053   : > { %v2723_v44 = vrot.slane %v2706_v52, 4  ;;  %v2725_v7 = vrot.slane %v2707_v16, 4 }
0x1054   : > { %v2663_v24 = vpop.permute.xlu1 %2662 }
0x1055   : > { %v2666_v32 = vsel %vm711_vm15, %v2661_v12, %v2663_v24  ;;  %v2667_v48 = vsel %vm711_vm15, %v2663_v24, %v2665_v5 }
0x1056   : > { %v5900_v42 = vsel %vm755_vm13, %v2650_v61, %v2666_v32  ;;  %v5903_v43 = vsel %vm755_vm13, %v2651_v50, %v2667_v48  ;;  %v2610_v58 = vpop.permute.xlu0 %2609  ;;  %v2583_v32 = vmul.f32 %v4597_v9, %v5822_v15 }
0x1057   : > { %v2727_v28 = vrot.slane %v5900_v42, 4  ;;  %v2729_v54 = vrot.slane %v5903_v43, 4  ;;  %v2612_v19 = vsel %vm652_vm3, %v2608_v46, %v2610_v58 }
0x1058   : > { %v2705_v24 = vsel %vm755_vm13, %v2584_v13, %v2612_v19  ;;  %v2606_v61 = vpop.permute.xlu1 %2605 }
0x1059   : > { %v2722_v52 = vrot.slane %v2705_v24, 4  ;;  %v2611_v50 = vsel %vm652_vm3, %v2606_v61, %v2608_v46  ;;  %v2730_v5 = vsel %vm755_vm13, %v2725_v7, %v2729_v54  ;;  %v2728_v16 = vsel %vm755_vm13, %v2723_v44, %v2727_v28  ;;  %v6960_v61 = vld [vmem:[#allocation7_spill] sm:$0xff] }
0x105a   : > { %v2704_v4 = vsel %vm755_vm13, %v2583_v32, %v2611_v50  ;;  %2755 = vmatprep.subr.mxu1 %v2730_v5  ;;  %2988 = vmatprep.subr.mxu0 %v2730_v5  ;;  %v5921_v12 = vpop.permute.xlu0 %2675  ;;  %v6961_v5 = vld [vmem:[#allocation3_spill] sm:$0xff] }
0x105b   : > { %v2721_v59 = vrot.slane %v2704_v4, 4  ;;  %2756 = vmatpush1.msra.mxu1 %v2728_v16  ;;  %2989 = vmatpush1.msra.mxu0 %v2728_v16  ;;  %v2726_v15 = vsel %vm755_vm13, %v2722_v52, %v2725_v7  ;;  %v2750_v31 = vsel %vm755_vm13, %v5739_v20, %v2722_v52 }
0x105c   : > { %2757 = vmatprep.subr.mxu1 %v2726_v15  ;;  %2990 = vmatprep.subr.mxu0 %v2726_v15  ;;  %v2678_v62 = vpop.permute.xlu1 %2677 }
0x105d   : > { %v2724_v46 = vsel %vm755_vm13, %v2721_v59, %v2723_v44  ;;  %v2749_v17 = vsel %vm755_vm13, %v5736_v23, %v2721_v59 }
0x105e   : > { %2758 = vmatpush1.msra.mxu1 %v2724_v46  ;;  %2991 = vmatpush1.msra.mxu0 %v2724_v46  ;;  %v2686_v48 = vpop.permute.xlu0 %2685  ;;  %v6963_v46 = vld [vmem:[#allocation4_spill] sm:$0xff] }
0x105f   : > { %2759 = vmatprep.subr.mxu1 %v2750_v31  ;;  %2992 = vmatprep.subr.mxu0 %v2750_v31 }
0x1060   : > { %2760 = vmatpush1.msra.mxu1 %v2749_v17  ;;  %2993 = vmatpush1.msra.mxu0 %v2749_v17  ;;  %v2688_v44 = vpop.permute.xlu1 %2687  ;;  %v6964_v17 = vld [vmem:[#allocation5_spill] sm:$0xff] }
0x1061   : > { %2761 = vmatprep.subr.mxu1 %v5752_v37  ;;  %2994 = vmatprep.subr.mxu0 %v5752_v37 }
0x1062   : > { %2762 = vmatpush1.msra.mxu1 %v5755_v47  ;;  %2995 = vmatpush1.msra.mxu0 %v5755_v47  ;;  %v2674_v23 = vpop.permute.xlu0 %2673 }
0x1063   : > { %2763 = vmatprep.subr.mxu1 %v5764_v45  ;;  %2996 = vmatprep.subr.mxu0 %v5764_v45 }
0x1064   : > { %2764 = vmatpush1.msra.mxu1 %v5768_v2  ;;  %2997 = vmatpush1.msra.mxu0 %v5768_v2  ;;  %v2684_v20 = vpop.permute.xlu1 %2683 }
0x1065   : > { %2765 = vmatprep.subr.mxu1 %v5776_v53  ;;  %2998 = vmatprep.subr.mxu0 %v5776_v53 }
0x1066   : > { %2766 = vmatpush1.msra.mxu1 %v5780_v3  ;;  %2999 = vmatpush1.msra.mxu0 %v5780_v3  ;;  %v2699_v37 = vpop.permute.xlu0 %2698 }
0x1067   : > { %2767 = vmatprep.subr.mxu1 %v5790_v22  ;;  %3000 = vmatprep.subr.mxu0 %v5790_v22 }
0x1068   : > { %2768 = vmatpush1.msra.mxu1 %v5794_v14  ;;  %3001 = vmatpush1.msra.mxu0 %v5794_v14 }
0x1069   : > { %2769 = vmatprep.subr.mxu1 %v5600_v0  ;;  %3002 = vmatprep.subr.mxu0 %v5600_v0  ;;  %v2701_v0 = vpop.permute.xlu1 %2700 }
0x106a   : > { %2770 = vmatpush1.msra.mxu1 %v5604_v39  ;;  %3003 = vmatpush1.msra.mxu0 %v5604_v39  ;;  %v2697_v39 = vpop.permute.xlu0 %2696 }
0x106b   : > { %2771 = vmatprep.subr.mxu1 %v5619_v41  ;;  %3004 = vmatprep.subr.mxu0 %v5619_v41  ;;  %v2690_v41 = vsel %vm736_vm12, %v2686_v48, %v2688_v44 }
0x106c   : > { %2772 = vmatpush1.msra.mxu1 %v5622_v1  ;;  %3005 = vmatpush1.msra.mxu0 %v5622_v1  ;;  %v2689_v1 = vsel %vm736_vm12, %v2684_v20, %v2686_v48  ;;  %v6965_v48 = vld [vmem:[#allocation10_spill] sm:$0xff] }
0x106d   : > { %2773 = vmatprep.subr.mxu1 %v5635_v57  ;;  %3006 = vmatprep.subr.mxu0 %v5635_v57  ;;  %v2703_v57 = vsel %vm750_vm11, %v2699_v37, %v2701_v0  ;;  %v6966_v20 = vld [vmem:[#allocation6_spill] sm:$0xff] }
0x106e   : > { %2774 = vmatpush1.msra.mxu1 %v5640_v33  ;;  %3007 = vmatpush1.msra.mxu0 %v5640_v33  ;;  %v2680_v33 = vsel %vm725_vm10, %v5921_v12, %v2678_v62 }
0x106f   : > { %2775 = vmatprep.subr.mxu1 %v5644_v55  ;;  %3008 = vmatprep.subr.mxu0 %v5644_v55  ;;  %v2702_v55 = vsel %vm750_vm11, %v2697_v39, %v2699_v37  ;;  %v6967_v39 = vld [vmem:[#allocation11_spill] sm:$0xff] }
0x1070   : > { %2776 = vmatpush1.msra.mxu1 %v5648_v26  ;;  %3009 = vmatpush1.msra.mxu0 %v5648_v26  ;;  %v2737_v26 = vrot.slane %v2703_v57, 4  ;;  %v6968_v57 = vld [vmem:[#allocation8_spill] sm:$0xff] }
0x1071   : > { %2777 = vmatprep.subr.mxu1 %v5653_v40  ;;  %3010 = vmatprep.subr.mxu0 %v5653_v40  ;;  %v2735_v40 = vrot.slane %v2702_v55, 4 }
0x1072   : > { %2778 = vmatpush1.msra.mxu1 %v5658_v63  ;;  %3011 = vmatpush1.msra.mxu0 %v5658_v63 }
0x1073   : > { %2779 = vmatprep.subr.mxu1 %v5475_v29  ;;  %3012 = vmatprep.subr.mxu0 %v5475_v29  ;;  %v2711_v29 = vsel %vm755_vm13, %v2680_v33, %v2690_v41 }
0x1074   : > { %2780 = vmatpush1.msra.mxu1 %v5478_v35  ;;  %3013 = vmatpush1.msra.mxu0 %v5478_v35  ;;  %v2679_v35 = vsel %vm725_vm10, %v2674_v23, %v5921_v12  ;;  %v6962_v12 = vld [vmem:[#allocation9_spill] sm:$0xff] }
0x1075   : > { %2781 = vmatprep.subr.mxu1 %v5487_v10  ;;  %3014 = vmatprep.subr.mxu0 %v5487_v10  ;;  %v2710_v10 = vsel %vm755_vm13, %v2679_v35, %v2689_v1  ;;  %v6079_v35 = vld [vmem:[%s6882_s10] sm:$0xff] }
0x1076   : > { %2782 = vmatpush1.msra.mxu1 %v5491_v34  ;;  %3015 = vmatpush1.msra.mxu0 %v5491_v34  ;;  %v2733_v34 = vrot.slane %v2711_v29, 4  ;;  %v2731_v63 = vrot.slane %v2710_v10, 4  ;;  %v2979_v10 = vcombine.high %v6079_v35, %v6079_v35 }
0x1077   : > { %2783 = vmatprep.subr.mxu1 %v5499_v6  ;;  %3016 = vmatprep.subr.mxu0 %v5499_v6 }
0x1078   : > { %2784 = vmatpush1.msra.mxu1 %v5503_v60  ;;  %3017 = vmatpush1.msra.mxu0 %v5503_v60  ;;  %v5996_v6 = vsel %vm755_vm13, %v2733_v34, %v2737_v26  ;;  %v6000_v60 = vsel %vm755_vm13, %v2731_v63, %v2735_v40 }
0x1079   : > { %2785 = vmatprep.subr.mxu1 %v5513_v56  ;;  %3018 = vmatprep.subr.mxu0 %v5513_v56  ;;  %v6006_v56 = vsel %vm755_vm13, %v2729_v54, %v2733_v34 }
0x107a   : > { %2786 = vmatpush1.msra.mxu1 %v5519_v8  ;;  %3019 = vmatpush1.msra.mxu0 %v5519_v8  ;;  %v6012_v8 = vsel %vm755_vm13, %v2727_v28, %v2731_v63 }
0x107b   : > { %4380 = vmatprep.subr.msk.mxu1 %vm1039_vm8, %v6947_v36  ;;  %4385 = vmatprep.mubr.msk.f32.mxu0 %vm6969_vm9, %v2979_v10 }
0x107c   : > { %4381 = vmatpush2.msk.msra.mxu1 %vm1039_vm8, %v6947_v36 }
0x107d   : > { %2815 = vmatprep.subr.mxu1 %v5996_v6 }
0x107e   : > { %2816 = vmatpush2.msra.mxu1 %v6000_v60 }
0x107f   : > { %2817 = vmatprep.subr.mxu1 %v6006_v56 }
0x1080   : > { %2818 = vmatpush2.msra.mxu1 %v6012_v8 }
0x1081   : > { %2820 = vmatmul.mubr.f32.vlgmr.msra.gmra.mxu1 %v5884_v49 }
0x1082   : > { %3282 = vmatprep.mubr.f32.mxu1 %v6948_v38 }
0x1141   : > { %v2821_v47 = vpop.f32.mrf.mxu1 }
0x1142   : > { %vm2826_vm7 = vcmp.ge.f32.partialorder %v2821_v47, 0.0  ;;  %v2828_v45 = vmul.f32 0.01, %v2821_v47 }
0x1143   : > { %v2823_v2 = vpop.f32.mrf.mxu1 }
0x1144   : > { %vm2827_vm5 = vcmp.ge.f32.partialorder %v2823_v2, 0.0  ;;  %v2829_v53 = vmul.f32 0.01, %v2823_v2  ;;  %v2830_v3 = vsel %vm2826_vm7, %v2821_v47, %v2828_v45  ;;  %vm6974_vm7 = vcmask 302080  }
0x1145   : > { %2834 = vrot.lane.b32.xlu1 %v2830_v3, %s4472_s28 }
0x1146   : > { %v2831_v22 = vsel %vm2827_vm5, %v2823_v2, %v2829_v53 }
0x1147   : > { %2836 = vrot.lane.b32.xlu0 %v2831_v22, %s4472_s28 }
0x11b7   : > { %v2835_v14 = vpop.permute.xlu1 %2834 }
0x11b8   : > { %v6020_v42 = vsel %vm568_vm4, 0.0, %v2835_v14 }
0x11b9   : > { %2905 = vrot.lane.b32.xlu0 %v6020_v42, %s4478_s19  ;;  %v2858_v49 = vmul.f32 %v4612_v18, %v6020_v42  ;;  %v2855_v43 = vmul.f32 %v4616_v21, %v6020_v42  ;;  %v2837_v58 = vpop.permute.xlu0 %2836  ;;  %v2863_v13 = vrot.slane %v6020_v42, 4  ;;  %v2846_v54 = vmul.f32 %v4626_v25, %v6020_v42 }
0x11ba   : > { %v6033_v7 = vsel %vm568_vm4, %v2835_v14, %v2837_v58  ;;  %v2843_v28 = vsel %vm568_vm4, %v2837_v58, 0.0  ;;  %v2852_v16 = vmul.f32 %v6961_v5, %v6020_v42  ;;  %v2849_v62 = vmul.f32 %v6964_v17, %v6020_v42 }
0x11bb   : > { %2957 = vrot.lane.b32.xlu1 %v2858_v49, %s4479_s20  ;;  %v2859_v19 = vmul.f32 %v6033_v7, %v4691_v51  ;;  %v2860_v24 = vmul.f32 %v4640_v30, %v2843_v28  ;;  %v2857_v32 = vmul.f32 %v4631_v27, %v2843_v28  ;;  %v2856_v52 = vmul.f32 %v6033_v7, %v6960_v61 }
0x11bc   : > { %v2865_v50 = vrot.slane %v2843_v28, 4  ;;  %v2864_v4 = vrot.slane %v6033_v7, 4  ;;  %v2918_v59 = vrot.slane %v2852_v16, 4  ;;  %v2847_v15 = vmul.f32 %v6033_v7, %v6962_v12 }
0x11bd   : > { %2934 = vrot.lane.b32.xlu0 %v2855_v43, %s4480_s24  ;;  %v2848_v31 = vmul.f32 %v6963_v46, %v2843_v28  ;;  %v2853_v44 = vmul.f32 %v6033_v7, %v6965_v48  ;;  %v2892_v23 = vrot.slane %v2849_v62, 4  ;;  %v2854_v37 = vmul.f32 %v6966_v20, %v2843_v28 }
0x11be   : > { %v2850_v41 = vmul.f32 %v6033_v7, %v6967_v39  ;;  %v2851_v33 = vmul.f32 %v6968_v57, %v2843_v28 }
0x11bf   : > { %2944 = vrot.lane.b32.xlu1 %v2863_v13, %s4481_s25  ;;  %v2919_v0 = vrot.slane %v2853_v44, 4  ;;  %v2920_v1 = vrot.slane %v2854_v37, 4 }
0x11c0   : > { %v2893_v55 = vrot.slane %v2850_v41, 4  ;;  %v2894_v29 = vrot.slane %v2851_v33, 4 }
0x11c1   : > { %2907 = vrot.lane.b32.xlu0 %v6033_v7, %s4478_s19 }
0x11c3   : > { %2909 = vrot.lane.b32.xlu1 %v2843_v28, %s4478_s19 }
0x11c5   : > { %2879 = vrot.lane.b32.xlu0 %v2846_v54, %s4482_s26 }
0x11c7   : > { %2959 = vrot.lane.b32.xlu1 %v2859_v19, %s4479_s20 }
0x11c9   : > { %2961 = vrot.lane.b32.xlu0 %v2860_v24, %s4479_s20 }
0x11cb   : > { %2938 = vrot.lane.b32.xlu1 %v2857_v32, %s4480_s24 }
0x11cd   : > { %2936 = vrot.lane.b32.xlu0 %v2856_v52, %s4480_s24 }
0x11cf   : > { %2948 = vrot.lane.b32.xlu1 %v2865_v50, %s4481_s25 }
0x11d1   : > { %2946 = vrot.lane.b32.xlu0 %v2864_v4, %s4481_s25 }
0x11d3   : > { %2921 = vrot.lane.b32.xlu1 %v2918_v59, %s4483_s29 }
0x11d5   : > { %2881 = vrot.lane.b32.xlu0 %v2847_v15, %s4482_s26 }
0x11d7   : > { %2883 = vrot.lane.b32.xlu1 %v2848_v31, %s4482_s26 }
0x11d9   : > { %2868 = vrot.lane.b32.xlu0 %v2864_v4, %s4484_s30 }
0x11db   : > { %2895 = vrot.lane.b32.xlu1 %v2892_v23, %s4485_s0 }
0x11dd   : > { %2923 = vrot.lane.b32.xlu0 %v2919_v0, %s4483_s29 }
0x11df   : > { %2925 = vrot.lane.b32.xlu1 %v2920_v1, %s4483_s29 }
0x11e1   : > { %2897 = vrot.lane.b32.xlu0 %v2893_v55, %s4485_s0 }
0x11e3   : > { %2899 = vrot.lane.b32.xlu1 %v2894_v29, %s4485_s0 }
0x11e5   : > { %2866 = vrot.lane.b32.xlu0 %v2863_v13, %s4484_s30 }
0x11e7   : > { %2870 = vrot.lane.b32.xlu1 %v2865_v50, %s4484_s30 }
0x122b   : > { %v2906_v26 = vpop.permute.xlu0 %2905 }
0x122d   : > { %v2958_v40 = vpop.permute.xlu1 %2957 }
0x122f   : > { %v2935_v34 = vpop.permute.xlu0 %2934 }
0x1231   : > { %v2945_v63 = vpop.permute.xlu1 %2944 }
0x1233   : > { %v2908_v47 = vpop.permute.xlu0 %2907 }
0x1234   : > { %v2911_v1 = vsel %vm694_vm0, %v2906_v26, %v2908_v47 }
0x1235   : > { %v2910_v45 = vpop.permute.xlu1 %2909 }
0x1236   : > { %v2912_v0 = vsel %vm694_vm0, %v2908_v47, %v2910_v45 }
0x1237   : > { %v2880_v2 = vpop.permute.xlu0 %2879 }
0x1239   : > { %v2960_v53 = vpop.permute.xlu1 %2959 }
0x123a   : > { %v2963_v3 = vsel %vm750_vm11, %v2958_v40, %v2960_v53 }
0x123b   : > { %v2962_v22 = vpop.permute.xlu0 %2961  ;;  %v2976_v58 = vsel %vm755_vm13, %v2963_v3, 1.0 }
0x123c   : > { %v2964_v14 = vsel %vm750_vm11, %v2960_v53, %v2962_v22 }
0x123d   : > { %v2977_v49 = vsel %vm755_vm13, %v2964_v14, 1.0  ;;  %v2939_v43 = vpop.permute.xlu1 %2938  ;;  %v2845_v14 = vmul.f32 %v4601_v11, %v6033_v7 }
0x123e   : > { %4383 = vmatprep.subr.msk.mxu0 %vm771_vm14, %v2977_v49 }
0x123f   : > { %4384 = vmatpush2.msk.msra.mxu0 %vm771_vm14, %v2976_v58  ;;  %v2937_v13 = vpop.permute.xlu0 %2936 }
0x1240   : > { %v2940_v19 = vsel %vm725_vm10, %v2935_v34, %v2937_v13  ;;  %v2941_v24 = vsel %vm725_vm10, %v2937_v13, %v2939_v43  ;;  %v2844_v43 = vmul.f32 %v4597_v9, %v6020_v42  ;;  %v6970_v42 = vld [vmem:[#allocation12_spill] sm:$0xff] }
0x1241   : > { %v2949_v28 = vpop.permute.xlu1 %2948 }
0x1243   : > { %v2947_v54 = vpop.permute.xlu0 %2946 }
0x1244   : > { %v2950_v32 = vsel %vm736_vm12, %v2945_v63, %v2947_v54  ;;  %v2951_v52 = vsel %vm736_vm12, %v2947_v54, %v2949_v28 }
0x1245   : > { %v2922_v50 = vpop.permute.xlu1 %2921  ;;  %v2974_v16 = vsel %vm755_vm13, %v2941_v24, %v2951_v52  ;;  %v2973_v4 = vsel %vm755_vm13, %v2940_v19, %v2950_v32  ;;  %v6972_v24 = vld [vmem:[#allocation13_spill] sm:$0xff] }
0x1246   : > { %3040 = vmatprep.subr.mxu0 %v2974_v16 }
0x1247   : > { %3041 = vmatpush2.msra.mxu0 %v2973_v4  ;;  %v2882_v59 = vpop.permute.xlu0 %2881 }
0x1248   : > { %v2885_v45 = vsel %vm666_vm2, %v2880_v2, %v2882_v59 }
0x1249   : > { %v2884_v15 = vpop.permute.xlu1 %2883 }
0x124a   : > { %v2886_v34 = vsel %vm666_vm2, %v2882_v59, %v2884_v15 }
0x124b   : > { %v2869_v31 = vpop.permute.xlu0 %2868 }
0x124d   : > { %v2896_v62 = vpop.permute.xlu1 %2895 }
0x124f   : > { %v2924_v44 = vpop.permute.xlu0 %2923 }
0x1250   : > { %v2927_v23 = vsel %vm711_vm15, %v2922_v50, %v2924_v44 }
0x1251   : > { %v2926_v37 = vpop.permute.xlu1 %2925  ;;  %v2971_v29 = vsel %vm755_vm13, %v2911_v1, %v2927_v23 }
0x1252   : > { %v2928_v41 = vsel %vm711_vm15, %v2924_v44, %v2926_v37 }
0x1253   : > { %v2898_v33 = vpop.permute.xlu0 %2897  ;;  %v2972_v55 = vsel %vm755_vm13, %v2912_v0, %v2928_v41 }
0x1254   : > { %3042 = vmatprep.subr.mxu0 %v2972_v55  ;;  %v2901_v10 = vsel %vm683_vm1, %v2896_v62, %v2898_v33 }
0x1255   : > { %v2900_v40 = vpop.permute.xlu1 %2899  ;;  %3043 = vmatpush2.msra.mxu0 %v2971_v29  ;;  %v2969_v26 = vsel %vm755_vm13, %v2885_v45, %v2901_v10 }
0x1256   : > { %v2902_v63 = vsel %vm683_vm1, %v2898_v33, %v2900_v40 }
0x1257   : > { %v2867_v53 = vpop.permute.xlu0 %2866  ;;  %v2970_v3 = vsel %vm755_vm13, %v2886_v34, %v2902_v63 }
0x1258   : > { %3044 = vmatprep.subr.mxu0 %v2970_v3  ;;  %v2872_v47 = vsel %vm652_vm3, %v2867_v53, %v2869_v31 }
0x1259   : > { %v2871_v22 = vpop.permute.xlu1 %2870  ;;  %3045 = vmatpush2.msra.mxu0 %v2969_v26  ;;  %v2967_v58 = vsel %vm755_vm13, %v2844_v43, %v2872_v47 }
0x125a   : > { %v2873_v49 = vsel %vm652_vm3, %v2869_v31, %v2871_v22 }
0x125b   : > { %v2968_v2 = vsel %vm755_vm13, %v2845_v14, %v2873_v49 }
0x125c   : > { %3046 = vmatprep.subr.mxu0 %v2968_v2 }
0x125d   : > { %3047 = vmatpush2.msra.mxu0 %v2967_v58 }
0x125e   : > { %3048 = vmatprep.subr.mxu0 %v5996_v6 }
0x125f   : > { %3049 = vmatpush2.msra.mxu0 %v6000_v60 }
0x1260   : > { %3050 = vmatprep.subr.mxu0 %v6006_v56 }
0x1261   : > { %3051 = vmatpush2.msra.mxu0 %v6012_v8 }
0x1262   : > { %3053 = vmatmul.mubr.f32.vlgmr.msra.gmra.mxu0 %v6079_v35 }
0x1322   : > { %v3054_v7 = vpop.f32.mrf.mxu0 }
0x1323   : > { %v3059_v13 = vmul.f32 0.2, %v3054_v7 }
0x1324   : > { %v3056_v28 = vpop.f32.mrf.mxu0 }
0x1325   : > { %v6125_v54 = vadd.f32 %v3059_v13, %v6970_v42  ;;  %v3060_v19 = vmul.f32 0.2, %v3056_v28 }
0x1327   : > { %6971 = vst [vmem:[#allocation7_spill] sm:$0xff] %v6125_v54  ;;  %v6128_v32 = vadd.f32 %v3060_v19, %v6972_v24  ;;  %3065 = vrot.lane.b32.xlu1 %v6125_v54, %s4472_s28 }
0x1329   : > { %6973 = vst [vmem:[#allocation12_spill] sm:$0xff] %v6128_v32  ;;  %3067 = vrot.lane.b32.xlu0 %v6128_v32, %s4472_s28 }
0x1399   : > { %v3066_v6 = vpop.permute.xlu1 %3065 }
0x139a   : > { %v6135_v60 = vsel %vm568_vm4, 0.0, %v3066_v6 }
0x139b   : > { %3136 = vrot.lane.b32.xlu0 %v6135_v60, %s4478_s19  ;;  %v3089_v56 = vmul.f32 %v4612_v18, %v6135_v60  ;;  %v3086_v8 = vmul.f32 %v4616_v21, %v6135_v60  ;;  %v3068_v35 = vpop.permute.xlu0 %3067  ;;  %v3094_v52 = vrot.slane %v6135_v60, 4  ;;  %v3077_v4 = vmul.f32 %v4626_v25, %v6135_v60 }
0x139c   : > { %v6148_v50 = vsel %vm568_vm4, %v3066_v6, %v3068_v35  ;;  %v3074_v16 = vsel %vm568_vm4, %v3068_v35, 0.0  ;;  %v3083_v23 = vmul.f32 %v6961_v5, %v6135_v60  ;;  %v3080_v33 = vmul.f32 %v6964_v17, %v6135_v60 }
0x139d   : > { %3188 = vrot.lane.b32.xlu1 %v3089_v56, %s4479_s20  ;;  %v3090_v59 = vmul.f32 %v6148_v50, %v4691_v51  ;;  %v3091_v15 = vmul.f32 %v4640_v30, %v3074_v16  ;;  %v3088_v31 = vmul.f32 %v4631_v27, %v3074_v16  ;;  %v3087_v62 = vmul.f32 %v6148_v50, %v6960_v61 }
0x139e   : > { %v3096_v44 = vrot.slane %v3074_v16, 4  ;;  %v3095_v37 = vrot.slane %v6148_v50, 4  ;;  %v3149_v0 = vrot.slane %v3083_v23, 4  ;;  %v3078_v41 = vmul.f32 %v6148_v50, %v6962_v12 }
0x139f   : > { %3165 = vrot.lane.b32.xlu0 %v3086_v8, %s4480_s24  ;;  %v3079_v1 = vmul.f32 %v6963_v46, %v3074_v16  ;;  %v3084_v55 = vmul.f32 %v6148_v50, %v6965_v48  ;;  %v3123_v29 = vrot.slane %v3080_v33, 4  ;;  %v3085_v10 = vmul.f32 %v6966_v20, %v3074_v16 }
0x13a0   : > { %v3081_v34 = vmul.f32 %v6148_v50, %v6967_v39  ;;  %v3082_v45 = vmul.f32 %v6968_v57, %v3074_v16 }
0x13a1   : > { %3175 = vrot.lane.b32.xlu1 %v3094_v52, %s4481_s25  ;;  %v3150_v40 = vrot.slane %v3084_v55, 4  ;;  %v3151_v63 = vrot.slane %v3085_v10, 4 }
0x13a2   : > { %v3124_v53 = vrot.slane %v3081_v34, 4  ;;  %v3125_v3 = vrot.slane %v3082_v45, 4 }
0x13a3   : > { %3138 = vrot.lane.b32.xlu0 %v6148_v50, %s4478_s19 }
0x13a5   : > { %3140 = vrot.lane.b32.xlu1 %v3074_v16, %s4478_s19 }
0x13a7   : > { %3110 = vrot.lane.b32.xlu0 %v3077_v4, %s4482_s26 }
0x13a9   : > { %3190 = vrot.lane.b32.xlu1 %v3090_v59, %s4479_s20 }
0x13ab   : > { %3192 = vrot.lane.b32.xlu0 %v3091_v15, %s4479_s20 }
0x13ad   : > { %3169 = vrot.lane.b32.xlu1 %v3088_v31, %s4480_s24 }
0x13af   : > { %3167 = vrot.lane.b32.xlu0 %v3087_v62, %s4480_s24 }
0x13b1   : > { %3179 = vrot.lane.b32.xlu1 %v3096_v44, %s4481_s25 }
0x13b3   : > { %3177 = vrot.lane.b32.xlu0 %v3095_v37, %s4481_s25 }
0x13b5   : > { %3152 = vrot.lane.b32.xlu1 %v3149_v0, %s4483_s29 }
0x13b7   : > { %3112 = vrot.lane.b32.xlu0 %v3078_v41, %s4482_s26 }
0x13b9   : > { %3114 = vrot.lane.b32.xlu1 %v3079_v1, %s4482_s26 }
0x13bb   : > { %3099 = vrot.lane.b32.xlu0 %v3095_v37, %s4484_s30 }
0x13bd   : > { %3126 = vrot.lane.b32.xlu1 %v3123_v29, %s4485_s0 }
0x13bf   : > { %3154 = vrot.lane.b32.xlu0 %v3150_v40, %s4483_s29 }
0x13c1   : > { %3156 = vrot.lane.b32.xlu1 %v3151_v63, %s4483_s29 }
0x13c3   : > { %3128 = vrot.lane.b32.xlu0 %v3124_v53, %s4485_s0 }
0x13c5   : > { %3130 = vrot.lane.b32.xlu1 %v3125_v3, %s4485_s0 }
0x13c7   : > { %3097 = vrot.lane.b32.xlu0 %v3094_v52, %s4484_s30 }
0x13c9   : > { %3101 = vrot.lane.b32.xlu1 %v3096_v44, %s4484_s30 }
0x140d   : > { %v3137_v26 = vpop.permute.xlu0 %3136 }
0x140f   : > { %v3189_v47 = vpop.permute.xlu1 %3188 }
0x1411   : > { %v3166_v22 = vpop.permute.xlu0 %3165 }
0x1413   : > { %v3176_v14 = vpop.permute.xlu1 %3175 }
0x1415   : > { %v3139_v49 = vpop.permute.xlu0 %3138 }
0x1416   : > { %v3142_v29 = vsel %vm694_vm0, %v3137_v26, %v3139_v49 }
0x1417   : > { %v3141_v43 = vpop.permute.xlu1 %3140 }
0x1418   : > { %v3143_v33 = vsel %vm694_vm0, %v3139_v49, %v3141_v43 }
0x1419   : > { %v3111_v2 = vpop.permute.xlu0 %3110 }
0x141b   : > { %v3191_v58 = vpop.permute.xlu1 %3190 }
0x141c   : > { %v6195_v7 = vsel %vm750_vm11, %v3189_v47, %v3191_v58 }
0x141d   : > { %v3193_v13 = vpop.permute.xlu0 %3192  ;;  %v3207_v24 = vsel %vm755_vm13, %v6195_v7, 1.0 }
0x141e   : > { %v6198_v28 = vsel %vm750_vm11, %v3191_v58, %v3193_v13  ;;  %v3076_v58 = vmul.f32 %v4601_v11, %v6148_v50 }
0x141f   : > { %v3208_v42 = vsel %vm755_vm13, %v6198_v28, 1.0  ;;  %v3170_v19 = vpop.permute.xlu1 %3169 }
0x1420   : > { %4386 = vmatprep.subr.msk.mxu1 %vm771_vm14, %v3208_v42 }
0x1421   : > { %4387 = vmatpush1.msk.msra.mxu1 %vm771_vm14, %v3207_v24  ;;  %v3168_v6 = vpop.permute.xlu0 %3167 }
0x1422   : > { %v3171_v35 = vsel %vm725_vm10, %v3166_v22, %v3168_v6  ;;  %v3172_v52 = vsel %vm725_vm10, %v3168_v6, %v3170_v19  ;;  %v3206_v19 = vld [vmem:[%s6883_s11] sm:$0xf] }
0x1423   : > { %v3180_v56 = vpop.permute.xlu1 %3179 }
0x1425   : > { %v3178_v8 = vpop.permute.xlu0 %3177 }
0x1426   : > { %v3181_v16 = vsel %vm736_vm12, %v3176_v14, %v3178_v8  ;;  %v3182_v4 = vsel %vm736_vm12, %v3178_v8, %v3180_v56 }
0x1427   : > { %v3153_v59 = vpop.permute.xlu1 %3152  ;;  %v6211_v15 = vsel %vm755_vm13, %v3172_v52, %v3182_v4  ;;  %v6214_v31 = vsel %vm755_vm13, %v3171_v35, %v3181_v16 }
0x1428   : > { %3242 = vmatprep.subr.mxu1 %v6211_v15 }
0x1429   : > { %3243 = vmatpush1.msra.mxu1 %v6214_v31  ;;  %v3113_v62 = vpop.permute.xlu0 %3112 }
0x142a   : > { %v3116_v26 = vsel %vm666_vm2, %v3111_v2, %v3113_v62  ;;  %v3075_v2 = vmul.f32 %v4597_v9, %v6135_v60 }
0x142b   : > { %v3115_v44 = vpop.permute.xlu1 %3114 }
0x142c   : > { %v3117_v53 = vsel %vm666_vm2, %v3113_v62, %v3115_v44 }
0x142d   : > { %v3100_v23 = vpop.permute.xlu0 %3099 }
0x142f   : > { %v3127_v37 = vpop.permute.xlu1 %3126 }
0x1431   : > { %v3155_v0 = vpop.permute.xlu0 %3154 }
0x1432   : > { %v3158_v41 = vsel %vm711_vm15, %v3153_v59, %v3155_v0 }
0x1433   : > { %v3157_v1 = vpop.permute.xlu1 %3156  ;;  %v6227_v34 = vsel %vm755_vm13, %v3142_v29, %v3158_v41 }
0x1434   : > { %v3159_v55 = vsel %vm711_vm15, %v3155_v0, %v3157_v1 }
0x1435   : > { %v6223_v10 = vsel %vm755_vm13, %v3143_v33, %v3159_v55  ;;  %v3129_v40 = vpop.permute.xlu0 %3128 }
0x1436   : > { %3244 = vmatprep.subr.mxu1 %v6223_v10  ;;  %v3132_v63 = vsel %vm683_vm1, %v3127_v37, %v3129_v40 }
0x1437   : > { %v3131_v45 = vpop.permute.xlu1 %3130  ;;  %3245 = vmatpush1.msra.mxu1 %v6227_v34  ;;  %v6239_v14 = vsel %vm755_vm13, %v3116_v26, %v3132_v63 }
0x1438   : > { %v3133_v3 = vsel %vm683_vm1, %v3129_v40, %v3131_v45 }
0x1439   : > { %v6235_v47 = vsel %vm755_vm13, %v3117_v53, %v3133_v3  ;;  %v3098_v22 = vpop.permute.xlu0 %3097 }
0x143a   : > { %3246 = vmatprep.subr.mxu1 %v6235_v47  ;;  %v3103_v49 = vsel %vm652_vm3, %v3098_v22, %v3100_v23 }
0x143b   : > { %v3102_v43 = vpop.permute.xlu1 %3101  ;;  %3247 = vmatpush1.msra.mxu1 %v6239_v14  ;;  %v6255_v24 = vsel %vm755_vm13, %v3075_v2, %v3103_v49 }
0x143c   : > { %v3104_v13 = vsel %vm652_vm3, %v3100_v23, %v3102_v43 }
0x143d   : > { %v6249_v42 = vsel %vm755_vm13, %v3076_v58, %v3104_v13 }
0x143e   : > { %3248 = vmatprep.subr.mxu1 %v6249_v42 }
0x143f   : > { %3249 = vmatpush1.msra.mxu1 %v6255_v24 }
0x1440   : > { %4388 = vmatmul.mubr.msk.f32.vlgmr.msra.gmra.mxu1 %vm6974_vm7, %v3206_v19  ;;  %4389 = vmatprep.subr.msk.mxu1 %vm1039_vm8, %v6947_v36  ;;  %vm6975_vm7 = vcmask 596992  }
0x1441   : > { %4390 = vmatpush1.msk.msra.mxu1 %vm1039_vm8, %v6947_v36  ;;  %3542 = vmatprep.mubr.f32.mxu1 %v6948_v38 }
0x1500   : > { %v3284_v60 = vpop.f32.mrf.mxu1 }
0x1501   : > { %vm3289_vm5 = vcmp.ge.f32.partialorder %v3284_v60, 0.0  ;;  %v3291_v50 = vmul.f32 0.01, %v3284_v60 }
0x1502   : > { %v3286_v6 = vpop.f32.mrf.mxu1 }
0x1503   : > { %vm3290_vm9 = vcmp.ge.f32.partialorder %v3286_v6, 0.0  ;;  %v3292_v56 = vmul.f32 0.01, %v3286_v6  ;;  %v3293_v8 = vsel %vm3289_vm5, %v3284_v60, %v3291_v50 }
0x1504   : > { %3297 = vrot.lane.b32.xlu1 %v3293_v8, %s4472_s28 }
0x1505   : > { %v3294_v35 = vsel %vm3290_vm9, %v3286_v6, %v3292_v56 }
0x1506   : > { %3299 = vrot.lane.b32.xlu0 %v3294_v35, %s4472_s28 }
0x1576   : > { %v3298_v52 = vpop.permute.xlu1 %3297 }
0x1577   : > { %v6268_v16 = vsel %vm568_vm4, 0.0, %v3298_v52 }
0x1578   : > { %3368 = vrot.lane.b32.xlu0 %v6268_v16, %s4478_s19  ;;  %v3318_v4 = vmul.f32 %v4616_v21, %v6268_v16  ;;  %v3300_v59 = vpop.permute.xlu0 %3299  ;;  %v3326_v62 = vrot.slane %v6268_v16, 4  ;;  %v3321_v37 = vmul.f32 %v4612_v18, %v6268_v16  ;;  %v3309_v0 = vmul.f32 %v4626_v25, %v6268_v16 }
0x1579   : > { %v6278_v44 = vsel %vm568_vm4, %v3298_v52, %v3300_v59  ;;  %v3306_v23 = vsel %vm568_vm4, %v3300_v59, 0.0  ;;  %v3315_v40 = vmul.f32 %v6961_v5, %v6268_v16  ;;  %v3312_v26 = vmul.f32 %v6964_v17, %v6268_v16 }
0x157a   : > { %3397 = vrot.lane.b32.xlu1 %v3318_v4, %s4480_s24  ;;  %v3319_v41 = vmul.f32 %v6278_v44, %v6960_v61  ;;  %v3320_v1 = vmul.f32 %v4631_v27, %v3306_v23  ;;  %v3327_v33 = vrot.slane %v6278_v44, 4  ;;  %v3328_v55 = vrot.slane %v3306_v23, 4 }
0x157b   : > { %v3322_v29 = vmul.f32 %v6278_v44, %v4691_v51  ;;  %v3323_v63 = vmul.f32 %v4640_v30, %v3306_v23  ;;  %v3381_v45 = vrot.slane %v3315_v40, 4  ;;  %v3310_v53 = vmul.f32 %v6278_v44, %v6962_v12 }
0x157c   : > { %3407 = vrot.lane.b32.xlu0 %v3326_v62, %s4481_s25  ;;  %v3311_v3 = vmul.f32 %v6963_v46, %v3306_v23  ;;  %v3317_v22 = vmul.f32 %v6966_v20, %v3306_v23  ;;  %v3355_v49 = vrot.slane %v3312_v26, 4  ;;  %v3316_v43 = vmul.f32 %v6278_v44, %v6965_v48 }
0x157d   : > { %v3313_v2 = vmul.f32 %v6278_v44, %v6967_v39  ;;  %v3314_v19 = vmul.f32 %v6968_v57, %v3306_v23 }
0x157e   : > { %3370 = vrot.lane.b32.xlu1 %v6278_v44, %s4478_s19  ;;  %v3383_v58 = vrot.slane %v3317_v22, 4  ;;  %v3382_v13 = vrot.slane %v3316_v43, 4 }
0x157f   : > { %v3356_v60 = vrot.slane %v3313_v2, 4  ;;  %v3357_v50 = vrot.slane %v3314_v19, 4 }
0x1580   : > { %3372 = vrot.lane.b32.xlu0 %v3306_v23, %s4478_s19 }
0x1582   : > { %3420 = vrot.lane.b32.xlu1 %v3321_v37, %s4479_s20 }
0x1584   : > { %3342 = vrot.lane.b32.xlu0 %v3309_v0, %s4482_s26 }
0x1586   : > { %3399 = vrot.lane.b32.xlu1 %v3319_v41, %s4480_s24 }
0x1588   : > { %3401 = vrot.lane.b32.xlu0 %v3320_v1, %s4480_s24 }
0x158a   : > { %3409 = vrot.lane.b32.xlu1 %v3327_v33, %s4481_s25 }
0x158c   : > { %3411 = vrot.lane.b32.xlu0 %v3328_v55, %s4481_s25 }
0x158e   : > { %3422 = vrot.lane.b32.xlu1 %v3322_v29, %s4479_s20 }
0x1590   : > { %3424 = vrot.lane.b32.xlu0 %v3323_v63, %s4479_s20 }
0x1592   : > { %3384 = vrot.lane.b32.xlu1 %v3381_v45, %s4483_s29 }
0x1594   : > { %3344 = vrot.lane.b32.xlu0 %v3310_v53, %s4482_s26 }
0x1596   : > { %3346 = vrot.lane.b32.xlu1 %v3311_v3, %s4482_s26 }
0x1598   : > { %3331 = vrot.lane.b32.xlu0 %v3327_v33, %s4484_s30 }
0x159a   : > { %3358 = vrot.lane.b32.xlu1 %v3355_v49, %s4485_s0 }
0x159c   : > { %3388 = vrot.lane.b32.xlu0 %v3383_v58, %s4483_s29 }
0x159e   : > { %3386 = vrot.lane.b32.xlu1 %v3382_v13, %s4483_s29 }
0x15a0   : > { %3360 = vrot.lane.b32.xlu0 %v3356_v60, %s4485_s0 }
0x15a2   : > { %3362 = vrot.lane.b32.xlu1 %v3357_v50, %s4485_s0 }
0x15a4   : > { %3329 = vrot.lane.b32.xlu0 %v3326_v62, %s4484_s30 }
0x15a6   : > { %3333 = vrot.lane.b32.xlu1 %v3328_v55, %s4484_s30 }
0x15ea   : > { %v3369_v6 = vpop.permute.xlu0 %3368 }
0x15ec   : > { %v3398_v56 = vpop.permute.xlu1 %3397 }
0x15ee   : > { %v3408_v8 = vpop.permute.xlu0 %3407 }
0x15f0   : > { %v3371_v35 = vpop.permute.xlu1 %3370 }
0x15f2   : > { %v3373_v52 = vpop.permute.xlu0 %3372 }
0x15f4   : > { %v3421_v4 = vpop.permute.xlu1 %3420 }
0x15f6   : > { %v3343_v59 = vpop.permute.xlu0 %3342 }
0x15f8   : > { %v3400_v23 = vpop.permute.xlu1 %3399 }
0x15f9   : > { %v3403_v55 = vsel %vm725_vm10, %v3398_v56, %v3400_v23 }
0x15fa   : > { %v3402_v37 = vpop.permute.xlu0 %3401 }
0x15fb   : > { %v3404_v29 = vsel %vm725_vm10, %v3400_v23, %v3402_v37  ;;  %v3374_v23 = vsel %vm694_vm0, %v3369_v6, %v3371_v35  ;;  %v3375_v37 = vsel %vm694_vm0, %v3371_v35, %v3373_v52 }
0x15fc   : > { %v3410_v0 = vpop.permute.xlu1 %3409 }
0x15fd   : > { %v3413_v1 = vsel %vm736_vm12, %v3408_v8, %v3410_v0 }
0x15fe   : > { %v3412_v41 = vpop.permute.xlu0 %3411  ;;  %v3434_v45 = vsel %vm755_vm13, %v3403_v55, %v3413_v1 }
0x15ff   : > { %v3414_v33 = vsel %vm736_vm12, %v3410_v0, %v3412_v41  ;;  %v3455_v58 = vrot.slane %v3434_v45, 4 }
0x1600   : > { %v3423_v62 = vpop.permute.xlu1 %3422  ;;  %v3435_v40 = vsel %vm755_vm13, %v3404_v29, %v3414_v33 }
0x1601   : > { %v3426_v63 = vsel %vm750_vm11, %v3421_v4, %v3423_v62  ;;  %v3457_v22 = vrot.slane %v3435_v40, 4 }
0x1602   : > { %v3425_v53 = vpop.permute.xlu0 %3424  ;;  %v3459_v3 = vrot.slane %v3426_v63, 4 }
0x1603   : > { %v3427_v26 = vsel %vm750_vm11, %v3423_v62, %v3425_v53 }
0x1604   : > { %v3461_v49 = vrot.slane %v3427_v26, 4  ;;  %v3385_v43 = vpop.permute.xlu1 %3384  ;;  %v6340_v19 = vsel %vm755_vm13, %v3455_v58, %v3459_v3 }
0x1606   : > { %v3345_v2 = vpop.permute.xlu0 %3344  ;;  %v6336_v13 = vsel %vm755_vm13, %v3457_v22, %v3461_v49  ;;  %v3307_v49 = vmul.f32 %v4597_v9, %v6268_v16 }
0x1607   : > { %3492 = vmatprep.subr.mxu1 %v6336_v13  ;;  %v3348_v62 = vsel %vm666_vm2, %v3343_v59, %v3345_v2 }
0x1608   : > { %v3347_v60 = vpop.permute.xlu1 %3346  ;;  %3493 = vmatpush1.msra.mxu1 %v6340_v19 }
0x1609   : > { %v3349_v35 = vsel %vm666_vm2, %v3345_v2, %v3347_v60 }
0x160a   : > { %v3332_v50 = vpop.permute.xlu0 %3331 }
0x160c   : > { %v3359_v56 = vpop.permute.xlu1 %3358 }
0x160e   : > { %v3389_v8 = vpop.permute.xlu0 %3388 }
0x1610   : > { %v3387_v4 = vpop.permute.xlu1 %3386 }
0x1611   : > { %v3390_v0 = vsel %vm711_vm15, %v3385_v43, %v3387_v4  ;;  %v3391_v41 = vsel %vm711_vm15, %v3387_v4, %v3389_v8 }
0x1612   : > { %v3432_v1 = vsel %vm755_vm13, %v3374_v23, %v3390_v0  ;;  %v3433_v33 = vsel %vm755_vm13, %v3375_v37, %v3391_v41  ;;  %v3361_v29 = vpop.permute.xlu0 %3360 }
0x1613   : > { %v3451_v55 = vrot.slane %v3432_v1, 4  ;;  %v3453_v40 = vrot.slane %v3433_v33, 4  ;;  %v3364_v63 = vsel %vm683_vm1, %v3359_v56, %v3361_v29 }
0x1614   : > { %v3430_v45 = vsel %vm755_vm13, %v3348_v62, %v3364_v63  ;;  %v3363_v6 = vpop.permute.xlu1 %3362 }
0x1615   : > { %v3365_v52 = vsel %vm683_vm1, %v3361_v29, %v3363_v6  ;;  %v6355_v53 = vsel %vm755_vm13, %v3453_v40, %v3457_v22  ;;  %v6358_v3 = vsel %vm755_vm13, %v3451_v55, %v3455_v58  ;;  %v3447_v26 = vrot.slane %v3430_v45, 4 }
0x1616   : > { %v3431_v59 = vsel %vm755_vm13, %v3349_v35, %v3365_v52  ;;  %3494 = vmatprep.subr.mxu1 %v6355_v53  ;;  %v3330_v43 = vpop.permute.xlu0 %3329  ;;  %v3308_v58 = vmul.f32 %v4601_v11, %v6278_v44 }
0x1617   : > { %v3449_v56 = vrot.slane %v3431_v59, 4  ;;  %v3335_v2 = vsel %vm652_vm3, %v3330_v43, %v3332_v50  ;;  %3495 = vmatpush1.msra.mxu1 %v6358_v3  ;;  %v6376_v37 = vsel %vm755_vm13, %v3447_v26, %v3451_v55 }
0x1618   : > { %v3428_v22 = vsel %vm755_vm13, %v3307_v49, %v3335_v2  ;;  %v3334_v60 = vpop.permute.xlu1 %3333 }
0x1619   : > { %v3336_v8 = vsel %vm652_vm3, %v3332_v50, %v3334_v60  ;;  %v6371_v4 = vsel %vm755_vm13, %v3449_v56, %v3453_v40  ;;  %v3445_v23 = vrot.slane %v3428_v22, 4 }
0x161a   : > { %v3429_v16 = vsel %vm755_vm13, %v3308_v58, %v3336_v8  ;;  %3496 = vmatprep.subr.mxu1 %v6371_v4 }
0x161b   : > { %v3446_v0 = vrot.slane %v3429_v16, 4  ;;  %3497 = vmatpush1.msra.mxu1 %v6376_v37  ;;  %v6384_v44 = vsel %vm755_vm13, %v3445_v23, %v3447_v26  ;;  %v6394_v1 = vsel %vm755_vm13, %v6195_v7, %v3445_v23 }
0x161d   : > { %v6380_v41 = vsel %vm755_vm13, %v3446_v0, %v3449_v56  ;;  %v6389_v50 = vsel %vm755_vm13, %v6198_v28, %v3446_v0  ;;  %v3436_v28 = vld [vmem:[%s6884_s12] sm:$0xf] }
0x161e   : > { %3498 = vmatprep.subr.mxu1 %v6380_v41 }
0x161f   : > { %3499 = vmatpush1.msra.mxu1 %v6384_v44 }
0x1620   : > { %3500 = vmatprep.subr.mxu1 %v6389_v50 }
0x1621   : > { %3501 = vmatpush1.msra.mxu1 %v6394_v1 }
0x1622   : > { %3502 = vmatprep.subr.mxu1 %v6211_v15 }
0x1623   : > { %3503 = vmatpush1.msra.mxu1 %v6214_v31 }
0x1624   : > { %3504 = vmatprep.subr.mxu1 %v6223_v10 }
0x1625   : > { %3505 = vmatpush1.msra.mxu1 %v6227_v34 }
0x1626   : > { %3506 = vmatprep.subr.mxu1 %v6235_v47 }
0x1627   : > { %3507 = vmatpush1.msra.mxu1 %v6239_v14 }
0x1628   : > { %3508 = vmatprep.subr.mxu1 %v6249_v42 }
0x1629   : > { %3509 = vmatpush1.msra.mxu1 %v6255_v24 }
0x162a   : > { %4391 = vmatmul.mubr.msk.f32.vlgmr.msra.gmra.mxu1 %vm6975_vm7, %v3436_v28 }
0x162b   : > { %3774 = vmatprep.mubr.f32.mxu1 %v6948_v38 }
0x16ea   : > { %v3544_v7 = vpop.f32.mrf.mxu1 }
0x16eb   : > { %vm3549_vm5 = vcmp.ge.f32.partialorder %v3544_v7, 0.0  ;;  %v3551_v33 = vmul.f32 0.01, %v3544_v7 }
0x16ec   : > { %v3546_v29 = vpop.f32.mrf.mxu1 }
0x16ed   : > { %vm3550_vm9 = vcmp.ge.f32.partialorder %v3546_v29, 0.0  ;;  %v3552_v62 = vmul.f32 0.01, %v3546_v29  ;;  %v3553_v55 = vsel %vm3549_vm5, %v3544_v7, %v3551_v33 }
0x16ee   : > { %3557 = vrot.lane.b32.xlu1 %v3553_v55, %s4472_s28 }
0x16ef   : > { %v3554_v40 = vsel %vm3550_vm9, %v3546_v29, %v3552_v62 }
0x16f0   : > { %3559 = vrot.lane.b32.xlu0 %v3554_v40, %s4472_s28 }
0x1760   : > { %v3558_v63 = vpop.permute.xlu1 %3557 }
0x1761   : > { %v6413_v45 = vsel %vm568_vm4, 0.0, %v3558_v63 }
0x1762   : > { %3628 = vrot.lane.b32.xlu0 %v6413_v45, %s4478_s19  ;;  %v3581_v38 = vmul.f32 %v4612_v18, %v6413_v45  ;;  %v3578_v6 = vmul.f32 %v4616_v21, %v6413_v45  ;;  %v3560_v35 = vpop.permute.xlu0 %3559  ;;  %v3586_v52 = vrot.slane %v6413_v45, 4  ;;  %v3569_v49 = vmul.f32 %v4626_v25, %v6413_v45 }
0x1763   : > { %v6426_v26 = vsel %vm568_vm4, %v3558_v63, %v3560_v35  ;;  %v3566_v59 = vsel %vm568_vm4, %v3560_v35, 0.0  ;;  %v3575_v58 = vmul.f32 %v6961_v5, %v6413_v45  ;;  %v3572_v28 = vmul.f32 %v6964_v17, %v6413_v45 }
0x1764   : > { %3680 = vrot.lane.b32.xlu1 %v3581_v38, %s4479_s20  ;;  %v3582_v43 = vmul.f32 %v6426_v26, %v4691_v51  ;;  %v3583_v56 = vmul.f32 %v4640_v30, %v3566_v59  ;;  %v3580_v2 = vmul.f32 %v4631_v27, %v3566_v59  ;;  %v3579_v22 = vmul.f32 %v6426_v26, %v6960_v61 }
0x1765   : > { %v3588_v60 = vrot.slane %v3566_v59, 4  ;;  %v3587_v8 = vrot.slane %v6426_v26, 4  ;;  %v3641_v23 = vrot.slane %v3575_v58, 4  ;;  %v3570_v16 = vmul.f32 %v6426_v26, %v6962_v12 }
0x1766   : > { %3657 = vrot.lane.b32.xlu0 %v3578_v6, %s4480_s24  ;;  %v3571_v0 = vmul.f32 %v6963_v46, %v3566_v59  ;;  %v3576_v7 = vmul.f32 %v6426_v26, %v6965_v48  ;;  %v3615_v33 = vrot.slane %v3572_v28, 4  ;;  %v3577_v29 = vmul.f32 %v6966_v20, %v3566_v59 }
0x1767   : > { %v3573_v55 = vmul.f32 %v6426_v26, %v6967_v39  ;;  %v3574_v63 = vmul.f32 %v6968_v57, %v3566_v59 }
0x1768   : > { %3667 = vrot.lane.b32.xlu1 %v3586_v52, %s4481_s25  ;;  %v3642_v62 = vrot.slane %v3576_v7, 4  ;;  %v3643_v40 = vrot.slane %v3577_v29, 4 }
0x1769   : > { %v3616_v38 = vrot.slane %v3573_v55, 4  ;;  %v3617_v6 = vrot.slane %v3574_v63, 4 }
0x176a   : > { %3630 = vrot.lane.b32.xlu0 %v6426_v26, %s4478_s19 }
0x176c   : > { %3632 = vrot.lane.b32.xlu1 %v3566_v59, %s4478_s19 }
0x176e   : > { %3602 = vrot.lane.b32.xlu0 %v3569_v49, %s4482_s26 }
0x1770   : > { %3682 = vrot.lane.b32.xlu1 %v3582_v43, %s4479_s20 }
0x1772   : > { %3684 = vrot.lane.b32.xlu0 %v3583_v56, %s4479_s20 }
0x1774   : > { %3661 = vrot.lane.b32.xlu1 %v3580_v2, %s4480_s24 }
0x1776   : > { %3659 = vrot.lane.b32.xlu0 %v3579_v22, %s4480_s24 }
0x1778   : > { %3671 = vrot.lane.b32.xlu1 %v3588_v60, %s4481_s25 }
0x177a   : > { %3669 = vrot.lane.b32.xlu0 %v3587_v8, %s4481_s25 }
0x177c   : > { %3644 = vrot.lane.b32.xlu1 %v3641_v23, %s4483_s29 }
0x177e   : > { %3604 = vrot.lane.b32.xlu0 %v3570_v16, %s4482_s26 }
0x1780   : > { %3606 = vrot.lane.b32.xlu1 %v3571_v0, %s4482_s26 }
0x1782   : > { %3591 = vrot.lane.b32.xlu0 %v3587_v8, %s4484_s30 }
0x1784   : > { %3618 = vrot.lane.b32.xlu1 %v3615_v33, %s4485_s0 }
0x1786   : > { %3646 = vrot.lane.b32.xlu0 %v3642_v62, %s4483_s29 }
0x1788   : > { %3648 = vrot.lane.b32.xlu1 %v3643_v40, %s4483_s29 }
0x178a   : > { %3620 = vrot.lane.b32.xlu0 %v3616_v38, %s4485_s0 }
0x178c   : > { %3622 = vrot.lane.b32.xlu1 %v3617_v6, %s4485_s0 }
0x178e   : > { %3589 = vrot.lane.b32.xlu0 %v3586_v52, %s4484_s30 }
0x1790   : > { %3593 = vrot.lane.b32.xlu1 %v3588_v60, %s4484_s30 }
0x17d4   : > { %v3629_v35 = vpop.permute.xlu0 %3628 }
0x17d6   : > { %v3681_v49 = vpop.permute.xlu1 %3680 }
0x17d8   : > { %v3658_v43 = vpop.permute.xlu0 %3657 }
0x17da   : > { %v3668_v56 = vpop.permute.xlu1 %3667 }
0x17dc   : > { %v3631_v2 = vpop.permute.xlu0 %3630 }
0x17de   : > { %v3633_v22 = vpop.permute.xlu1 %3632 }
0x17e0   : > { %v3603_v58 = vpop.permute.xlu0 %3602 }
0x17e2   : > { %v3683_v59 = vpop.permute.xlu1 %3682 }
0x17e3   : > { %v6473_v8 = vsel %vm750_vm11, %v3681_v49, %v3683_v59 }
0x17e4   : > { %v3685_v23 = vpop.permute.xlu0 %3684  ;;  %v3699_v60 = vsel %vm755_vm13, %v6473_v8, 1.0 }
0x17e5   : > { %v6476_v16 = vsel %vm750_vm11, %v3683_v59, %v3685_v23 }
0x17e6   : > { %v3700_v52 = vsel %vm755_vm13, %v6476_v16, 1.0  ;;  %v3662_v0 = vpop.permute.xlu1 %3661 }
0x17e7   : > { %4392 = vmatprep.subr.msk.mxu1 %vm771_vm14, %v3700_v52 }
0x17e8   : > { %4393 = vmatpush1.msk.msra.mxu1 %vm771_vm14, %v3699_v60  ;;  %v3660_v28 = vpop.permute.xlu0 %3659  ;;  %v3635_v60 = vsel %vm694_vm0, %v3631_v2, %v3633_v22 }
0x17e9   : > { %v3663_v29 = vsel %vm725_vm10, %v3658_v43, %v3660_v28  ;;  %v3664_v62 = vsel %vm725_vm10, %v3660_v28, %v3662_v0 }
0x17ea   : > { %v3672_v7 = vpop.permute.xlu1 %3671 }
0x17ec   : > { %v3670_v33 = vpop.permute.xlu0 %3669 }
0x17ed   : > { %v3673_v55 = vsel %vm736_vm12, %v3668_v56, %v3670_v33  ;;  %v3674_v40 = vsel %vm736_vm12, %v3670_v33, %v3672_v7  ;;  %v3634_v7 = vsel %vm694_vm0, %v3629_v35, %v3631_v2 }
0x17ee   : > { %v3645_v63 = vpop.permute.xlu1 %3644  ;;  %v6489_v38 = vsel %vm755_vm13, %v3664_v62, %v3674_v40  ;;  %v6492_v6 = vsel %vm755_vm13, %v3663_v29, %v3673_v55 }
0x17ef   : > { %3716 = vmatprep.subr.mxu1 %v6489_v38 }
0x17f0   : > { %3717 = vmatpush1.msra.mxu1 %v6492_v6  ;;  %v3605_v49 = vpop.permute.xlu0 %3604 }
0x17f1   : > { %v3608_v35 = vsel %vm666_vm2, %v3603_v58, %v3605_v49  ;;  %v3567_v58 = vmul.f32 %v4597_v9, %v6413_v45  ;;  %v3698_v45 = vld [vmem:[%s6885_s13] sm:$0xf] }
0x17f2   : > { %v3607_v59 = vpop.permute.xlu1 %3606 }
0x17f3   : > { %v3609_v22 = vsel %vm666_vm2, %v3605_v49, %v3607_v59  ;;  %v3568_v59 = vmul.f32 %v4601_v11, %v6426_v26 }
0x17f4   : > { %v3592_v43 = vpop.permute.xlu0 %3591 }
0x17f6   : > { %v3619_v23 = vpop.permute.xlu1 %3618 }
0x17f8   : > { %v3647_v52 = vpop.permute.xlu0 %3646 }
0x17f9   : > { %v3650_v56 = vsel %vm711_vm15, %v3645_v63, %v3647_v52 }
0x17fa   : > { %v3649_v0 = vpop.permute.xlu1 %3648  ;;  %v6505_v62 = vsel %vm755_vm13, %v3634_v7, %v3650_v56 }
0x17fb   : > { %v3651_v28 = vsel %vm711_vm15, %v3647_v52, %v3649_v0 }
0x17fc   : > { %v3621_v33 = vpop.permute.xlu0 %3620  ;;  %v6501_v29 = vsel %vm755_vm13, %v3635_v60, %v3651_v28 }
0x17fd   : > { %3718 = vmatprep.subr.mxu1 %v6501_v29  ;;  %v3624_v55 = vsel %vm683_vm1, %v3619_v23, %v3621_v33 }
0x17fe   : > { %v3623_v40 = vpop.permute.xlu1 %3622  ;;  %3719 = vmatpush1.msra.mxu1 %v6505_v62  ;;  %v6517_v56 = vsel %vm755_vm13, %v3608_v35, %v3624_v55 }
0x17ff   : > { %v3625_v63 = vsel %vm683_vm1, %v3621_v33, %v3623_v40 }
0x1800   : > { %v3590_v2 = vpop.permute.xlu0 %3589  ;;  %v6513_v52 = vsel %vm755_vm13, %v3609_v22, %v3625_v63 }
0x1801   : > { %3720 = vmatprep.subr.mxu1 %v6513_v52  ;;  %v3595_v23 = vsel %vm652_vm3, %v3590_v2, %v3592_v43 }
0x1802   : > { %v3594_v0 = vpop.permute.xlu1 %3593  ;;  %3721 = vmatpush1.msra.mxu1 %v6517_v56  ;;  %v6531_v28 = vsel %vm755_vm13, %v3567_v58, %v3595_v23 }
0x1803   : > { %v3596_v60 = vsel %vm652_vm3, %v3592_v43, %v3594_v0 }
0x1804   : > { %v6527_v49 = vsel %vm755_vm13, %v3568_v59, %v3596_v60 }
0x1805   : > { %3722 = vmatprep.subr.mxu1 %v6527_v49 }
0x1806   : > { %3723 = vmatpush1.msra.mxu1 %v6531_v28 }
0x1807   : > { %3724 = vmatprep.subr.mxu1 %v6336_v13 }
0x1808   : > { %3725 = vmatpush1.msra.mxu1 %v6340_v19 }
0x1809   : > { %3726 = vmatprep.subr.mxu1 %v6355_v53 }
0x180a   : > { %3727 = vmatpush1.msra.mxu1 %v6358_v3 }
0x180b   : > { %3728 = vmatprep.subr.mxu1 %v6371_v4 }
0x180c   : > { %3729 = vmatpush1.msra.mxu1 %v6376_v37 }
0x180d   : > { %3730 = vmatprep.subr.mxu1 %v6380_v41 }
0x180e   : > { %3731 = vmatpush1.msra.mxu1 %v6384_v44 }
0x180f   : > { %3732 = vmatprep.subr.mxu1 %v6389_v50 }
0x1810   : > { %3733 = vmatpush1.msra.mxu1 %v6394_v1 }
0x1811   : > { %3734 = vmatprep.subr.mxu1 %v6211_v15 }
0x1812   : > { %3735 = vmatpush1.msra.mxu1 %v6214_v31 }
0x1813   : > { %3736 = vmatprep.subr.mxu1 %v6223_v10 }
0x1814   : > { %3737 = vmatpush1.msra.mxu1 %v6227_v34 }
0x1815   : > { %3738 = vmatprep.subr.mxu1 %v6235_v47 }
0x1816   : > { %3739 = vmatpush1.msra.mxu1 %v6239_v14 }
0x1817   : > { %3740 = vmatprep.subr.mxu1 %v6249_v42 }
0x1818   : > { %3741 = vmatpush1.msra.mxu1 %v6255_v24 }
0x1819   : > { %4394 = vmatmul.mubr.msk.f32.vlgmr.msra.gmra.mxu1 %vm1266_vm6, %v3698_v45 }
0x18d9   : > { %v3776_v26 = vpop.f32.mrf.mxu1 }
0x18da   : > { %vm3781_vm7 = vcmp.ge.f32.partialorder %v3776_v26, 0.0  ;;  %v3783_v43 = vmul.f32 0.01, %v3776_v26 }
0x18db   : > { %v3778_v7 = vpop.f32.mrf.mxu1 }
0x18dc   : > { %vm3782_vm5 = vcmp.ge.f32.partialorder %v3778_v7, 0.0  ;;  %v3784_v33 = vmul.f32 0.01, %v3778_v7  ;;  %v3785_v55 = vsel %vm3781_vm7, %v3776_v26, %v3783_v43 }
0x18dd   : > { %3789 = vrot.lane.b32.xlu1 %v3785_v55, %s4472_s28 }
0x18de   : > { %v3786_v40 = vsel %vm3782_vm5, %v3778_v7, %v3784_v33 }
0x18df   : > { %3791 = vrot.lane.b32.xlu0 %v3786_v40, %s4472_s28 }
0x194f   : > { %v3790_v22 = vpop.permute.xlu1 %3789 }
0x1950   : > { %v6559_v63 = vsel %vm568_vm4, 0.0, %v3790_v22 }
0x1951   : > { %3860 = vrot.lane.b32.xlu1 %v6559_v63, %s4478_s19  ;;  %v3792_v35 = vpop.permute.xlu0 %3791  ;;  %v3804_v59 = vmul.f32 %v6964_v17, %v6559_v63  ;;  %v3801_v60 = vmul.f32 %v4626_v25, %v6559_v63  ;;  %v3807_v45 = vmul.f32 %v6961_v5, %v6559_v63 }
0x1952   : > { %v3798_v2 = vsel %vm568_vm4, %v3792_v35, 0.0  ;;  %v6566_v23 = vsel %vm568_vm4, %v3790_v22, %v3792_v35 }
0x1953   : > { %3864 = vrot.lane.b32.xlu0 %v3798_v2, %s4478_s19  ;;  %v3803_v0 = vmul.f32 %v6963_v46, %v3798_v2  ;;  %v3847_v58 = vrot.slane %v3804_v59, 4  ;;  %v3802_v26 = vmul.f32 %v6566_v23, %v6962_v12  ;;  %v3873_v43 = vrot.slane %v3807_v45, 4 }
0x1954   : > { %v3806_v7 = vmul.f32 %v6968_v57, %v3798_v2  ;;  %v3819_v33 = vrot.slane %v6566_v23, 4  ;;  %v3805_v55 = vmul.f32 %v6566_v23, %v6967_v39  ;;  %v3809_v22 = vmul.f32 %v6966_v20, %v3798_v2 }
0x1955   : > { %3862 = vrot.lane.b32.xlu1 %v6566_v23, %s4478_s19  ;;  %v3818_v45 = vrot.slane %v6559_v63, 4 }
0x1956   : > { %v3849_v40 = vrot.slane %v3806_v7, 4  ;;  %v3848_v35 = vrot.slane %v3805_v55, 4  ;;  %v3875_v59 = vrot.slane %v3809_v22, 4  ;;  %v3810_v7 = vmul.f32 %v4616_v21, %v6559_v63  ;;  %v6621_v22 = vld [vmem:[%s6886_s14] sm:$0xff] }
0x1957   : > { %3838 = vrot.lane.b32.xlu0 %v3803_v0, %s4482_s26  ;;  %v3808_v0 = vmul.f32 %v6566_v23, %v6965_v48  ;;  %v3814_v55 = vmul.f32 %v6566_v23, %v4691_v51 }
0x1959   : > { %3834 = vrot.lane.b32.xlu1 %v3801_v60, %s4482_s26  ;;  %v3874_v60 = vrot.slane %v3808_v0, 4 }
0x195b   : > { %3850 = vrot.lane.b32.xlu0 %v3847_v58, %s4485_s0  ;;  %v3820_v58 = vrot.slane %v3798_v2, 4 }
0x195d   : > { %3836 = vrot.lane.b32.xlu1 %v3802_v26, %s4482_s26  ;;  %v3811_v26 = vmul.f32 %v6566_v23, %v6960_v61 }
0x195f   : > { %3876 = vrot.lane.b32.xlu0 %v3873_v43, %s4483_s29  ;;  %v3812_v43 = vmul.f32 %v4631_v27, %v3798_v2 }
0x1961   : > { %3823 = vrot.lane.b32.xlu1 %v3819_v33, %s4484_s30 }
0x1963   : > { %3854 = vrot.lane.b32.xlu0 %v3849_v40, %s4485_s0  ;;  %v3815_v40 = vmul.f32 %v4640_v30, %v3798_v2 }
0x1965   : > { %3852 = vrot.lane.b32.xlu1 %v3848_v35, %s4485_s0  ;;  %v3968_v35 = vcombine.high %v6621_v22, %v6621_v22 }
0x1967   : > { %3880 = vrot.lane.b32.xlu0 %v3875_v59, %s4483_s29  ;;  %4397 = vmatprep.mubr.msk.f32.mxu0 %vm568_vm4, %v3968_v35 }
0x1969   : > { %3878 = vrot.lane.b32.xlu1 %v3874_v60, %s4483_s29 }
0x196b   : > { %3825 = vrot.lane.b32.xlu0 %v3820_v58, %s4484_s30 }
0x196d   : > { %3821 = vrot.lane.b32.xlu1 %v3818_v45, %s4484_s30 }
0x196f   : > { %3891 = vrot.lane.b32.xlu0 %v3811_v26, %s4480_s24 }
0x1971   : > { %3893 = vrot.lane.b32.xlu1 %v3812_v43, %s4480_s24 }
0x1973   : > { %3901 = vrot.lane.b32.xlu0 %v3819_v33, %s4481_s25  ;;  %v3813_v33 = vmul.f32 %v4612_v18, %v6559_v63 }
0x1975   : > { %3903 = vrot.lane.b32.xlu1 %v3820_v58, %s4481_s25 }
0x1977   : > { %3889 = vrot.lane.b32.xlu0 %v3810_v7, %s4480_s24 }
0x1979   : > { %3899 = vrot.lane.b32.xlu1 %v3818_v45, %s4481_s25 }
0x197b   : > { %3914 = vrot.lane.b32.xlu0 %v3814_v55, %s4479_s20 }
0x197d   : > { %3916 = vrot.lane.b32.xlu1 %v3815_v40, %s4479_s20 }
0x197f   : > { %3912 = vrot.lane.b32.xlu0 %v3813_v33, %s4479_s20 }
0x19c3   : > { %v3861_v0 = vpop.permute.xlu1 %3860 }
0x19c5   : > { %v3865_v59 = vpop.permute.xlu0 %3864 }
0x19c7   : > { %v3863_v2 = vpop.permute.xlu1 %3862 }
0x19c8   : > { %v3866_v17 = vsel %vm694_vm0, %v3861_v0, %v3863_v2  ;;  %v3867_v46 = vsel %vm694_vm0, %v3863_v2, %v3865_v59 }
0x19c9   : > { %v3839_v60 = vpop.permute.xlu0 %3838 }
0x19cb   : > { %v3835_v58 = vpop.permute.xlu1 %3834 }
0x19cd   : > { %v3851_v45 = vpop.permute.xlu0 %3850 }
0x19cf   : > { %v3837_v26 = vpop.permute.xlu1 %3836 }
0x19d0   : > { %v3840_v54 = vsel %vm666_vm2, %v3835_v58, %v3837_v26  ;;  %v3841_v35 = vsel %vm666_vm2, %v3837_v26, %v3839_v60 }
0x19d1   : > { %v3877_v43 = vpop.permute.xlu0 %3876 }
0x19d3   : > { %v3824_v7 = vpop.permute.xlu1 %3823 }
0x19d5   : > { %v3855_v55 = vpop.permute.xlu0 %3854 }
0x19d7   : > { %v3853_v40 = vpop.permute.xlu1 %3852 }
0x19d8   : > { %v3856_v33 = vsel %vm683_vm1, %v3851_v45, %v3853_v40  ;;  %v3857_v32 = vsel %vm683_vm1, %v3853_v40, %v3855_v55 }
0x19d9   : > { %v3881_v57 = vpop.permute.xlu0 %3880  ;;  %v3922_v39 = vsel %vm755_vm13, %v3840_v54, %v3856_v33  ;;  %v3923_v20 = vsel %vm755_vm13, %v3841_v35, %v3857_v32  ;;  %v3800_v54 = vmul.f32 %v4601_v11, %v6566_v23 }
0x19da   : > { %v3939_v5 = vrot.slane %v3922_v39, 4  ;;  %v3941_v32 = vrot.slane %v3923_v20, 4 }
0x19db   : > { %v3879_v48 = vpop.permute.xlu1 %3878 }
0x19dc   : > { %v3882_v12 = vsel %vm711_vm15, %v3877_v43, %v3879_v48  ;;  %v3883_v45 = vsel %vm711_vm15, %v3879_v48, %v3881_v57 }
0x19dd   : > { %v6637_v55 = vsel %vm755_vm13, %v3866_v17, %v3882_v12  ;;  %v6640_v58 = vsel %vm755_vm13, %v3867_v46, %v3883_v45  ;;  %v3826_v60 = vpop.permute.xlu0 %3825  ;;  %v3799_v12 = vmul.f32 %v4597_v9, %v6559_v63 }
0x19de   : > { %v3943_v0 = vrot.slane %v6637_v55, 4  ;;  %v3945_v59 = vrot.slane %v6640_v58, 4  ;;  %v3828_v2 = vsel %vm652_vm3, %v3824_v7, %v3826_v60 }
0x19df   : > { %v3921_v48 = vsel %vm755_vm13, %v3800_v54, %v3828_v2  ;;  %v3822_v17 = vpop.permute.xlu1 %3821 }
0x19e0   : > { %v3938_v39 = vrot.slane %v3921_v48, 4  ;;  %v3827_v46 = vsel %vm652_vm3, %v3822_v17, %v3824_v7  ;;  %v3946_v57 = vsel %vm755_vm13, %v3941_v32, %v3945_v59  ;;  %v3944_v20 = vsel %vm755_vm13, %v3939_v5, %v3943_v0  ;;  %v6976_v48 = vld [vmem:[#allocation3_spill] sm:$0xff] }
0x19e1   : > { %v3920_v23 = vsel %vm755_vm13, %v3799_v12, %v3827_v46  ;;  %3971 = vmatprep.subr.mxu0 %v3946_v57  ;;  %4204 = vmatprep.subr.mxu1 %v3946_v57  ;;  %v6658_v43 = vpop.permute.xlu0 %3891  ;;  %v6979_v46 = vld [vmem:[#allocation5_spill] sm:$0xff] }
0x19e2   : > { %v3937_v26 = vrot.slane %v3920_v23, 4  ;;  %3972 = vmatpush1.msra.mxu0 %v3944_v20  ;;  %4205 = vmatpush1.msra.mxu1 %v3944_v20  ;;  %v3942_v63 = vsel %vm755_vm13, %v3938_v39, %v3941_v32  ;;  %v3966_v40 = vsel %vm755_vm13, %v6476_v16, %v3938_v39  ;;  %v6980_v20 = vld [vmem:[#allocation10_spill] sm:$0xff] }
0x19e3   : > { %3973 = vmatprep.subr.mxu0 %v3942_v63  ;;  %4206 = vmatprep.subr.mxu1 %v3942_v63  ;;  %v3894_v35 = vpop.permute.xlu1 %3893 }
0x19e4   : > { %v3940_v7 = vsel %vm755_vm13, %v3937_v26, %v3939_v5  ;;  %v3965_v33 = vsel %vm755_vm13, %v6473_v8, %v3937_v26 }
0x19e5   : > { %3974 = vmatpush1.msra.mxu0 %v3940_v7  ;;  %4207 = vmatpush1.msra.mxu1 %v3940_v7  ;;  %v3902_v45 = vpop.permute.xlu0 %3901 }
0x19e6   : > { %3975 = vmatprep.subr.mxu0 %v3966_v40  ;;  %4208 = vmatprep.subr.mxu1 %v3966_v40  ;;  %v6982_v40 = vld [vmem:[#allocation11_spill] sm:$0xff] }
0x19e7   : > { %3976 = vmatpush1.msra.mxu0 %v3965_v33  ;;  %4209 = vmatpush1.msra.mxu1 %v3965_v33  ;;  %v3904_v5 = vpop.permute.xlu1 %3903 }
0x19e8   : > { %3977 = vmatprep.subr.mxu0 %v6489_v38  ;;  %4210 = vmatprep.subr.mxu1 %v6489_v38 }
0x19e9   : > { %3978 = vmatpush1.msra.mxu0 %v6492_v6  ;;  %4211 = vmatpush1.msra.mxu1 %v6492_v6  ;;  %v3890_v8 = vpop.permute.xlu0 %3889 }
0x19ea   : > { %3979 = vmatprep.subr.mxu0 %v6501_v29  ;;  %4212 = vmatprep.subr.mxu1 %v6501_v29 }
0x19eb   : > { %3980 = vmatpush1.msra.mxu0 %v6505_v62  ;;  %4213 = vmatpush1.msra.mxu1 %v6505_v62  ;;  %v3900_v16 = vpop.permute.xlu1 %3899 }
0x19ec   : > { %3981 = vmatprep.subr.mxu0 %v6513_v52  ;;  %4214 = vmatprep.subr.mxu1 %v6513_v52 }
0x19ed   : > { %3982 = vmatpush1.msra.mxu0 %v6517_v56  ;;  %4215 = vmatpush1.msra.mxu1 %v6517_v56  ;;  %v3915_v38 = vpop.permute.xlu0 %3914 }
0x19ee   : > { %3983 = vmatprep.subr.mxu0 %v6527_v49  ;;  %4216 = vmatprep.subr.mxu1 %v6527_v49 }
0x19ef   : > { %3984 = vmatpush1.msra.mxu0 %v6531_v28  ;;  %4217 = vmatpush1.msra.mxu1 %v6531_v28 }
0x19f0   : > { %3985 = vmatprep.subr.mxu0 %v6336_v13  ;;  %4218 = vmatprep.subr.mxu1 %v6336_v13  ;;  %v3917_v13 = vpop.permute.xlu1 %3916 }
0x19f1   : > { %3986 = vmatpush1.msra.mxu0 %v6340_v19  ;;  %4219 = vmatpush1.msra.mxu1 %v6340_v19  ;;  %v3913_v19 = vpop.permute.xlu0 %3912 }
0x19f2   : > { %3987 = vmatprep.subr.mxu0 %v6355_v53  ;;  %4220 = vmatprep.subr.mxu1 %v6355_v53  ;;  %v3906_v53 = vsel %vm736_vm12, %v3902_v45, %v3904_v5 }
0x19f3   : > { %3988 = vmatpush1.msra.mxu0 %v6358_v3  ;;  %4221 = vmatpush1.msra.mxu1 %v6358_v3  ;;  %v3905_v3 = vsel %vm736_vm12, %v3900_v16, %v3902_v45  ;;  %v6983_v45 = vld [vmem:[#allocation8_spill] sm:$0xff] }
0x19f4   : > { %3989 = vmatprep.subr.mxu0 %v6371_v4  ;;  %4222 = vmatprep.subr.mxu1 %v6371_v4  ;;  %v3919_v4 = vsel %vm750_vm11, %v3915_v38, %v3917_v13 }
0x19f5   : > { %3990 = vmatpush1.msra.mxu0 %v6376_v37  ;;  %4223 = vmatpush1.msra.mxu1 %v6376_v37  ;;  %v3896_v37 = vsel %vm725_vm10, %v6658_v43, %v3894_v35 }
0x19f6   : > { %3991 = vmatprep.subr.mxu0 %v6380_v41  ;;  %4224 = vmatprep.subr.mxu1 %v6380_v41  ;;  %v3918_v41 = vsel %vm750_vm11, %v3913_v19, %v3915_v38  ;;  %v6815_v38 = vld [vmem:[%s6887_s15] sm:$0xff] }
0x19f7   : > { %3992 = vmatpush1.msra.mxu0 %v6384_v44  ;;  %4225 = vmatpush1.msra.mxu1 %v6384_v44  ;;  %v3953_v44 = vrot.slane %v3919_v4, 4  ;;  %v4195_v13 = vcombine.high %v6815_v38, %v6815_v38 }
0x19f8   : > { %3993 = vmatprep.subr.mxu0 %v6389_v50  ;;  %4226 = vmatprep.subr.mxu1 %v6389_v50  ;;  %v3951_v50 = vrot.slane %v3918_v41, 4 }
0x19f9   : > { %3994 = vmatpush1.msra.mxu0 %v6394_v1  ;;  %4227 = vmatpush1.msra.mxu1 %v6394_v1 }
0x19fa   : > { %3995 = vmatprep.subr.mxu0 %v6211_v15  ;;  %4228 = vmatprep.subr.mxu1 %v6211_v15  ;;  %v3927_v15 = vsel %vm755_vm13, %v3896_v37, %v3906_v53 }
0x19fb   : > { %3996 = vmatpush1.msra.mxu0 %v6214_v31  ;;  %4229 = vmatpush1.msra.mxu1 %v6214_v31  ;;  %v3895_v31 = vsel %vm725_vm10, %v3890_v8, %v6658_v43  ;;  %v6981_v43 = vld [vmem:[#allocation6_spill] sm:$0xff] }
0x19fc   : > { %3997 = vmatprep.subr.mxu0 %v6223_v10  ;;  %4230 = vmatprep.subr.mxu1 %v6223_v10  ;;  %v3926_v10 = vsel %vm755_vm13, %v3895_v31, %v3905_v3 }
0x19fd   : > { %3998 = vmatpush1.msra.mxu0 %v6227_v34  ;;  %4231 = vmatpush1.msra.mxu1 %v6227_v34  ;;  %v3949_v34 = vrot.slane %v3927_v15, 4  ;;  %v3947_v1 = vrot.slane %v3926_v10, 4 }
0x19fe   : > { %3999 = vmatprep.subr.mxu0 %v6235_v47  ;;  %4232 = vmatprep.subr.mxu1 %v6235_v47 }
0x19ff   : > { %4000 = vmatpush1.msra.mxu0 %v6239_v14  ;;  %4233 = vmatpush1.msra.mxu1 %v6239_v14  ;;  %v6733_v47 = vsel %vm755_vm13, %v3949_v34, %v3953_v44  ;;  %v6737_v14 = vsel %vm755_vm13, %v3947_v1, %v3951_v50 }
0x1a00   : > { %4001 = vmatprep.subr.mxu0 %v6249_v42  ;;  %4234 = vmatprep.subr.mxu1 %v6249_v42  ;;  %v6743_v42 = vsel %vm755_vm13, %v3945_v59, %v3949_v34 }
0x1a01   : > { %4002 = vmatpush1.msra.mxu0 %v6255_v24  ;;  %4235 = vmatpush1.msra.mxu1 %v6255_v24 }
0x1a02   : > { %4395 = vmatprep.subr.msk.mxu0 %vm1039_vm8, %v6947_v36 }
0x1a03   : > { %4396 = vmatpush2.msk.msra.mxu0 %vm1039_vm8, %v6947_v36  ;;  %v6749_v36 = vsel %vm755_vm13, %v3943_v0, %v3947_v1 }
0x1a04   : > { %4031 = vmatprep.subr.mxu0 %v6733_v47 }
0x1a05   : > { %4032 = vmatpush2.msra.mxu0 %v6737_v14 }
0x1a06   : > { %4033 = vmatprep.subr.mxu0 %v6743_v42 }
0x1a07   : > { %4034 = vmatpush2.msra.mxu0 %v6749_v36 }
0x1a08   : > { %4036 = vmatmul.mubr.f32.vlgmr.msra.gmra.mxu0 %v6621_v22 }
0x1ac8   : > { %v4037_v24 = vpop.f32.mrf.mxu0 }
0x1ac9   : > { %vm4042_vm8 = vcmp.ge.f32.partialorder %v4037_v24, 0.0  ;;  %v4044_v6 = vmul.f32 0.01, %v4037_v24 }
0x1aca   : > { %v4039_v29 = vpop.f32.mrf.mxu0 }
0x1acb   : > { %vm4043_vm6 = vcmp.ge.f32.partialorder %v4039_v29, 0.0  ;;  %v4045_v62 = vmul.f32 0.01, %v4039_v29  ;;  %v4046_v52 = vsel %vm4042_vm8, %v4037_v24, %v4044_v6 }
0x1acc   : > { %4050 = vrot.lane.b32.xlu1 %v4046_v52, %s4472_s28 }
0x1acd   : > { %v4047_v56 = vsel %vm4043_vm6, %v4039_v29, %v4045_v62 }
0x1ace   : > { %4052 = vrot.lane.b32.xlu0 %v4047_v56, %s4472_s28 }
0x1b3e   : > { %v4051_v49 = vpop.permute.xlu1 %4050 }
0x1b3f   : > { %v6756_v28 = vsel %vm568_vm4, 0.0, %v4051_v49 }
0x1b40   : > { %4121 = vrot.lane.b32.xlu0 %v6756_v28, %s4478_s19  ;;  %v4074_v22 = vmul.f32 %v4612_v18, %v6756_v28  ;;  %v4071_v55 = vmul.f32 %v4616_v21, %v6756_v28  ;;  %v4053_v58 = vpop.permute.xlu0 %4052  ;;  %v4079_v60 = vrot.slane %v6756_v28, 4  ;;  %v4062_v21 = vmul.f32 %v4626_v25, %v6756_v28 }
0x1b41   : > { %v6769_v54 = vsel %vm568_vm4, %v4051_v49, %v4053_v58  ;;  %v4059_v18 = vsel %vm568_vm4, %v4053_v58, 0.0  ;;  %v4068_v12 = vmul.f32 %v6976_v48, %v6756_v28  ;;  %v4065_v57 = vmul.f32 %v6979_v46, %v6756_v28 }
0x1b42   : > { %4173 = vrot.lane.b32.xlu1 %v4074_v22, %s4479_s20  ;;  %v4075_v32 = vmul.f32 %v6769_v54, %v4691_v51  ;;  %v4076_v0 = vmul.f32 %v4640_v30, %v4059_v18  ;;  %v4073_v59 = vmul.f32 %v4631_v27, %v4059_v18  ;;  %v4072_v2 = vmul.f32 %v6769_v54, %v6960_v61  ;;  %v6977_v27 = vld [vmem:[#allocation9_spill] sm:$0xff]  ;;  %v6978_v61 = vld [vmem:[#allocation4_spill] sm:$0xff] }
0x1b43   : > { %v4081_v25 = vrot.slane %v4059_v18, 4  ;;  %v4080_v51 = vrot.slane %v6769_v54, 4  ;;  %v4134_v30 = vrot.slane %v4068_v12, 4  ;;  %v4063_v17 = vmul.f32 %v6769_v54, %v6977_v27 }
0x1b44   : > { %4150 = vrot.lane.b32.xlu0 %v4071_v55, %s4480_s24  ;;  %v4064_v39 = vmul.f32 %v6978_v61, %v4059_v18  ;;  %v4069_v23 = vmul.f32 %v6769_v54, %v6980_v20  ;;  %v4108_v26 = vrot.slane %v4065_v57, 4  ;;  %v4070_v63 = vmul.f32 %v6981_v43, %v4059_v18 }
0x1b45   : > { %v4066_v33 = vmul.f32 %v6769_v54, %v6982_v40  ;;  %v4067_v5 = vmul.f32 %v6983_v45, %v4059_v18  ;;  %vm6984_vm4 = vcmask 433152   ;;  %v4061_v40 = vmul.f32 %v4601_v11, %v6769_v54 }
0x1b46   : > { %4160 = vrot.lane.b32.xlu1 %v4079_v60, %s4481_s25  ;;  %v4135_v7 = vrot.slane %v4069_v23, 4  ;;  %v4136_v35 = vrot.slane %v4070_v63, 4  ;;  %4400 = vmatprep.mubr.msk.f32.mxu1 %vm6984_vm4, %v4195_v13 }
0x1b47   : > { %v4109_v8 = vrot.slane %v4066_v33, 4  ;;  %v4110_v16 = vrot.slane %v4067_v5, 4 }
0x1b48   : > { %4123 = vrot.lane.b32.xlu0 %v6769_v54, %s4478_s19  ;;  %v6985_v54 = vld [vmem:[#allocation7_spill] sm:$0xff] }
0x1b4a   : > { %4125 = vrot.lane.b32.xlu1 %v4059_v18, %s4478_s19 }
0x1b4c   : > { %4095 = vrot.lane.b32.xlu0 %v4062_v21, %s4482_s26 }
0x1b4e   : > { %4175 = vrot.lane.b32.xlu1 %v4075_v32, %s4479_s20 }
0x1b50   : > { %4177 = vrot.lane.b32.xlu0 %v4076_v0, %s4479_s20 }
0x1b52   : > { %4154 = vrot.lane.b32.xlu1 %v4073_v59, %s4480_s24 }
0x1b54   : > { %4152 = vrot.lane.b32.xlu0 %v4072_v2, %s4480_s24 }
0x1b56   : > { %4164 = vrot.lane.b32.xlu1 %v4081_v25, %s4481_s25 }
0x1b58   : > { %4162 = vrot.lane.b32.xlu0 %v4080_v51, %s4481_s25  ;;  %s521_s25 = scalar_lea.vmem %s6888_s16, %s4403_s23 }
0x1b5a   : > { %4137 = vrot.lane.b32.xlu1 %v4134_v30, %s4483_s29 }
0x1b5c   : > { %4097 = vrot.lane.b32.xlu0 %v4063_v17, %s4482_s26 }
0x1b5e   : > { %4099 = vrot.lane.b32.xlu1 %v4064_v39, %s4482_s26 }
0x1b60   : > { %4084 = vrot.lane.b32.xlu0 %v4080_v51, %s4484_s30 }
0x1b62   : > { %4111 = vrot.lane.b32.xlu1 %v4108_v26, %s4485_s0 }
0x1b64   : > { %4139 = vrot.lane.b32.xlu0 %v4135_v7, %s4483_s29 }
0x1b66   : > { %4141 = vrot.lane.b32.xlu1 %v4136_v35, %s4483_s29  ;;  %v4060_v35 = vmul.f32 %v4597_v9, %v6756_v28 }
0x1b68   : > { %4113 = vrot.lane.b32.xlu0 %v4109_v8, %s4485_s0 }
0x1b6a   : > { %4115 = vrot.lane.b32.xlu1 %v4110_v16, %s4485_s0 }
0x1b6c   : > { %4082 = vrot.lane.b32.xlu0 %v4079_v60, %s4484_s30 }
0x1b6e   : > { %4086 = vrot.lane.b32.xlu1 %v4081_v25, %s4484_s30 }
0x1bb2   : > { %v4122_v19 = vpop.permute.xlu0 %4121 }
0x1bb4   : > { %v4174_v53 = vpop.permute.xlu1 %4173 }
0x1bb6   : > { %v4151_v3 = vpop.permute.xlu0 %4150 }
0x1bb8   : > { %v4161_v4 = vpop.permute.xlu1 %4160 }
0x1bba   : > { %v4124_v37 = vpop.permute.xlu0 %4123 }
0x1bbb   : > { %v4127_v51 = vsel %vm694_vm0, %v4122_v19, %v4124_v37  ;;  %v6986_v19 = vld [vmem:[#allocation12_spill] sm:$0xff] }
0x1bbc   : > { %v4126_v41 = vpop.permute.xlu1 %4125 }
0x1bbd   : > { %v4128_v48 = vsel %vm694_vm0, %v4124_v37, %v4126_v41  ;;  %v6987_v37 = vld [vmem:[#allocation2_spill] sm:$0xff] }
0x1bbe   : > { %v4096_v15 = vpop.permute.xlu0 %4095 }
0x1bc0   : > { %v4176_v31 = vpop.permute.xlu1 %4175 }
0x1bc1   : > { %v4179_v10 = vsel %vm750_vm11, %v4174_v53, %v4176_v31 }
0x1bc2   : > { %v4178_v44 = vpop.permute.xlu0 %4177  ;;  %v4192_v24 = vsel %vm755_vm13, %v4179_v10, 1.0 }
0x1bc3   : > { %v4180_v50 = vsel %vm750_vm11, %v4176_v31, %v4178_v44 }
0x1bc4   : > { %v4193_v34 = vsel %vm755_vm13, %v4180_v50, 1.0  ;;  %v4155_v1 = vpop.permute.xlu1 %4154 }
0x1bc5   : > { %4398 = vmatprep.subr.msk.mxu1 %vm771_vm14, %v4193_v34 }
0x1bc6   : > { %4399 = vmatpush2.msk.msra.mxu1 %vm771_vm14, %v4192_v24  ;;  %v4153_v6 = vpop.permute.xlu0 %4152 }
0x1bc7   : > { %v4156_v52 = vsel %vm725_vm10, %v4151_v3, %v4153_v6  ;;  %v4157_v56 = vsel %vm725_vm10, %v4153_v6, %v4155_v1 }
0x1bc8   : > { %v4165_v29 = vpop.permute.xlu1 %4164 }
0x1bca   : > { %v4163_v62 = vpop.permute.xlu0 %4162 }
0x1bcb   : > { %v4166_v49 = vsel %vm736_vm12, %v4161_v4, %v4163_v62  ;;  %v4167_v22 = vsel %vm736_vm12, %v4163_v62, %v4165_v29 }
0x1bcc   : > { %v4138_v55 = vpop.permute.xlu1 %4137  ;;  %v4190_v58 = vsel %vm755_vm13, %v4157_v56, %v4167_v22  ;;  %v4189_v60 = vsel %vm755_vm13, %v4156_v52, %v4166_v49 }
0x1bcd   : > { %4256 = vmatprep.subr.mxu1 %v4190_v58 }
0x1bce   : > { %4257 = vmatpush2.msra.mxu1 %v4189_v60  ;;  %v4098_v18 = vpop.permute.xlu0 %4097 }
0x1bcf   : > { %v4101_v20 = vsel %vm666_vm2, %v4096_v15, %v4098_v18 }
0x1bd0   : > { %v4100_v21 = vpop.permute.xlu1 %4099 }
0x1bd1   : > { %v4102_v46 = vsel %vm666_vm2, %v4098_v18, %v4100_v21 }
0x1bd2   : > { %v4085_v32 = vpop.permute.xlu0 %4084 }
0x1bd4   : > { %v4112_v0 = vpop.permute.xlu1 %4111 }
0x1bd6   : > { %v4140_v59 = vpop.permute.xlu0 %4139 }
0x1bd7   : > { %v4143_v2 = vsel %vm711_vm15, %v4138_v55, %v4140_v59 }
0x1bd8   : > { %v4142_v25 = vpop.permute.xlu1 %4141  ;;  %v4187_v17 = vsel %vm755_vm13, %v4127_v51, %v4143_v2 }
0x1bd9   : > { %v4144_v12 = vsel %vm711_vm15, %v4140_v59, %v4142_v25 }
0x1bda   : > { %v4114_v30 = vpop.permute.xlu0 %4113  ;;  %v4188_v27 = vsel %vm755_vm13, %v4128_v48, %v4144_v12 }
0x1bdb   : > { %4258 = vmatprep.subr.mxu1 %v4188_v27  ;;  %v4117_v61 = vsel %vm683_vm1, %v4112_v0, %v4114_v30 }
0x1bdc   : > { %v4116_v39 = vpop.permute.xlu1 %4115  ;;  %4259 = vmatpush2.msra.mxu1 %v4187_v17  ;;  %v4185_v43 = vsel %vm755_vm13, %v4101_v20, %v4117_v61 }
0x1bdd   : > { %v4118_v57 = vsel %vm683_vm1, %v4114_v30, %v4116_v39 }
0x1bde   : > { %v4083_v23 = vpop.permute.xlu0 %4082  ;;  %v4186_v26 = vsel %vm755_vm13, %v4102_v46, %v4118_v57 }
0x1bdf   : > { %4260 = vmatprep.subr.mxu1 %v4186_v26  ;;  %v4088_v63 = vsel %vm652_vm3, %v4083_v23, %v4085_v32 }
0x1be0   : > { %v4087_v7 = vpop.permute.xlu1 %4086  ;;  %4261 = vmatpush2.msra.mxu1 %v4185_v43  ;;  %v4183_v5 = vsel %vm755_vm13, %v4060_v35, %v4088_v63 }
0x1be1   : > { %v4089_v33 = vsel %vm652_vm3, %v4085_v32, %v4087_v7 }
0x1be2   : > { %v4184_v45 = vsel %vm755_vm13, %v4061_v40, %v4089_v33 }
0x1be3   : > { %4262 = vmatprep.subr.mxu1 %v4184_v45 }
0x1be4   : > { %4263 = vmatpush2.msra.mxu1 %v4183_v5 }
0x1be5   : > { %4264 = vmatprep.subr.mxu1 %v6733_v47  ;;  %v4462_v47 = vld [vmem:[%s4589_s27] sm:$0xff] }
0x1be6   : > { %4265 = vmatpush2.msra.mxu1 %v6737_v14 }
0x1be7   : > { %4266 = vmatprep.subr.mxu1 %v6743_v42 }
0x1be8   : > { %4267 = vmatpush2.msra.mxu1 %v6749_v36 }
0x1be9   : > { %4269 = vmatmul.mubr.f32.vlgmr.msra.gmra.mxu1 %v6815_v38 }
0x1ca9   : > { %v4270_v11 = vpop.f32.mrf.mxu1 }
0x1caa   : > { %v4275_v9 = vmul.f32 0.2, %v4270_v11 }
0x1cab   : > { %v4272_v28 = vpop.f32.mrf.mxu1 }
0x1cac   : > { %v4277_v8 = vadd.f32 %v4275_v9, %v6985_v54  ;;  %v4276_v16 = vmul.f32 0.2, %v4272_v28 }
0x1cae   : > { %v4279_v13 = vmul.f32 0.2, %v4277_v8  ;;  %v4278_v53 = vadd.f32 %v4276_v16, %v6986_v19 }
0x1cb0   : > { %v4280_v3 = vmul.f32 0.2, %v4278_v53  ;;  %v4281_v4 = vadd.f32 %v4462_v47, %v4279_v13 }
0x1cb2   : > { %v4282_v14 = vadd.f32 %v4280_v3, %v6987_v37 }
0x1cb4   : > { %v4285_v42 = vcombine.low %v4281_v4, %v4282_v14 }
0x1cb6   : > { %4287 = vst [vmem:[%s521_s25] sm:$0xff] %v4285_v42 }
0x1cb7 PF: > { %s26_s21 = sadd.s32 1, %s4469_s21  }
0x1cb8   : > { %p23_p4 = scmp.ge.s32.totalorder %s26_s21, 4  }
0x1cba   :  { %25 = sbr.rel (!%p23_p4) target bundleno = 2 (0x2), region = 114 }

</bundles_post_ra>
